<compile_context>
chip_gen: v7x
topology: tpu7x:2x2x1
jax: 0.10.0
libtpu: 0.0.40
codegen_flags: <defaults>
</compile_context>

<pallas_src>
import math

import jax
import jax.numpy as jnp
import numpy as np
from jax.experimental import pallas as pl
from jax.experimental.pallas import tpu as pltpu


def _conv_out(n, k, s):
    return (n - k) // s + 1


# ----------------------------- in-kernel code ------------------------------ #

def _row_subsample(a, off, stride, n):
    """Rows off, off+stride, ..., off+stride*(n-1) along the leading dim of a.

    Uses only leading-dim slices / leading-dim reshapes (free relayouts in
    Mosaic); no strided or gather accesses.
    """
    h_in = a.shape[0]
    if stride == 1 or n == 1:
        return a[off:off + 1] if n == 1 else a[off:off + n]
    assert off + stride * (n - 1) < h_in
    span = stride * n
    start = min(off, h_in - span)
    phase = off - start
    if start >= 0 and 0 <= phase < stride:
        win = a[start:start + span]                      # leading-dim slice
        win = win.reshape((n, stride) + a.shape[1:])     # leading-dim split
        return win[:, phase]                             # leading-dim index
    # Generic fallback (never taken for k >= stride): unit-stride slices.
    return jnp.concatenate(
        [a[off + i * stride: off + i * stride + 1] for i in range(n)], axis=0)


def _mid_layer(a, t_ref, b_ref, *, ksize, stride, h_out, btile):
    """One conv + ReLU on the VMEM-resident activation.

    a:     (H_in, btile, Cin*Xin) bf16, lane index = ci*Xin + x
    t_ref: (ksize, Cin*Xin, Cout*Xout) bf16 banded weight matrices (per kh)
    b_ref: (1, Cout*Xout) f32
    Returns (h_out, btile, Cout*Xout) bf16, lane index = co*Xout + j.
    """
    lin = a.shape[-1]
    acc = None
    for kh in range(ksize):
        rows = _row_subsample(a, kh, stride, h_out)      # (h_out, btile, lin)
        lhs = rows.reshape(h_out * btile, lin)           # tile-aligned merge
        part = jnp.dot(lhs, t_ref[kh],                   # MXU, f32 accumulate
                       preferred_element_type=jnp.float32)
        acc = part if acc is None else acc + part
    acc = jnp.maximum(acc + b_ref[...], 0.0)             # bias + ReLU in f32
    lout = acc.shape[-1]
    return acc.reshape(h_out, btile, lout).astype(jnp.bfloat16)


def _last_layer(a, t_ref, b_ref, *, ksize, stride, h_out, btile):
    """Last conv + ReLU, emitting the NCHW-order flatten directly.

    a:     (H_in, btile, Cin*Xin) bf16
    t_ref: (h_out*ksize, Cin*Xin, n_out) bf16 -- results land at their final
           flattened lane position co*(H*W) + i*W + j.
    b_ref: (1, n_out) f32
    Returns (btile, n_out) f32.
    """
    del stride  # row index below uses the static layer stride via closure cfg
    acc = None
    for i in range(h_out):
        for kh in range(ksize):
            lhs = a[i * 2 + kh] if False else None  # placeholder (not used)
    # (re-done below with the correct stride; kept simple & explicit)
    acc = None
    return acc


def _make_last_layer(ksize, stride, h_out, btile):
    def last_layer(a, t_ref, b_ref):
        acc = None
        for i in range(h_out):
            for kh in range(ksize):
                lhs = a[i * stride + kh]                 # (btile, Cin*Xin)
                part = jnp.dot(lhs, t_ref[i * ksize + kh],
                               preferred_element_type=jnp.float32)
                acc = part if acc is None else acc + part
        return jnp.maximum(acc + b_ref[...], 0.0)        # (btile, n_out) f32
    return last_layer


def _make_kernel(layer_cfgs, btile):
    n_layers = len(layer_cfgs)
    last_fn = _make_last_layer(btile=btile, **layer_cfgs[-1])

    def kernel(x_ref, *refs):
        o_ref = refs[-1]
        a = x_ref[...]                                   # (H0, btile, C0*W0) bf16
        for li in range(n_layers - 1):
            a = _mid_layer(a, refs[2 * li], refs[2 * li + 1],
                           btile=btile, **layer_cfgs[li])
        out = last_fn(a, refs[2 * (n_layers - 1)], refs[2 * n_layers - 1])
        o_ref[...] = out.astype(o_ref.dtype)             # (btile, n_out) dense

    return kernel


# ------------------------------ builder / glue ------------------------------ #

def build_pixel_embedding(input_shape=(3, 37, 37), feature_maps=(8, 16, 32),
                          kernel_sizes=(5, 5, 5), strides=(2, 2, 2),
                          batch_tile=16):
    """Returns (jitted forward(packed_params, x_nchw), pack_params, n_out)."""
    assert batch_tile % 8 == 0, "batch_tile must be a multiple of 8"
    c0, h0, w0 = input_shape
    n_layers = len(feature_maps)

    # Static per-layer geometry (exact conv output sizes, no overcompute).
    heights, widths, chans = [h0], [w0], [c0]
    for k, s, f in zip(kernel_sizes, strides, feature_maps):
        heights.append(_conv_out(heights[-1], k, s))
        widths.append(_conv_out(widths[-1], k, s))
        chans.append(f)
        assert heights[-1] > 0 and widths[-1] > 0
    out_c, out_h, out_w = chans[-1], heights[-1], widths[-1]
    n_out = out_c * out_h * out_w

    layer_cfgs = tuple(dict(ksize=kernel_sizes[l], stride=strides[l],
                            h_out=heights[l + 1]) for l in range(n_layers))
    kernel = _make_kernel(layer_cfgs, batch_tile)
    bt = batch_tile

    def pack_params(params_oihw):
        """One-time weight prep: conv filters -> banded lane-matmul matrices."""
        packed = []
        for l, (w, b) in enumerate(params_oihw):
            w = np.asarray(w, np.float32)
            b = np.asarray(b, np.float32)
            cout, cin, kh_sz, kw_sz = w.shape
            assert cin == chans[l] and cout == chans[l + 1]
            assert kh_sz == kernel_sizes[l] and kw_sz == kernel_sizes[l]
            x_in, x_out = widths[l], widths[l + 1]
            s = strides[l]
            last = (l == n_layers - 1)
            co_idx = np.arange(cout)
            if not last:
                # T[kh, ci*Xin + x, co*Xout + j] = w[co, ci, kh, x - s*j]
                t = np.zeros((kh_sz, cin * x_in, cout * x_out), np.float32)
                for kh in range(kh_sz):
                    for j in range(x_out):
                        for kw in range(kw_sz):
                            x = s * j + kw
                            for ci in range(cin):
                                t[kh, ci * x_in + x,
                                  co_idx * x_out + j] = w[:, ci, kh, kw]
                b_lane = np.repeat(b, x_out)[None, :]
            else:
                # Results go straight to the PyTorch NCHW-flatten lane:
                # T[i*K + kh, ci*Xin + x, co*(H*W) + i*W + j] = w[co,ci,kh,x-s*j]
                hx = out_h * out_w
                t = np.zeros((out_h * kh_sz, cin * x_in, n_out), np.float32)
                for i in range(out_h):
                    for kh in range(kh_sz):
                        for j in range(x_out):
                            for kw in range(kw_sz):
                                x = s * j + kw
                                for ci in range(cin):
                                    t[i * kh_sz + kh, ci * x_in + x,
                                      co_idx * hx + i * x_out + j] = \
                                        w[:, ci, kh, kw]
                b_lane = np.repeat(b, hx)[None, :]
            packed.append((jnp.asarray(t, jnp.bfloat16),
                           jnp.asarray(b_lane, jnp.float32)))
        return packed

    @jax.jit
    def forward(packed_params, x_nchw):
        n = x_nchw.shape[0]
        n_pad = ((n + bt - 1) // bt) * bt
        # (N, C, H, W) -> (H0, N, C0*W0) bf16: one small fused transpose+cast.
        # Gives a lane-dense VMEM tile (C0*W0 in the 128-lane axis, B_TILE in
        # sublanes) instead of the lane-sparse NHWC tile of the old version.
        x_t = jnp.transpose(x_nchw.astype(jnp.bfloat16), (2, 0, 1, 3))
        x_t = x_t.reshape(h0, n, c0 * w0)
        if n_pad != n:
            x_t = jnp.pad(x_t, ((0, 0), (0, n_pad - n), (0, 0)))

        flat = []
        in_specs = [pl.BlockSpec((h0, bt, c0 * w0), lambda b: (0, b, 0))]
        for t, b_lane in packed_params:
            flat += [t, b_lane]
            # Constant index maps: Pallas does not re-DMA unchanged blocks.
            in_specs.append(pl.BlockSpec(t.shape, lambda b: (0, 0, 0)))
            in_specs.append(pl.BlockSpec(b_lane.shape, lambda b: (0, 0)))

        out = pl.pallas_call(
            kernel,
            out_shape=jax.ShapeDtypeStruct((n_pad, n_out), jnp.float32),
            grid=(n_pad // bt,),
            in_specs=in_specs,
            out_specs=pl.BlockSpec((bt, n_out), lambda b: (b, 0)),
            compiler_params=pltpu.CompilerParams(
                dimension_semantics=("parallel",),
                vmem_limit_bytes=32 * 1024 * 1024),
        )(x_t, *flat)
        return out[:n] if n_pad != n else out

    return forward, pack_params, n_out


# ------------------------- params init & reference ------------------------- #

def init_pixel_embedding(key, input_shape=(3, 37, 37),
                         feature_maps=(8, 16, 32),
                         kernel_sizes=(5, 5, 5)):
    """PyTorch-style uniform(-1/sqrt(fan_in), 1/sqrt(fan_in)) init (OIHW)."""
    params = []
    cin = input_shape[0]
    for cout, k in zip(feature_maps, kernel_sizes):
        key, kw_key, kb_key = jax.random.split(key, 3)
        bound = 1.0 / math.sqrt(cin * k * k)
        w = jax.random.uniform(kw_key, (cout, cin, k, k), jnp.float32,
                               -bound, bound)
        b = jax.random.uniform(kb_key, (cout,), jnp.float32, -bound, bound)
        params.append((w, b))
        cin = cout
    return params


def reference_forward(params_oihw, x_nchw, strides):
    """Plain-XLA f32 reference (lax.conv) for numerical checking."""
    x = x_nchw
    for (w, b), s in zip(params_oihw, strides):
        x = jax.lax.conv_general_dilated(
            x, w, window_strides=(s, s), padding="VALID",
            dimension_numbers=("NCHW", "OIHW", "NCHW"),
            precision=jax.lax.Precision.HIGHEST)
        x = jax.nn.relu(x + b[None, :, None, None])
    return x.reshape(x.shape[0], -1)


if __name__ == "__main__":
    input_shape = (3, 37, 37)          # small shapes consistent with the module
    feature_maps = (8, 16, 32)
    kernel_sizes = (5, 5, 5)
    strides = (2, 2, 2)
    batch = 24                         # pads to 32 -> grid = 2 (both v7x TCs busy)

    key = jax.random.PRNGKey(0)
    key, pkey, xkey = jax.random.split(key, 3)
    params = init_pixel_embedding(pkey, input_shape, feature_maps, kernel_sizes)
    x = jax.random.normal(xkey, (batch,) + input_shape, jnp.float32)

    forward, pack_params, n_out = build_pixel_embedding(
        input_shape, feature_maps, kernel_sizes, strides, batch_tile=16)
    packed = pack_params(params)       # weight prep happens once, not per call

    out = jax.block_until_ready(forward(packed, x))

    assert out.shape == (batch, n_out), (out.shape, n_out)
    assert bool(jnp.all(out >= 0.0))   # ReLU semantics

    ref = jax.block_until_ready(reference_forward(params, x, strides))
    max_err = float(jnp.max(jnp.abs(out - ref)))
    assert max_err < 1e-1, f"kernel vs lax.conv reference mismatch: {max_err}"
    print("KERNEL_OK")
</pallas_src>

<mosaic_0001>
module attributes {stable_mosaic.version = 11 : i64} {
  func.func @kernel(%arg0: i32, %arg1: memref<37x16x111xbf16, #tpu.memory_space<vmem>>, %arg2: memref<5x111x136xbf16, #tpu.memory_space<vmem>>, %arg3: memref<1x136xf32, #tpu.memory_space<vmem>>, %arg4: memref<5x136x112xbf16, #tpu.memory_space<vmem>>, %arg5: memref<1x112xf32, #tpu.memory_space<vmem>>, %arg6: memref<10x112x128xbf16, #tpu.memory_space<vmem>>, %arg7: memref<1x128xf32, #tpu.memory_space<vmem>>, %arg8: memref<16x128xf32, #tpu.memory_space<vmem>>) attributes {dimension_semantics = [#tpu.dimension_semantics<parallel>], iteration_bounds = array<i64: 2>, scalar_prefetch = 0 : i64, scratch_operands = 0 : i64, tpu.core_type = #tpu.core_type<tc>, window_params = [{transform_indices = @transform_0, window_bounds = array<i64: 37, 16, 111>}, {pipeline_mode = #tpu.pipeline_mode<synchronous>, transform_indices = @transform_1, window_bounds = array<i64: 5, 111, 136>}, {pipeline_mode = #tpu.pipeline_mode<synchronous>, transform_indices = @transform_2, window_bounds = array<i64: 1, 136>}, {pipeline_mode = #tpu.pipeline_mode<synchronous>, transform_indices = @transform_3, window_bounds = array<i64: 5, 136, 112>}, {pipeline_mode = #tpu.pipeline_mode<synchronous>, transform_indices = @transform_4, window_bounds = array<i64: 1, 112>}, {pipeline_mode = #tpu.pipeline_mode<synchronous>, transform_indices = @transform_5, window_bounds = array<i64: 10, 112, 128>}, {pipeline_mode = #tpu.pipeline_mode<synchronous>, transform_indices = @transform_6, window_bounds = array<i64: 1, 128>}, {transform_indices = @transform_7, window_bounds = array<i64: 16, 128>}]} {
    %c0 = arith.constant 0 : index
    %c0_0 = arith.constant 0 : index
    %c0_1 = arith.constant 0 : index
    %0 = vector.load %arg1[%c0, %c0_0, %c0_1] : memref<37x16x111xbf16, #tpu.memory_space<vmem>>, vector<37x16x111xbf16>
    %1 = vector.extract_strided_slice %0 {offsets = [0, 0, 0], sizes = [34, 16, 111], strides = [1, 1, 1]} : vector<37x16x111xbf16> to vector<34x16x111xbf16>
    %2 = vector.shape_cast %1 : vector<34x16x111xbf16> to vector<17x2x16x111xbf16>
    %3 = vector.extract_strided_slice %2 {offsets = [0, 0, 0, 0], sizes = [17, 1, 16, 111], strides = [1, 1, 1, 1]} : vector<17x2x16x111xbf16> to vector<17x1x16x111xbf16>
    %4 = vector.shape_cast %3 : vector<17x1x16x111xbf16> to vector<17x16x111xbf16>
    %5 = vector.shape_cast %4 : vector<17x16x111xbf16> to vector<272x111xbf16>
    %c0_2 = arith.constant 0 : index
    %c0_3 = arith.constant 0 : index
    %c0_4 = arith.constant 0 : index
    %6 = vector.load %arg2[%c0_2, %c0_3, %c0_4] : memref<5x111x136xbf16, #tpu.memory_space<vmem>>, vector<1x111x136xbf16>
    %7 = vector.shape_cast %6 : vector<1x111x136xbf16> to vector<111x136xbf16>
    %cst = arith.constant dense<0.000000e+00> : vector<272x136xf32>
    %8 = tpu.matmul %5, %7, %cst {dimension_numbers = #tpu.dot_dimension_numbers<[1], [0], [0], [1], [0, 0, 1, 1], [], []>} : vector<272x111xbf16>, vector<111x136xbf16>, vector<272x136xf32> -> vector<272x136xf32>
    %9 = vector.extract_strided_slice %0 {offsets = [1, 0, 0], sizes = [34, 16, 111], strides = [1, 1, 1]} : vector<37x16x111xbf16> to vector<34x16x111xbf16>
    %10 = vector.shape_cast %9 : vector<34x16x111xbf16> to vector<17x2x16x111xbf16>
    %11 = vector.extract_strided_slice %10 {offsets = [0, 0, 0, 0], sizes = [17, 1, 16, 111], strides = [1, 1, 1, 1]} : vector<17x2x16x111xbf16> to vector<17x1x16x111xbf16>
    %12 = vector.shape_cast %11 : vector<17x1x16x111xbf16> to vector<17x16x111xbf16>
    %13 = vector.shape_cast %12 : vector<17x16x111xbf16> to vector<272x111xbf16>
    %c1 = arith.constant 1 : index
    %c0_5 = arith.constant 0 : index
    %c0_6 = arith.constant 0 : index
    %14 = vector.load %arg2[%c1, %c0_5, %c0_6] : memref<5x111x136xbf16, #tpu.memory_space<vmem>>, vector<1x111x136xbf16>
    %15 = vector.shape_cast %14 : vector<1x111x136xbf16> to vector<111x136xbf16>
    %cst_7 = arith.constant dense<0.000000e+00> : vector<272x136xf32>
    %16 = tpu.matmul %13, %15, %cst_7 {dimension_numbers = #tpu.dot_dimension_numbers<[1], [0], [0], [1], [0, 0, 1, 1], [], []>} : vector<272x111xbf16>, vector<111x136xbf16>, vector<272x136xf32> -> vector<272x136xf32>
    %17 = arith.addf %8, %16 : vector<272x136xf32>
    %18 = vector.extract_strided_slice %0 {offsets = [2, 0, 0], sizes = [34, 16, 111], strides = [1, 1, 1]} : vector<37x16x111xbf16> to vector<34x16x111xbf16>
    %19 = vector.shape_cast %18 : vector<34x16x111xbf16> to vector<17x2x16x111xbf16>
    %20 = vector.extract_strided_slice %19 {offsets = [0, 0, 0, 0], sizes = [17, 1, 16, 111], strides = [1, 1, 1, 1]} : vector<17x2x16x111xbf16> to vector<17x1x16x111xbf16>
    %21 = vector.shape_cast %20 : vector<17x1x16x111xbf16> to vector<17x16x111xbf16>
    %22 = vector.shape_cast %21 : vector<17x16x111xbf16> to vector<272x111xbf16>
    %c2 = arith.constant 2 : index
    %c0_8 = arith.constant 0 : index
    %c0_9 = arith.constant 0 : index
    %23 = vector.load %arg2[%c2, %c0_8, %c0_9] : memref<5x111x136xbf16, #tpu.memory_space<vmem>>, vector<1x111x136xbf16>
    %24 = vector.shape_cast %23 : vector<1x111x136xbf16> to vector<111x136xbf16>
    %cst_10 = arith.constant dense<0.000000e+00> : vector<272x136xf32>
    %25 = tpu.matmul %22, %24, %cst_10 {dimension_numbers = #tpu.dot_dimension_numbers<[1], [0], [0], [1], [0, 0, 1, 1], [], []>} : vector<272x111xbf16>, vector<111x136xbf16>, vector<272x136xf32> -> vector<272x136xf32>
    %26 = arith.addf %17, %25 : vector<272x136xf32>
    %27 = vector.extract_strided_slice %0 {offsets = [3, 0, 0], sizes = [34, 16, 111], strides = [1, 1, 1]} : vector<37x16x111xbf16> to vector<34x16x111xbf16>
    %28 = vector.shape_cast %27 : vector<34x16x111xbf16> to vector<17x2x16x111xbf16>
    %29 = vector.extract_strided_slice %28 {offsets = [0, 0, 0, 0], sizes = [17, 1, 16, 111], strides = [1, 1, 1, 1]} : vector<17x2x16x111xbf16> to vector<17x1x16x111xbf16>
    %30 = vector.shape_cast %29 : vector<17x1x16x111xbf16> to vector<17x16x111xbf16>
    %31 = vector.shape_cast %30 : vector<17x16x111xbf16> to vector<272x111xbf16>
    %c3 = arith.constant 3 : index
    %c0_11 = arith.constant 0 : index
    %c0_12 = arith.constant 0 : index
    %32 = vector.load %arg2[%c3, %c0_11, %c0_12] : memref<5x111x136xbf16, #tpu.memory_space<vmem>>, vector<1x111x136xbf16>
    %33 = vector.shape_cast %32 : vector<1x111x136xbf16> to vector<111x136xbf16>
    %cst_13 = arith.constant dense<0.000000e+00> : vector<272x136xf32>
    %34 = tpu.matmul %31, %33, %cst_13 {dimension_numbers = #tpu.dot_dimension_numbers<[1], [0], [0], [1], [0, 0, 1, 1], [], []>} : vector<272x111xbf16>, vector<111x136xbf16>, vector<272x136xf32> -> vector<272x136xf32>
    %35 = arith.addf %26, %34 : vector<272x136xf32>
    %36 = vector.extract_strided_slice %0 {offsets = [3, 0, 0], sizes = [34, 16, 111], strides = [1, 1, 1]} : vector<37x16x111xbf16> to vector<34x16x111xbf16>
    %37 = vector.shape_cast %36 : vector<34x16x111xbf16> to vector<17x2x16x111xbf16>
    %38 = vector.extract_strided_slice %37 {offsets = [0, 1, 0, 0], sizes = [17, 1, 16, 111], strides = [1, 1, 1, 1]} : vector<17x2x16x111xbf16> to vector<17x1x16x111xbf16>
    %39 = vector.shape_cast %38 : vector<17x1x16x111xbf16> to vector<17x16x111xbf16>
    %40 = vector.shape_cast %39 : vector<17x16x111xbf16> to vector<272x111xbf16>
    %c4 = arith.constant 4 : index
    %c0_14 = arith.constant 0 : index
    %c0_15 = arith.constant 0 : index
    %41 = vector.load %arg2[%c4, %c0_14, %c0_15] : memref<5x111x136xbf16, #tpu.memory_space<vmem>>, vector<1x111x136xbf16>
    %42 = vector.shape_cast %41 : vector<1x111x136xbf16> to vector<111x136xbf16>
    %cst_16 = arith.constant dense<0.000000e+00> : vector<272x136xf32>
    %43 = tpu.matmul %40, %42, %cst_16 {dimension_numbers = #tpu.dot_dimension_numbers<[1], [0], [0], [1], [0, 0, 1, 1], [], []>} : vector<272x111xbf16>, vector<111x136xbf16>, vector<272x136xf32> -> vector<272x136xf32>
    %44 = arith.addf %35, %43 : vector<272x136xf32>
    %c0_17 = arith.constant 0 : index
    %c0_18 = arith.constant 0 : index
    %45 = vector.load %arg3[%c0_17, %c0_18] : memref<1x136xf32, #tpu.memory_space<vmem>>, vector<1x136xf32>
    %46 = vector.broadcast %45 : vector<1x136xf32> to vector<272x136xf32>
    %47 = arith.addf %44, %46 : vector<272x136xf32>
    %cst_19 = arith.constant 0.000000e+00 : f32
    %48 = vector.broadcast %cst_19 : f32 to vector<272x136xf32>
    %49 = arith.maximumf %47, %48 : vector<272x136xf32>
    %50 = vector.shape_cast %49 : vector<272x136xf32> to vector<17x16x136xf32>
    %51 = arith.truncf %50 : vector<17x16x136xf32> to vector<17x16x136xbf16>
    %52 = vector.extract_strided_slice %51 {offsets = [0, 0, 0], sizes = [14, 16, 136], strides = [1, 1, 1]} : vector<17x16x136xbf16> to vector<14x16x136xbf16>
    %53 = vector.shape_cast %52 : vector<14x16x136xbf16> to vector<7x2x16x136xbf16>
    %54 = vector.extract_strided_slice %53 {offsets = [0, 0, 0, 0], sizes = [7, 1, 16, 136], strides = [1, 1, 1, 1]} : vector<7x2x16x136xbf16> to vector<7x1x16x136xbf16>
    %55 = vector.shape_cast %54 : vector<7x1x16x136xbf16> to vector<7x16x136xbf16>
    %56 = vector.shape_cast %55 : vector<7x16x136xbf16> to vector<112x136xbf16>
    %c0_20 = arith.constant 0 : index
    %c0_21 = arith.constant 0 : index
    %c0_22 = arith.constant 0 : index
    %57 = vector.load %arg4[%c0_20, %c0_21, %c0_22] : memref<5x136x112xbf16, #tpu.memory_space<vmem>>, vector<1x136x112xbf16>
    %58 = vector.shape_cast %57 : vector<1x136x112xbf16> to vector<136x112xbf16>
    %cst_23 = arith.constant dense<0.000000e+00> : vector<112x112xf32>
    %59 = tpu.matmul %56, %58, %cst_23 {dimension_numbers = #tpu.dot_dimension_numbers<[1], [0], [0], [1], [0, 0, 1, 1], [], []>} : vector<112x136xbf16>, vector<136x112xbf16>, vector<112x112xf32> -> vector<112x112xf32>
    %60 = vector.extract_strided_slice %51 {offsets = [1, 0, 0], sizes = [14, 16, 136], strides = [1, 1, 1]} : vector<17x16x136xbf16> to vector<14x16x136xbf16>
    %61 = vector.shape_cast %60 : vector<14x16x136xbf16> to vector<7x2x16x136xbf16>
    %62 = vector.extract_strided_slice %61 {offsets = [0, 0, 0, 0], sizes = [7, 1, 16, 136], strides = [1, 1, 1, 1]} : vector<7x2x16x136xbf16> to vector<7x1x16x136xbf16>
    %63 = vector.shape_cast %62 : vector<7x1x16x136xbf16> to vector<7x16x136xbf16>
    %64 = vector.shape_cast %63 : vector<7x16x136xbf16> to vector<112x136xbf16>
    %c1_24 = arith.constant 1 : index
    %c0_25 = arith.constant 0 : index
    %c0_26 = arith.constant 0 : index
    %65 = vector.load %arg4[%c1_24, %c0_25, %c0_26] : memref<5x136x112xbf16, #tpu.memory_space<vmem>>, vector<1x136x112xbf16>
    %66 = vector.shape_cast %65 : vector<1x136x112xbf16> to vector<136x112xbf16>
    %cst_27 = arith.constant dense<0.000000e+00> : vector<112x112xf32>
    %67 = tpu.matmul %64, %66, %cst_27 {dimension_numbers = #tpu.dot_dimension_numbers<[1], [0], [0], [1], [0, 0, 1, 1], [], []>} : vector<112x136xbf16>, vector<136x112xbf16>, vector<112x112xf32> -> vector<112x112xf32>
    %68 = arith.addf %59, %67 : vector<112x112xf32>
    %69 = vector.extract_strided_slice %51 {offsets = [2, 0, 0], sizes = [14, 16, 136], strides = [1, 1, 1]} : vector<17x16x136xbf16> to vector<14x16x136xbf16>
    %70 = vector.shape_cast %69 : vector<14x16x136xbf16> to vector<7x2x16x136xbf16>
    %71 = vector.extract_strided_slice %70 {offsets = [0, 0, 0, 0], sizes = [7, 1, 16, 136], strides = [1, 1, 1, 1]} : vector<7x2x16x136xbf16> to vector<7x1x16x136xbf16>
    %72 = vector.shape_cast %71 : vector<7x1x16x136xbf16> to vector<7x16x136xbf16>
    %73 = vector.shape_cast %72 : vector<7x16x136xbf16> to vector<112x136xbf16>
    %c2_28 = arith.constant 2 : index
    %c0_29 = arith.constant 0 : index
    %c0_30 = arith.constant 0 : index
    %74 = vector.load %arg4[%c2_28, %c0_29, %c0_30] : memref<5x136x112xbf16, #tpu.memory_space<vmem>>, vector<1x136x112xbf16>
    %75 = vector.shape_cast %74 : vector<1x136x112xbf16> to vector<136x112xbf16>
    %cst_31 = arith.constant dense<0.000000e+00> : vector<112x112xf32>
    %76 = tpu.matmul %73, %75, %cst_31 {dimension_numbers = #tpu.dot_dimension_numbers<[1], [0], [0], [1], [0, 0, 1, 1], [], []>} : vector<112x136xbf16>, vector<136x112xbf16>, vector<112x112xf32> -> vector<112x112xf32>
    %77 = arith.addf %68, %76 : vector<112x112xf32>
    %78 = vector.extract_strided_slice %51 {offsets = [3, 0, 0], sizes = [14, 16, 136], strides = [1, 1, 1]} : vector<17x16x136xbf16> to vector<14x16x136xbf16>
    %79 = vector.shape_cast %78 : vector<14x16x136xbf16> to vector<7x2x16x136xbf16>
    %80 = vector.extract_strided_slice %79 {offsets = [0, 0, 0, 0], sizes = [7, 1, 16, 136], strides = [1, 1, 1, 1]} : vector<7x2x16x136xbf16> to vector<7x1x16x136xbf16>
    %81 = vector.shape_cast %80 : vector<7x1x16x136xbf16> to vector<7x16x136xbf16>
    %82 = vector.shape_cast %81 : vector<7x16x136xbf16> to vector<112x136xbf16>
    %c3_32 = arith.constant 3 : index
    %c0_33 = arith.constant 0 : index
    %c0_34 = arith.constant 0 : index
    %83 = vector.load %arg4[%c3_32, %c0_33, %c0_34] : memref<5x136x112xbf16, #tpu.memory_space<vmem>>, vector<1x136x112xbf16>
    %84 = vector.shape_cast %83 : vector<1x136x112xbf16> to vector<136x112xbf16>
    %cst_35 = arith.constant dense<0.000000e+00> : vector<112x112xf32>
    %85 = tpu.matmul %82, %84, %cst_35 {dimension_numbers = #tpu.dot_dimension_numbers<[1], [0], [0], [1], [0, 0, 1, 1], [], []>} : vector<112x136xbf16>, vector<136x112xbf16>, vector<112x112xf32> -> vector<112x112xf32>
    %86 = arith.addf %77, %85 : vector<112x112xf32>
    %87 = vector.extract_strided_slice %51 {offsets = [3, 0, 0], sizes = [14, 16, 136], strides = [1, 1, 1]} : vector<17x16x136xbf16> to vector<14x16x136xbf16>
    %88 = vector.shape_cast %87 : vector<14x16x136xbf16> to vector<7x2x16x136xbf16>
    %89 = vector.extract_strided_slice %88 {offsets = [0, 1, 0, 0], sizes = [7, 1, 16, 136], strides = [1, 1, 1, 1]} : vector<7x2x16x136xbf16> to vector<7x1x16x136xbf16>
    %90 = vector.shape_cast %89 : vector<7x1x16x136xbf16> to vector<7x16x136xbf16>
    %91 = vector.shape_cast %90 : vector<7x16x136xbf16> to vector<112x136xbf16>
    %c4_36 = arith.constant 4 : index
    %c0_37 = arith.constant 0 : index
    %c0_38 = arith.constant 0 : index
    %92 = vector.load %arg4[%c4_36, %c0_37, %c0_38] : memref<5x136x112xbf16, #tpu.memory_space<vmem>>, vector<1x136x112xbf16>
    %93 = vector.shape_cast %92 : vector<1x136x112xbf16> to vector<136x112xbf16>
    %cst_39 = arith.constant dense<0.000000e+00> : vector<112x112xf32>
    %94 = tpu.matmul %91, %93, %cst_39 {dimension_numbers = #tpu.dot_dimension_numbers<[1], [0], [0], [1], [0, 0, 1, 1], [], []>} : vector<112x136xbf16>, vector<136x112xbf16>, vector<112x112xf32> -> vector<112x112xf32>
    %95 = arith.addf %86, %94 : vector<112x112xf32>
    %c0_40 = arith.constant 0 : index
    %c0_41 = arith.constant 0 : index
    %96 = vector.load %arg5[%c0_40, %c0_41] : memref<1x112xf32, #tpu.memory_space<vmem>>, vector<1x112xf32>
    %97 = vector.broadcast %96 : vector<1x112xf32> to vector<112x112xf32>
    %98 = arith.addf %95, %97 : vector<112x112xf32>
    %cst_42 = arith.constant 0.000000e+00 : f32
    %99 = vector.broadcast %cst_42 : f32 to vector<112x112xf32>
    %100 = arith.maximumf %98, %99 : vector<112x112xf32>
    %101 = vector.shape_cast %100 : vector<112x112xf32> to vector<7x16x112xf32>
    %102 = arith.truncf %101 : vector<7x16x112xf32> to vector<7x16x112xbf16>
    %103 = vector.extract_strided_slice %102 {offsets = [0, 0, 0], sizes = [1, 16, 112], strides = [1, 1, 1]} : vector<7x16x112xbf16> to vector<1x16x112xbf16>
    %104 = vector.shape_cast %103 : vector<1x16x112xbf16> to vector<16x112xbf16>
    %c0_43 = arith.constant 0 : index
    %c0_44 = arith.constant 0 : index
    %c0_45 = arith.constant 0 : index
    %105 = vector.load %arg6[%c0_43, %c0_44, %c0_45] : memref<10x112x128xbf16, #tpu.memory_space<vmem>>, vector<1x112x128xbf16>
    %106 = vector.shape_cast %105 : vector<1x112x128xbf16> to vector<112x128xbf16>
    %cst_46 = arith.constant dense<0.000000e+00> : vector<16x128xf32>
    %107 = tpu.matmul %104, %106, %cst_46 {dimension_numbers = #tpu.dot_dimension_numbers<[1], [0], [0], [1], [0, 0, 1, 1], [], []>} : vector<16x112xbf16>, vector<112x128xbf16>, vector<16x128xf32> -> vector<16x128xf32>
    %108 = vector.extract_strided_slice %102 {offsets = [1, 0, 0], sizes = [1, 16, 112], strides = [1, 1, 1]} : vector<7x16x112xbf16> to vector<1x16x112xbf16>
    %109 = vector.shape_cast %108 : vector<1x16x112xbf16> to vector<16x112xbf16>
    %c1_47 = arith.constant 1 : index
    %c0_48 = arith.constant 0 : index
    %c0_49 = arith.constant 0 : index
    %110 = vector.load %arg6[%c1_47, %c0_48, %c0_49] : memref<10x112x128xbf16, #tpu.memory_space<vmem>>, vector<1x112x128xbf16>
    %111 = vector.shape_cast %110 : vector<1x112x128xbf16> to vector<112x128xbf16>
    %cst_50 = arith.constant dense<0.000000e+00> : vector<16x128xf32>
    %112 = tpu.matmul %109, %111, %cst_50 {dimension_numbers = #tpu.dot_dimension_numbers<[1], [0], [0], [1], [0, 0, 1, 1], [], []>} : vector<16x112xbf16>, vector<112x128xbf16>, vector<16x128xf32> -> vector<16x128xf32>
    %113 = arith.addf %107, %112 : vector<16x128xf32>
    %114 = vector.extract_strided_slice %102 {offsets = [2, 0, 0], sizes = [1, 16, 112], strides = [1, 1, 1]} : vector<7x16x112xbf16> to vector<1x16x112xbf16>
    %115 = vector.shape_cast %114 : vector<1x16x112xbf16> to vector<16x112xbf16>
    %c2_51 = arith.constant 2 : index
    %c0_52 = arith.constant 0 : index
    %c0_53 = arith.constant 0 : index
    %116 = vector.load %arg6[%c2_51, %c0_52, %c0_53] : memref<10x112x128xbf16, #tpu.memory_space<vmem>>, vector<1x112x128xbf16>
    %117 = vector.shape_cast %116 : vector<1x112x128xbf16> to vector<112x128xbf16>
    %cst_54 = arith.constant dense<0.000000e+00> : vector<16x128xf32>
    %118 = tpu.matmul %115, %117, %cst_54 {dimension_numbers = #tpu.dot_dimension_numbers<[1], [0], [0], [1], [0, 0, 1, 1], [], []>} : vector<16x112xbf16>, vector<112x128xbf16>, vector<16x128xf32> -> vector<16x128xf32>
    %119 = arith.addf %113, %118 : vector<16x128xf32>
    %120 = vector.extract_strided_slice %102 {offsets = [3, 0, 0], sizes = [1, 16, 112], strides = [1, 1, 1]} : vector<7x16x112xbf16> to vector<1x16x112xbf16>
    %121 = vector.shape_cast %120 : vector<1x16x112xbf16> to vector<16x112xbf16>
    %c3_55 = arith.constant 3 : index
    %c0_56 = arith.constant 0 : index
    %c0_57 = arith.constant 0 : index
    %122 = vector.load %arg6[%c3_55, %c0_56, %c0_57] : memref<10x112x128xbf16, #tpu.memory_space<vmem>>, vector<1x112x128xbf16>
    %123 = vector.shape_cast %122 : vector<1x112x128xbf16> to vector<112x128xbf16>
    %cst_58 = arith.constant dense<0.000000e+00> : vector<16x128xf32>
    %124 = tpu.matmul %121, %123, %cst_58 {dimension_numbers = #tpu.dot_dimension_numbers<[1], [0], [0], [1], [0, 0, 1, 1], [], []>} : vector<16x112xbf16>, vector<112x128xbf16>, vector<16x128xf32> -> vector<16x128xf32>
    %125 = arith.addf %119, %124 : vector<16x128xf32>
    %126 = vector.extract_strided_slice %102 {offsets = [4, 0, 0], sizes = [1, 16, 112], strides = [1, 1, 1]} : vector<7x16x112xbf16> to vector<1x16x112xbf16>
    %127 = vector.shape_cast %126 : vector<1x16x112xbf16> to vector<16x112xbf16>
    %c4_59 = arith.constant 4 : index
    %c0_60 = arith.constant 0 : index
    %c0_61 = arith.constant 0 : index
    %128 = vector.load %arg6[%c4_59, %c0_60, %c0_61] : memref<10x112x128xbf16, #tpu.memory_space<vmem>>, vector<1x112x128xbf16>
    %129 = vector.shape_cast %128 : vector<1x112x128xbf16> to vector<112x128xbf16>
    %cst_62 = arith.constant dense<0.000000e+00> : vector<16x128xf32>
    %130 = tpu.matmul %127, %129, %cst_62 {dimension_numbers = #tpu.dot_dimension_numbers<[1], [0], [0], [1], [0, 0, 1, 1], [], []>} : vector<16x112xbf16>, vector<112x128xbf16>, vector<16x128xf32> -> vector<16x128xf32>
    %131 = arith.addf %125, %130 : vector<16x128xf32>
    %132 = vector.extract_strided_slice %102 {offsets = [2, 0, 0], sizes = [1, 16, 112], strides = [1, 1, 1]} : vector<7x16x112xbf16> to vector<1x16x112xbf16>
    %133 = vector.shape_cast %132 : vector<1x16x112xbf16> to vector<16x112xbf16>
    %c5 = arith.constant 5 : index
    %c0_63 = arith.constant 0 : index
    %c0_64 = arith.constant 0 : index
    %134 = vector.load %arg6[%c5, %c0_63, %c0_64] : memref<10x112x128xbf16, #tpu.memory_space<vmem>>, vector<1x112x128xbf16>
    %135 = vector.shape_cast %134 : vector<1x112x128xbf16> to vector<112x128xbf16>
    %cst_65 = arith.constant dense<0.000000e+00> : vector<16x128xf32>
    %136 = tpu.matmul %133, %135, %cst_65 {dimension_numbers = #tpu.dot_dimension_numbers<[1], [0], [0], [1], [0, 0, 1, 1], [], []>} : vector<16x112xbf16>, vector<112x128xbf16>, vector<16x128xf32> -> vector<16x128xf32>
    %137 = arith.addf %131, %136 : vector<16x128xf32>
    %138 = vector.extract_strided_slice %102 {offsets = [3, 0, 0], sizes = [1, 16, 112], strides = [1, 1, 1]} : vector<7x16x112xbf16> to vector<1x16x112xbf16>
    %139 = vector.shape_cast %138 : vector<1x16x112xbf16> to vector<16x112xbf16>
    %c6 = arith.constant 6 : index
    %c0_66 = arith.constant 0 : index
    %c0_67 = arith.constant 0 : index
    %140 = vector.load %arg6[%c6, %c0_66, %c0_67] : memref<10x112x128xbf16, #tpu.memory_space<vmem>>, vector<1x112x128xbf16>
    %141 = vector.shape_cast %140 : vector<1x112x128xbf16> to vector<112x128xbf16>
    %cst_68 = arith.constant dense<0.000000e+00> : vector<16x128xf32>
    %142 = tpu.matmul %139, %141, %cst_68 {dimension_numbers = #tpu.dot_dimension_numbers<[1], [0], [0], [1], [0, 0, 1, 1], [], []>} : vector<16x112xbf16>, vector<112x128xbf16>, vector<16x128xf32> -> vector<16x128xf32>
    %143 = arith.addf %137, %142 : vector<16x128xf32>
    %144 = vector.extract_strided_slice %102 {offsets = [4, 0, 0], sizes = [1, 16, 112], strides = [1, 1, 1]} : vector<7x16x112xbf16> to vector<1x16x112xbf16>
    %145 = vector.shape_cast %144 : vector<1x16x112xbf16> to vector<16x112xbf16>
    %c7 = arith.constant 7 : index
    %c0_69 = arith.constant 0 : index
    %c0_70 = arith.constant 0 : index
    %146 = vector.load %arg6[%c7, %c0_69, %c0_70] : memref<10x112x128xbf16, #tpu.memory_space<vmem>>, vector<1x112x128xbf16>
    %147 = vector.shape_cast %146 : vector<1x112x128xbf16> to vector<112x128xbf16>
    %cst_71 = arith.constant dense<0.000000e+00> : vector<16x128xf32>
    %148 = tpu.matmul %145, %147, %cst_71 {dimension_numbers = #tpu.dot_dimension_numbers<[1], [0], [0], [1], [0, 0, 1, 1], [], []>} : vector<16x112xbf16>, vector<112x128xbf16>, vector<16x128xf32> -> vector<16x128xf32>
    %149 = arith.addf %143, %148 : vector<16x128xf32>
    %150 = vector.extract_strided_slice %102 {offsets = [5, 0, 0], sizes = [1, 16, 112], strides = [1, 1, 1]} : vector<7x16x112xbf16> to vector<1x16x112xbf16>
    %151 = vector.shape_cast %150 : vector<1x16x112xbf16> to vector<16x112xbf16>
    %c8 = arith.constant 8 : index
    %c0_72 = arith.constant 0 : index
    %c0_73 = arith.constant 0 : index
    %152 = vector.load %arg6[%c8, %c0_72, %c0_73] : memref<10x112x128xbf16, #tpu.memory_space<vmem>>, vector<1x112x128xbf16>
    %153 = vector.shape_cast %152 : vector<1x112x128xbf16> to vector<112x128xbf16>
    %cst_74 = arith.constant dense<0.000000e+00> : vector<16x128xf32>
    %154 = tpu.matmul %151, %153, %cst_74 {dimension_numbers = #tpu.dot_dimension_numbers<[1], [0], [0], [1], [0, 0, 1, 1], [], []>} : vector<16x112xbf16>, vector<112x128xbf16>, vector<16x128xf32> -> vector<16x128xf32>
    %155 = arith.addf %149, %154 : vector<16x128xf32>
    %156 = vector.extract_strided_slice %102 {offsets = [6, 0, 0], sizes = [1, 16, 112], strides = [1, 1, 1]} : vector<7x16x112xbf16> to vector<1x16x112xbf16>
    %157 = vector.shape_cast %156 : vector<1x16x112xbf16> to vector<16x112xbf16>
    %c9 = arith.constant 9 : index
    %c0_75 = arith.constant 0 : index
    %c0_76 = arith.constant 0 : index
    %158 = vector.load %arg6[%c9, %c0_75, %c0_76] : memref<10x112x128xbf16, #tpu.memory_space<vmem>>, vector<1x112x128xbf16>
    %159 = vector.shape_cast %158 : vector<1x112x128xbf16> to vector<112x128xbf16>
    %cst_77 = arith.constant dense<0.000000e+00> : vector<16x128xf32>
    %160 = tpu.matmul %157, %159, %cst_77 {dimension_numbers = #tpu.dot_dimension_numbers<[1], [0], [0], [1], [0, 0, 1, 1], [], []>} : vector<16x112xbf16>, vector<112x128xbf16>, vector<16x128xf32> -> vector<16x128xf32>
    %161 = arith.addf %155, %160 : vector<16x128xf32>
    %c0_78 = arith.constant 0 : index
    %c0_79 = arith.constant 0 : index
    %162 = vector.load %arg7[%c0_78, %c0_79] : memref<1x128xf32, #tpu.memory_space<vmem>>, vector<1x128xf32>
    %163 = vector.broadcast %162 : vector<1x128xf32> to vector<16x128xf32>
    %164 = arith.addf %161, %163 : vector<16x128xf32>
    %cst_80 = arith.constant 0.000000e+00 : f32
    %165 = vector.broadcast %cst_80 : f32 to vector<16x128xf32>
    %166 = arith.maximumf %164, %165 : vector<16x128xf32>
    %c0_81 = arith.constant 0 : index
    %c0_82 = arith.constant 0 : index
    %167 = vector.load %arg8[%c0_81, %c0_82] : memref<16x128xf32, #tpu.memory_space<vmem>>, vector<16x128xf32>
    tpu.vector_store %arg8[%c0_81, %c0_82], %166 {strides = array<i32>} : memref<16x128xf32, #tpu.memory_space<vmem>>, vector<16x128xf32>,
    return
  }
  func.func @transform_0(%arg0: i32) -> (i32, i32, i32) {
    %c0_i32 = arith.constant 0 : i32
    %c0_i32_0 = arith.constant 0 : i32
    %c0_i32_1 = arith.constant 0 : i32
    return %c0_i32, %arg0, %c0_i32_0 : i32, i32, i32
  }
  func.func @transform_1(%arg0: i32) -> (i32, i32, i32) {
    %c0_i32 = arith.constant 0 : i32
    %c0_i32_0 = arith.constant 0 : i32
    %c0_i32_1 = arith.constant 0 : i32
    %c0_i32_2 = arith.constant 0 : i32
    return %c0_i32, %c0_i32_0, %c0_i32_1 : i32, i32, i32
  }
  func.func @transform_2(%arg0: i32) -> (i32, i32) {
    %c0_i32 = arith.constant 0 : i32
    %c0_i32_0 = arith.constant 0 : i32
    %c0_i32_1 = arith.constant 0 : i32
    return %c0_i32, %c0_i32_0 : i32, i32
  }
  func.func @transform_3(%arg0: i32) -> (i32, i32, i32) {
    %c0_i32 = arith.constant 0 : i32
    %c0_i32_0 = arith.constant 0 : i32
    %c0_i32_1 = arith.constant 0 : i32
    %c0_i32_2 = arith.constant 0 : i32
    return %c0_i32, %c0_i32_0, %c0_i32_1 : i32, i32, i32
  }
  func.func @transform_4(%arg0: i32) -> (i32, i32) {
    %c0_i32 = arith.constant 0 : i32
    %c0_i32_0 = arith.constant 0 : i32
    %c0_i32_1 = arith.constant 0 : i32
    return %c0_i32, %c0_i32_0 : i32, i32
  }
  func.func @transform_5(%arg0: i32) -> (i32, i32, i32) {
    %c0_i32 = arith.constant 0 : i32
    %c0_i32_0 = arith.constant 0 : i32
    %c0_i32_1 = arith.constant 0 : i32
    %c0_i32_2 = arith.constant 0 : i32
    return %c0_i32, %c0_i32_0, %c0_i32_1 : i32, i32, i32
  }
  func.func @transform_6(%arg0: i32) -> (i32, i32) {
    %c0_i32 = arith.constant 0 : i32
    %c0_i32_0 = arith.constant 0 : i32
    %c0_i32_1 = arith.constant 0 : i32
    return %c0_i32, %c0_i32_0 : i32, i32
  }
  func.func @transform_7(%arg0: i32) -> (i32, i32) {
    %c0_i32 = arith.constant 0 : i32
    %c0_i32_0 = arith.constant 0 : i32
    return %arg0, %c0_i32 : i32, i32
  }
}

</mosaic_0001>

<bundles_post_ra>
// kernel: forward.1
= control target key start
LH: loop header
LB: loop body
LE: loop exit
PB: predicated region body
PF: predicated region fallthrough
CT: control target
= control target key end

     0   :  { %s6388_s24 = smov 0   ;;  %s6390_s25 = smov 0   ;;  %s8026_s0 = inlined_call_operand.vmem [shape: bf16[37,32,111], index: 0, kind: input, shape index: {}]   ;;  %s8027_s1 = inlined_call_operand.vmem [shape: bf16[5,111,136], index: 1, kind: input, shape index: {}]   ;;  %s8028_s2 = inlined_call_operand.vmem [shape: f32[1,136], index: 2, kind: input, shape index: {}]   ;;  %s8029_s3 = inlined_call_operand.vmem [shape: bf16[5,136,112], index: 3, kind: input, shape index: {}]   ;;  %s8030_s4 = inlined_call_operand.vmem [shape: f32[1,112], index: 4, kind: input, shape index: {}]   ;;  %s8031_s5 = inlined_call_operand.vmem [shape: bf16[10,112,128], index: 5, kind: input, shape index: {}]   ;;  %s8032_s6 = inlined_call_operand.vmem [shape: f32[1,128], index: 6, kind: input, shape index: {}]   ;;  %s8033_s7 = inlined_call_operand.vmem [shape: f32[32,128], index: 7, kind: output, shape index: {}]  }
   0x1   :  { %s6392_s26 = smov 0  }
   0x2 LB: > { %s4869_s27 = sadd.s32 4294967295, %s6342_s26   ;;  %s6405_s28 = sadd.s32 1, %s6342_s26   ;;  %s6342_s26 = sphi %s6392_s26, %s8045_s26   ;;  %s6338_s25 = sphi %s6390_s25, %s8044_s25   ;;  %s6334_s24 = sphi %s6388_s24, %s8043_s24  }
   0x3   : > { %s21_s29 = ssub.s32 %s6342_s26, %s6405_s28  ;;  %s24_s30 = sadd.s32 1, %s6338_s25 }
   0x4   : > { %p22_p0 = scmp.eq.s32.totalorder %s21_s29, 0  ;;  %p31_p1 = scmp.ne.s32.totalorder %s6338_s25, %s6334_s24 }
   0x5   : > { %p32_p2 = scmp.eq.s32.totalorder %s6342_s26, 0  ;;  %p4872_p4 = scmp.ge.s32.totalorder %s6342_s26, 2 }
   0x6   : > { %s6414_s8 = scalar_select %p22_p0, %s6338_s25, %s24_s30  }
   0x7   : > { %p33_p3 = por %p32_p2, %p31_p1  ;;  %227 = sbr.rel (%p4872_p4) target bundleno = 37 (0x25), region = 40 }
   0xe   : > { %230 = sbr.rel (!%p33_p3) target bundleno = 37 (0x25), region = 44  ;;  %s232_s9 = sand.u32 (%p33_p3), 1, %s6338_s25  }
   0xf   : > { %s5484_s10 = sshll.u32 (%p33_p3), %s6342_s26, 3  ;;  %s6031_s11 = smul.u32 (%p33_p3), 296, %s232_s9 }
  0x10   : > { %s6422_s14 = scalar_lea.vmem (%p33_p3), %s8026_s0, %s5484_s10 }
  0x11   : > { %v253_v0 = vld [vmem:[%s6422_s14] sm:$0xff] (%p33_p3)   ;;  %v257_v1 = vld [vmem:[%s6422_s14 + $0x10] sm:$0xff] (%p33_p3)   ;;  %s6430_s15 = scalar_lea.vmem (%p33_p3), [#allocation2], %s6031_s11 }
  0x12   : > { %v261_v2 = vld [vmem:[%s6422_s14 + $0x20] sm:$0xff] (%p33_p3)   ;;  %v265_v3 = vld [vmem:[%s6422_s14 + $0x30] sm:$0xff] (%p33_p3)   ;;  %254 = vst [vmem:[%s6430_s15] sm:$0xff] (%p33_p3), %v253_v0   ;;  %258 = vst [vmem:[%s6430_s15 + $0x8] sm:$0xff] (%p33_p3), %v257_v1  }
  0x13   : > { %v269_v4 = vld [vmem:[%s6422_s14 + $0x40] sm:$0xff] (%p33_p3)   ;;  %v273_v5 = vld [vmem:[%s6422_s14 + $0x50] sm:$0xff] (%p33_p3)   ;;  %262 = vst [vmem:[%s6430_s15 + $0x10] sm:$0xff] (%p33_p3), %v261_v2   ;;  %266 = vst [vmem:[%s6430_s15 + $0x18] sm:$0xff] (%p33_p3), %v265_v3  }
  0x14   : > { %270 = vst [vmem:[%s6430_s15 + $0x20] sm:$0xff] (%p33_p3), %v269_v4   ;;  %274 = vst [vmem:[%s6430_s15 + $0x28] sm:$0xff] (%p33_p3), %v273_v5   ;;  %v277_v6 = vld [vmem:[%s6422_s14 + $0x60] sm:$0xff] (%p33_p3)   ;;  %v281_v7 = vld [vmem:[%s6422_s14 + $0x70] sm:$0xff] (%p33_p3)  }
  0x15   : > { %v285_v8 = vld [vmem:[%s6422_s14 + $0x80] sm:$0xff]   ;;  %278 = vst [vmem:[%s6430_s15 + $0x30] sm:$0xff] %v277_v6   ;;  %282 = vst [vmem:[%s6430_s15 + $0x38] sm:$0xff] %v281_v7   ;;  %v289_v9 = vld [vmem:[%s6422_s14 + $0x90] sm:$0xff]  }
  0x16   : > { %286 = vst [vmem:[%s6430_s15 + $0x40] sm:$0xff] %v285_v8   ;;  %v293_v10 = vld [vmem:[%s6422_s14 + $0xa0] sm:$0xff]   ;;  %v297_v11 = vld [vmem:[%s6422_s14 + $0xb0] sm:$0xff]   ;;  %290 = vst [vmem:[%s6430_s15 + $0x48] sm:$0xff] %v289_v9  }
  0x17   : > { %294 = vst [vmem:[%s6430_s15 + $0x50] sm:$0xff] %v293_v10   ;;  %298 = vst [vmem:[%s6430_s15 + $0x58] sm:$0xff] %v297_v11   ;;  %v301_v12 = vld [vmem:[%s6422_s14 + $0xc0] sm:$0xff]   ;;  %v305_v13 = vld [vmem:[%s6422_s14 + $0xd0] sm:$0xff]  }
  0x18   : > { %v309_v14 = vld [vmem:[%s6422_s14 + $0xe0] sm:$0xff]   ;;  %302 = vst [vmem:[%s6430_s15 + $0x60] sm:$0xff] %v301_v12   ;;  %306 = vst [vmem:[%s6430_s15 + $0x68] sm:$0xff] %v305_v13   ;;  %v313_v15 = vld [vmem:[%s6422_s14 + $0xf0] sm:$0xff]  }
  0x19   : > { %310 = vst [vmem:[%s6430_s15 + $0x70] sm:$0xff] %v309_v14   ;;  %v317_v16 = vld [vmem:[%s6422_s14 + $0x100] sm:$0xff]   ;;  %v321_v17 = vld [vmem:[%s6422_s14 + $0x110] sm:$0xff]   ;;  %314 = vst [vmem:[%s6430_s15 + $0x78] sm:$0xff] %v313_v15  }
  0x1a   : > { %318 = vst [vmem:[%s6430_s15 + $0x80] sm:$0xff] %v317_v16   ;;  %322 = vst [vmem:[%s6430_s15 + $0x88] sm:$0xff] %v321_v17   ;;  %v325_v18 = vld [vmem:[%s6422_s14 + $0x120] sm:$0xff]   ;;  %v329_v19 = vld [vmem:[%s6422_s14 + $0x130] sm:$0xff]  }
  0x1b   : > { %v333_v20 = vld [vmem:[%s6422_s14 + $0x140] sm:$0xff]   ;;  %326 = vst [vmem:[%s6430_s15 + $0x90] sm:$0xff] %v325_v18   ;;  %330 = vst [vmem:[%s6430_s15 + $0x98] sm:$0xff] %v329_v19   ;;  %v337_v21 = vld [vmem:[%s6422_s14 + $0x150] sm:$0xff]  }
  0x1c   : > { %334 = vst [vmem:[%s6430_s15 + $0xa0] sm:$0xff] %v333_v20   ;;  %v341_v22 = vld [vmem:[%s6422_s14 + $0x160] sm:$0xff]   ;;  %v345_v23 = vld [vmem:[%s6422_s14 + $0x170] sm:$0xff]   ;;  %338 = vst [vmem:[%s6430_s15 + $0xa8] sm:$0xff] %v337_v21  }
  0x1d   : > { %342 = vst [vmem:[%s6430_s15 + $0xb0] sm:$0xff] %v341_v22   ;;  %346 = vst [vmem:[%s6430_s15 + $0xb8] sm:$0xff] %v345_v23   ;;  %v349_v24 = vld [vmem:[%s6422_s14 + $0x180] sm:$0xff]   ;;  %v353_v25 = vld [vmem:[%s6422_s14 + $0x190] sm:$0xff]  }
  0x1e   : > { %v357_v26 = vld [vmem:[%s6422_s14 + $0x1a0] sm:$0xff]   ;;  %350 = vst [vmem:[%s6430_s15 + $0xc0] sm:$0xff] %v349_v24   ;;  %354 = vst [vmem:[%s6430_s15 + $0xc8] sm:$0xff] %v353_v25   ;;  %v361_v27 = vld [vmem:[%s6422_s14 + $0x1b0] sm:$0xff]  }
  0x1f   : > { %358 = vst [vmem:[%s6430_s15 + $0xd0] sm:$0xff] %v357_v26   ;;  %v365_v28 = vld [vmem:[%s6422_s14 + $0x1c0] sm:$0xff]   ;;  %v369_v29 = vld [vmem:[%s6422_s14 + $0x1d0] sm:$0xff]   ;;  %362 = vst [vmem:[%s6430_s15 + $0xd8] sm:$0xff] %v361_v27  }
  0x20   : > { %366 = vst [vmem:[%s6430_s15 + $0xe0] sm:$0xff] %v365_v28   ;;  %370 = vst [vmem:[%s6430_s15 + $0xe8] sm:$0xff] %v369_v29   ;;  %v373_v30 = vld [vmem:[%s6422_s14 + $0x1e0] sm:$0xff]   ;;  %v377_v31 = vld [vmem:[%s6422_s14 + $0x1f0] sm:$0xff]  }
  0x21   : > { %v381_v32 = vld [vmem:[%s6422_s14 + $0x200] sm:$0xff]   ;;  %374 = vst [vmem:[%s6430_s15 + $0xf0] sm:$0xff] %v373_v30   ;;  %378 = vst [vmem:[%s6430_s15 + $0xf8] sm:$0xff] %v377_v31   ;;  %v385_v33 = vld [vmem:[%s6422_s14 + $0x210] sm:$0xff]  }
  0x22   : > { %382 = vst [vmem:[%s6430_s15 + $0x100] sm:$0xff] %v381_v32   ;;  %v389_v34 = vld [vmem:[%s6422_s14 + $0x220] sm:$0xff]   ;;  %v393_v35 = vld [vmem:[%s6422_s14 + $0x230] sm:$0xff]   ;;  %386 = vst [vmem:[%s6430_s15 + $0x108] sm:$0xff] %v385_v33  }
  0x23   : > { %390 = vst [vmem:[%s6430_s15 + $0x110] sm:$0xff] %v389_v34   ;;  %394 = vst [vmem:[%s6430_s15 + $0x118] sm:$0xff] %v393_v35   ;;  %v397_v36 = vld [vmem:[%s6422_s14 + $0x240] sm:$0xff]  }
  0x24   : > { %398 = vst [vmem:[%s6430_s15 + $0x120] sm:$0xff] %v397_v36  }
  0x25 PF: > { %p4875_p5 = scmp.ge.s32.totalorder %s6342_s26, 1  ;;  %p570_p6 = scmp.lt.s32.totalorder %s6342_s26, 3 }
  0x27   : > { %p571_p7 = pnand %p4875_p5, %p570_p6 }
  0x29   : > { %574 = sbr.rel (%p571_p7) target bundleno = 1764 (0x6e4), region = 85 }
  0x30   : > { %v6061_v37 = vld [vmem:[%s8027_s1 + $0x74] ss:$8 sps:$4 sm:$0xff]   ;;  %v6063_v38 = vld [vmem:[%s8027_s1 + $0x70] ss:$8 sps:$4 sm:$0xff]   ;;  %v6064_v39 = vld [vmem:[%s8027_s1 + $0x84] ss:$8 sps:$4 sm:$0xff]  }
  0x31   : > { %934 = vmatprep.subr.bf16.mxu0 %v6061_v37  ;;  %v8034_v40 = vmov 0   ;;  %v6066_v41 = vld [vmem:[%s8027_s1 + $0x80] ss:$8 sps:$4 sm:$0xff]   ;;  %5745 = vmatprep.subr.bf16.mxu1 %v6061_v37  ;;  %v6067_v42 = vld [vmem:[%s8027_s1 + $0x94] ss:$8 sps:$4 sm:$0xff]   ;;  %s577_s9 = sand.u32 1, %s6334_s24  }
  0x32   : > { %966 = vmatprep.mubr.bf16.mxu0 %v8034_v40  ;;  %935 = vmatpush1.bf16.msra.mxu0 %v6063_v38  ;;  %s6032_s10 = smul.u32 296, %s577_s9  ;;  %v6069_v43 = vld [vmem:[%s8027_s1 + $0x90] ss:$8 sps:$4 sm:$0xff]   ;;  %v6070_v44 = vld [vmem:[%s8027_s1 + $0xa4] ss:$8 sps:$4 sm:$0xff]   ;;  %vm924_vm0 = vcmask 1046528  }
  0x33   : > { %936 = vmatprep.subr.bf16.mxu0 %v6064_v39  ;;  %5752 = vmatpush1.bf16.msra.mxu1 %v6063_v38  ;;  %v6072_v45 = vld [vmem:[%s8027_s1 + $0xa0] ss:$8 sps:$4 sm:$0xff]   ;;  %v6073_v46 = vld [vmem:[%s8027_s1 + $0xb4] ss:$8 sps:$4 sm:$0xff]   ;;  %vm925_vm1 = vcmask 1047552   ;;  %v6345_v47 = vmov 65535  }
  0x34   : > { %5746 = vmatprep.subr.bf16.mxu1 %v6064_v39  ;;  %1056 = vmatprep.mubr.bf16.mxu1 %v8034_v40  ;;  %s6526_s15 = scalar_lea.vmem [#allocation2], %s6032_s10  ;;  %v926_v48 = vsel %vm924_vm0, 4294967295, %v6345_v47  ;;  %v6075_v49 = vld [vmem:[%s8027_s1 + $0xb0] ss:$8 sps:$4 sm:$0xff]   ;;  %v6076_v50 = vld [vmem:[%s8027_s1 + $0xc4] ss:$8 sps:$4 sm:$0xff]  }
  0x35   : > { %v6079_v51 = vld [vmem:[%s8027_s1 + $0xd4] ss:$8 sps:$4 sm:$0xff]   ;;  %v6543_v52 = vsel %vm925_vm1, %v926_v48, 0  ;;  %v6078_v53 = vld [vmem:[%s8027_s1 + $0xc0] ss:$8 sps:$4 sm:$0xff]   ;;  %vm872_vm2 = vcmask 908288  }
  0x36   : > { %937 = vmatpush1.bf16.msra.mxu0 %v6066_v41  ;;  %v6081_v54 = vld [vmem:[%s8027_s1 + $0xd0] ss:$8 sps:$4 sm:$0xff]   ;;  %v932_v55 = vand.u32 %v6079_v51, %v6543_v52  ;;  %v6085_v57 = vld [vmem:[%s8027_s1 + $0x4] ss:$8 sps:$4 sm:$0xff]   ;;  %v6083_v59 = vld [vmem:[%s8027_s1] ss:$8 sps:$4 sm:$0xff]  }
  0x37   : > { %938 = vmatprep.subr.bf16.mxu0 %v6067_v42  ;;  %5753 = vmatpush1.bf16.msra.mxu1 %v6066_v41  ;;  %v929_v56 = vand.u32 %v6081_v54, %v6543_v52  ;;  %v6082_v58 = vld [vmem:[%s6526_s15 + $0x8] sm:$0xff]   ;;  %v6086_v63 = vld [vmem:[%s6526_s15 + $0x18] sm:$0xff]   ;;  %v6112_v19 = vld [vmem:[%s6526_s15] sm:$0xff]   ;;  %vm2944_vm3 = vcmask 1043456   ;;  %vm2922_vm4 = vcmask 64512   ;;  %vm6347_vm5 = vmmov 0  }
  0x38   : > { %5747 = vmatprep.subr.bf16.mxu1 %v6067_v42  ;;  %v6089_v60 = vld [vmem:[%s8027_s1 + $0x14] ss:$8 sps:$4 sm:$0xff]   ;;  %v6087_v61 = vld [vmem:[%s8027_s1 + $0x10] ss:$8 sps:$4 sm:$0xff]   ;;  %v6093_v62 = vld [vmem:[%s8027_s1 + $0x24] ss:$8 sps:$4 sm:$0xff]  }
  0x39   : > { %v6091_v0 = vld [vmem:[%s8027_s1 + $0x20] ss:$8 sps:$4 sm:$0xff]   ;;  %v6097_v1 = vld [vmem:[%s8027_s1 + $0x34] ss:$8 sps:$4 sm:$0xff]   ;;  %v6095_v2 = vld [vmem:[%s8027_s1 + $0x30] ss:$8 sps:$4 sm:$0xff]  }
  0x3a   : > { %939 = vmatpush1.bf16.msra.mxu0 %v6069_v43  ;;  %v6090_v3 = vld [vmem:[%s6526_s15 + $0x28] sm:$0xff]   ;;  %v6606_v10 = vld [vmem:[%s6526_s15 + $0x38] sm:$0xff]   ;;  %v6662_v24 = vld [vmem:[%s6526_s15 + $0x10] sm:$0xff]   ;;  %vm3848_vm6 = vcmask 916480  }
  0x3b   : > { %940 = vmatprep.subr.bf16.mxu0 %v6070_v44  ;;  %5754 = vmatpush1.bf16.msra.mxu1 %v6069_v43  ;;  %v6102_v4 = vld [vmem:[%s8027_s1 + $0x44] ss:$8 sps:$4 sm:$0xff]   ;;  %v6100_v5 = vld [vmem:[%s8027_s1 + $0x40] ss:$8 sps:$4 sm:$0xff]   ;;  %v6106_v6 = vld [vmem:[%s8027_s1 + $0x54] ss:$8 sps:$4 sm:$0xff]  }
  0x3c   : > { %5748 = vmatprep.subr.bf16.mxu1 %v6070_v44  ;;  %v6110_v7 = vld [vmem:[%s8027_s1 + $0x64] ss:$8 sps:$4 sm:$0xff]   ;;  %v6104_v8 = vld [vmem:[%s8027_s1 + $0x50] ss:$8 sps:$4 sm:$0xff]   ;;  %v6108_v9 = vld [vmem:[%s8027_s1 + $0x60] ss:$8 sps:$4 sm:$0xff]  }
  0x3d   : > { %v1345_v11 = vand.u32 %v6110_v7, %v6543_v52  ;;  %v6115_v12 = vld [vmem:[%s8027_s1 + $0xe4] ss:$8 sps:$4 sm:$0xff]   ;;  %v1342_v13 = vand.u32 %v6108_v9, %v6543_v52  ;;  %v6113_v20 = vld [vmem:[%s8027_s1 + $0xe0] ss:$8 sps:$4 sm:$0xff]   ;;  %v6120_v21 = vld [vmem:[%s8027_s1 + $0xf4] ss:$8 sps:$4 sm:$0xff]  }
  0x3e   : > { %941 = vmatpush1.bf16.msra.mxu0 %v6072_v45  ;;  %v6617_v14 = vld [vmem:[%s6526_s15 + $0x48] sm:$0xff]   ;;  %v6623_v15 = vld [vmem:[%s6526_s15 + $0x58] sm:$0xff]   ;;  %v6680_v29 = vld [vmem:[%s6526_s15 + $0x20] sm:$0xff]  }
  0x3f   : > { %942 = vmatprep.subr.bf16.mxu0 %v6073_v46  ;;  %5755 = vmatpush1.bf16.msra.mxu1 %v6072_v45  ;;  %v6629_v16 = vld [vmem:[%s6526_s15 + $0x68] sm:$0xff]   ;;  %v6635_v17 = vld [vmem:[%s6526_s15 + $0x78] sm:$0xff]   ;;  %v6701_v35 = vld [vmem:[%s6526_s15 + $0x30] sm:$0xff]  }
  0x40   : > { %5749 = vmatprep.subr.bf16.mxu1 %v6073_v46  ;;  %v6641_v18 = vld [vmem:[%s6526_s15 + $0x88] sm:$0xff]   ;;  %v6712_v39 = vld [vmem:[%s6526_s15 + $0x40] sm:$0xff]   ;;  %v6718_v41 = vld [vmem:[%s6526_s15 + $0x50] sm:$0xff]  }
  0x41   : > { %v6118_v22 = vld [vmem:[%s8027_s1 + $0xf0] ss:$8 sps:$4 sm:$0xff]   ;;  %v6125_v23 = vld [vmem:[%s8027_s1 + $0x104] ss:$8 sps:$4 sm:$0xff]   ;;  %v6123_v25 = vld [vmem:[%s8027_s1 + $0x100] ss:$8 sps:$4 sm:$0xff]  }
  0x42   : > { %943 = vmatpush1.bf16.msra.mxu0 %v6075_v49  ;;  %v6131_v26 = vld [vmem:[%s8027_s1 + $0x114] ss:$8 sps:$4 sm:$0xff]   ;;  %v6129_v27 = vld [vmem:[%s8027_s1 + $0x110] ss:$8 sps:$4 sm:$0xff]   ;;  %v6136_v28 = vld [vmem:[%s8027_s1 + $0x124] ss:$8 sps:$4 sm:$0xff]  }
  0x43   : > { %944 = vmatprep.subr.bf16.mxu0 %v6076_v50  ;;  %5756 = vmatpush1.bf16.msra.mxu1 %v6075_v49  ;;  %v6134_v30 = vld [vmem:[%s8027_s1 + $0x120] ss:$8 sps:$4 sm:$0xff]   ;;  %v6142_v31 = vld [vmem:[%s8027_s1 + $0x134] ss:$8 sps:$4 sm:$0xff]   ;;  %v6147_v32 = vld [vmem:[%s8027_s1 + $0x144] ss:$8 sps:$4 sm:$0xff]  }
  0x44   : > { %5750 = vmatprep.subr.bf16.mxu1 %v6076_v50  ;;  %v6140_v33 = vld [vmem:[%s8027_s1 + $0x130] ss:$8 sps:$4 sm:$0xff]   ;;  %v6145_v34 = vld [vmem:[%s8027_s1 + $0x140] ss:$8 sps:$4 sm:$0xff]   ;;  %v1645_v36 = vand.u32 %v6147_v32, %v6543_v52  ;;  %v6152_v37 = vld [vmem:[%s8027_s1 + $0x154] ss:$8 sps:$4 sm:$0xff]  }
  0x45   : > { %v1642_v38 = vand.u32 %v6145_v34, %v6543_v52  ;;  %v6724_v42 = vld [vmem:[%s6526_s15 + $0x60] sm:$0xff]   ;;  %v6730_v43 = vld [vmem:[%s6526_s15 + $0x70] sm:$0xff]   ;;  %v6870_v7 = vld [vmem:[%s6526_s15 + $0xa8] sm:$0xff]  }
  0x46   : > { %945 = vmatpush1.bf16.msra.mxu0 %v6078_v53  ;;  %v6736_v44 = vld [vmem:[%s6526_s15 + $0x80] sm:$0xff]   ;;  %v6742_v45 = vld [vmem:[%s6526_s15 + $0x90] sm:$0xff]   ;;  %v6888_v9 = vld [vmem:[%s6526_s15 + $0xc8] sm:$0xff]  }
  0x47   : > { %946 = vmatprep.subr.bf16.mxu0 %v932_v55  ;;  %5757 = vmatpush1.bf16.msra.mxu1 %v6078_v53  ;;  %v6748_v46 = vld [vmem:[%s6526_s15 + $0xa0] sm:$0xff]   ;;  %v6754_v47 = vld [vmem:[%s6526_s15 + $0xb0] sm:$0xff]  }
  0x48   : > { %5751 = vmatprep.subr.bf16.mxu1 %v932_v55  ;;  %v6760_v48 = vld [vmem:[%s6526_s15 + $0xc0] sm:$0xff]   ;;  %v6766_v49 = vld [vmem:[%s6526_s15 + $0xd0] sm:$0xff]  }
  0x49   : > { %v6772_v50 = vld [vmem:[%s6526_s15 + $0xe0] sm:$0xff]   ;;  %v6778_v51 = vld [vmem:[%s6526_s15 + $0xf0] sm:$0xff]  }
  0x4a   : > { %947 = vmatpush1.bf16.msra.mxu0 %v929_v56  ;;  %v6784_v53 = vld [vmem:[%s6526_s15 + $0x100] sm:$0xff]   ;;  %v6150_v54 = vld [vmem:[%s8027_s1 + $0x150] ss:$8 sps:$4 sm:$0xff]  }
  0x4b   : > { %1347 = vmatprep.subr.bf16.mxu0 %v6085_v57  ;;  %5758 = vmatpush1.bf16.msra.mxu1 %v929_v56  ;;  %v6155_v55 = vld [vmem:[%s8027_s1 + $0x164] ss:$8 sps:$4 sm:$0xff]   ;;  %v6153_v56 = vld [vmem:[%s8027_s1 + $0x160] ss:$8 sps:$4 sm:$0xff]   ;;  %v6158_v57 = vld [vmem:[%s8027_s1 + $0x174] ss:$8 sps:$4 sm:$0xff]  }
  0x4c   : > { %2948 = vmatprep.subr.bf16.mxu1 %v8034_v40  ;;  %v6186_v32 = vld [vmem:[%s8027_s1 + $0x200] ss:$8 sps:$4 sm:$0xff]   ;;  %v6199_v34 = vld [vmem:[%s8027_s1 + $0x224] ss:$8 sps:$4 sm:$0xff]  }
  0x4d   : > { %4923 = vmatmul.mubr.msk.bf16.vlgmr.msra.gmra.mrb[0].mxu0 %vm872_vm2, %v6082_v58  ;;  %v6156_v58 = vld [vmem:[%s8027_s1 + $0x170] ss:$8 sps:$4 sm:$0xff]  }
  0x4e   : > { %1348 = vmatpush1.bf16.msra.mxu0 %v6083_v59  ;;  %976 = vmatprep.mubr.bf16.mxu0 %v8034_v40  ;;  %v6161_v59 = vld [vmem:[%s8027_s1 + $0x184] ss:$8 sps:$4 sm:$0xff]  }
  0x4f   : > { %1349 = vmatprep.subr.bf16.mxu0 %v6089_v60  ;;  %v6159_v60 = vld [vmem:[%s8027_s1 + $0x180] ss:$8 sps:$4 sm:$0xff]  }
  0x52   : > { %1350 = vmatpush1.bf16.msra.mxu0 %v6087_v61  ;;  %v6164_v61 = vld [vmem:[%s8027_s1 + $0x194] ss:$8 sps:$4 sm:$0xff]  }
  0x53   : > { %1351 = vmatprep.subr.bf16.mxu0 %v6093_v62  ;;  %v6162_v62 = vld [vmem:[%s8027_s1 + $0x190] ss:$8 sps:$4 sm:$0xff]  }
  0x55   : > { %4924 = vmatmul.mubr.msk.bf16.gmra.mrb[4].mxu0 %vm872_vm2, %v6086_v63  ;;  %v6167_v63 = vld [vmem:[%s8027_s1 + $0x1a4] ss:$8 sps:$4 sm:$0xff]  }
  0x56   : > { %986 = vmatprep.mubr.bf16.mxu0 %v8034_v40  ;;  %1352 = vmatpush1.bf16.msra.mxu0 %v6091_v0  ;;  %v6170_v0 = vld [vmem:[%s8027_s1 + $0x1b4] ss:$8 sps:$4 sm:$0xff]  }
  0x57   : > { %1353 = vmatprep.subr.bf16.mxu0 %v6097_v1  ;;  %v6165_v1 = vld [vmem:[%s8027_s1 + $0x1a0] ss:$8 sps:$4 sm:$0xff]  }
  0x5a   : > { %1354 = vmatpush1.bf16.msra.mxu0 %v6095_v2  ;;  %v6168_v2 = vld [vmem:[%s8027_s1 + $0x1b0] ss:$8 sps:$4 sm:$0xff]  }
  0x5b   : > { %1355 = vmatprep.subr.bf16.mxu0 %v6102_v4  ;;  %v2010_v4 = vand.u32 %v6168_v2, %v6543_v52  ;;  %v2656_v2 = vlaneseq }
  0x5d   : > { %4925 = vmatmul.mubr.msk.bf16.gmra.mrb[8].mxu0 %vm872_vm2, %v6090_v3  ;;  %v2013_v3 = vand.u32 %v6170_v0, %v6543_v52 }
  0x5e   : > { %996 = vmatprep.mubr.bf16.mxu0 %v8034_v40  ;;  %1356 = vmatpush1.bf16.msra.mxu0 %v6100_v5  ;;  %v6174_v5 = vld [vmem:[%s8027_s1 + $0x1c4] ss:$8 sps:$4 sm:$0xff]  }
  0x5f   : > { %1357 = vmatprep.subr.bf16.mxu0 %v6106_v6  ;;  %v6861_v6 = vld [vmem:[%s6526_s15 + $0x98] sm:$0xff]  }
  0x60   : > { %4932 = vmatmul.mubr.msk.bf16.vlgmr.msra.gmra.mrb[0].mxu1 %vm872_vm2, %v6861_v6 }
  0x61   : > { %1066 = vmatprep.mubr.bf16.mxu1 %v8034_v40 }
  0x62   : > { %1358 = vmatpush1.bf16.msra.mxu0 %v6104_v8  ;;  %v6879_v8 = vld [vmem:[%s6526_s15 + $0xb8] sm:$0xff]  }
  0x63   : > { %1359 = vmatprep.subr.bf16.mxu0 %v1345_v11  ;;  %v6897_v11 = vld [vmem:[%s6526_s15 + $0xd8] sm:$0xff]  }
  0x65   : > { %4926 = vmatmul.mubr.msk.bf16.gmra.mrb[12].mxu0 %vm872_vm2, %v6606_v10 }
  0x66   : > { %1006 = vmatprep.mubr.bf16.mxu0 %v8034_v40  ;;  %1360 = vmatpush1.bf16.msra.mxu0 %v1342_v13  ;;  %v6915_v13 = vld [vmem:[%s6526_s15 + $0xf8] sm:$0xff]  }
  0x67   : > { %1647 = vmatprep.subr.bf16.mxu0 %v6115_v12  ;;  %v6906_v12 = vld [vmem:[%s6526_s15 + $0xe8] sm:$0xff]  }
  0x68   : > { %4933 = vmatmul.mubr.msk.bf16.gmra.mrb[4].mxu1 %vm872_vm2, %v6870_v7 }
  0x69   : > { %1076 = vmatprep.mubr.bf16.mxu1 %v8034_v40 }
  0x6d   : > { %4927 = vmatmul.mubr.msk.bf16.gmra.mrb[16].mxu0 %vm872_vm2, %v6617_v14 }
  0x6e   : > { %1016 = vmatprep.mubr.bf16.mxu0 %v8034_v40 }
  0x70   : > { %4934 = vmatmul.mubr.msk.bf16.gmra.mrb[8].mxu1 %vm872_vm2, %v6879_v8 }
  0x71   : > { %1086 = vmatprep.mubr.bf16.mxu1 %v8034_v40 }
  0x75   : > { %4928 = vmatmul.mubr.msk.bf16.gmra.mrb[20].mxu0 %vm872_vm2, %v6623_v15 }
  0x76   : > { %1026 = vmatprep.mubr.bf16.mxu0 %v8034_v40 }
  0x78   : > { %4935 = vmatmul.mubr.msk.bf16.gmra.mrb[12].mxu1 %vm872_vm2, %v6888_v9 }
  0x79   : > { %1096 = vmatprep.mubr.bf16.mxu1 %v8034_v40 }
  0x7d   : > { %4929 = vmatmul.mubr.msk.bf16.gmra.mrb[24].mxu0 %vm872_vm2, %v6629_v16 }
  0x7e   : > { %1036 = vmatprep.mubr.bf16.mxu0 %v8034_v40 }
  0x80   : > { %4936 = vmatmul.mubr.msk.bf16.gmra.mrb[16].mxu1 %vm872_vm2, %v6897_v11 }
  0x81   : > { %1106 = vmatprep.mubr.bf16.mxu1 %v8034_v40 }
  0x85   : > { %4930 = vmatmul.mubr.msk.bf16.gmra.mrb[28].mxu0 %vm872_vm2, %v6635_v17 }
  0x86   : > { %1046 = vmatprep.mubr.bf16.mxu0 %v8034_v40 }
  0x88   : > { %4937 = vmatmul.mubr.msk.bf16.gmra.mrb[20].mxu1 %vm872_vm2, %v6906_v12 }
  0x89   : > { %1116 = vmatprep.mubr.bf16.mxu1 %v8034_v40 }
  0x8d   : > { %4931 = vmatmul.mubr.msk.bf16.gmra.mrb[32].mxu0 %vm872_vm2, %v6641_v18 }
  0x8e   : > { %1379 = vmatprep.mubr.bf16.mxu0 %v8034_v40 }
  0x90   : > { %4938 = vmatmul.mubr.msk.bf16.gmra.mrb[24].mxu1 %vm872_vm2, %v6915_v13 }
  0x91   : > { %1126 = vmatprep.mubr.bf16.mxu1 %v8034_v40 }
  0x95   : > { %4971 = vmatmul.mubr.msk.bf16.vlgmr.msra.gmra.mrb[0].mxu0 %vm872_vm2, %v6112_v19  ;;  %v6924_v19 = vld [vmem:[%s6526_s15 + $0x108] sm:$0xff]  }
  0x96   : > { %1648 = vmatpush1.bf16.msra.mxu0 %v6113_v20  ;;  %1389 = vmatprep.mubr.bf16.mxu0 %v8034_v40  ;;  %v6929_v20 = vld [vmem:[%s6526_s15 + $0x110] sm:$0xff]  }
  0x97   : > { %1649 = vmatprep.subr.bf16.mxu0 %v6120_v21  ;;  %v6172_v21 = vld [vmem:[%s8027_s1 + $0x1c0] ss:$8 sps:$4 sm:$0xff]  }
  0x98   : > { %4939 = vmatmul.mubr.msk.bf16.gmra.mrb[28].mxu1 %vm872_vm2, %v6924_v19 }
  0x9a   : > { %1650 = vmatpush1.bf16.msra.mxu0 %v6118_v22  ;;  %v6177_v22 = vld [vmem:[%s8027_s1 + $0x1d4] ss:$8 sps:$4 sm:$0xff]  }
  0x9b   : > { %1651 = vmatprep.subr.bf16.mxu0 %v6125_v23  ;;  %v6318_v23 = vld [vmem:[%s6526_s15 + $0x18] sm:$0xff]  }
  0x9d   : > { %4972 = vmatmul.mubr.msk.bf16.gmra.mrb[4].mxu0 %vm872_vm2, %v6662_v24 }
  0x9e   : > { %1399 = vmatprep.mubr.bf16.mxu0 %v8034_v40  ;;  %1652 = vmatpush1.bf16.msra.mxu0 %v6123_v25  ;;  %v6180_v25 = vld [vmem:[%s8027_s1 + $0x1e4] ss:$8 sps:$4 sm:$0xff]  }
  0x9f   : > { %1653 = vmatprep.subr.bf16.mxu0 %v6131_v26  ;;  %v6178_v26 = vld [vmem:[%s8027_s1 + $0x1e0] ss:$8 sps:$4 sm:$0xff]  }
  0xa2   : > { %1654 = vmatpush1.bf16.msra.mxu0 %v6129_v27  ;;  %v6183_v27 = vld [vmem:[%s8027_s1 + $0x1f4] ss:$8 sps:$4 sm:$0xff]  }
  0xa3   : > { %1655 = vmatprep.subr.bf16.mxu0 %v6136_v28  ;;  %v6319_v28 = vld [vmem:[%s6526_s15 + $0x28] sm:$0xff]  }
  0xa5   : > { %4973 = vmatmul.mubr.msk.bf16.gmra.mrb[8].mxu0 %vm872_vm2, %v6680_v29 }
  0xa6   : > { %1409 = vmatprep.mubr.bf16.mxu0 %v8034_v40  ;;  %1656 = vmatpush1.bf16.msra.mxu0 %v6134_v30  ;;  %v6181_v30 = vld [vmem:[%s8027_s1 + $0x1f0] ss:$8 sps:$4 sm:$0xff]  }
  0xa7   : > { %1657 = vmatprep.subr.bf16.mxu0 %v6142_v31  ;;  %v6188_v31 = vld [vmem:[%s8027_s1 + $0x204] ss:$8 sps:$4 sm:$0xff]  }
  0xaa   : > { %1658 = vmatpush1.bf16.msra.mxu0 %v6140_v33  ;;  %v6194_v33 = vld [vmem:[%s8027_s1 + $0x214] ss:$8 sps:$4 sm:$0xff]  }
  0xab   : > { %1659 = vmatprep.subr.bf16.mxu0 %v1645_v36  ;;  %v6192_v36 = vld [vmem:[%s8027_s1 + $0x210] ss:$8 sps:$4 sm:$0xff]  }
  0xad   : > { %4974 = vmatmul.mubr.msk.bf16.gmra.mrb[12].mxu0 %vm872_vm2, %v6701_v35 }
  0xae   : > { %1419 = vmatprep.mubr.bf16.mxu0 %v8034_v40  ;;  %1660 = vmatpush1.bf16.msra.mxu0 %v1642_v38  ;;  %v2381_v38 = vand.u32 %v6199_v34, %v6543_v52 }
  0xaf   : > { %2015 = vmatprep.subr.bf16.mxu0 %v6152_v37  ;;  %v6197_v37 = vld [vmem:[%s8027_s1 + $0x220] ss:$8 sps:$4 sm:$0xff]  }
  0xb5   : > { %4975 = vmatmul.mubr.msk.bf16.gmra.mrb[16].mxu0 %vm872_vm2, %v6712_v39 }
  0xb6   : > { %1429 = vmatprep.mubr.bf16.mxu0 %v8034_v40 }
  0xbd   : > { %4976 = vmatmul.mubr.msk.bf16.gmra.mrb[20].mxu0 %vm872_vm2, %v6718_v41 }
  0xbe   : > { %1439 = vmatprep.mubr.bf16.mxu0 %v8034_v40 }
  0xc5   : > { %4977 = vmatmul.mubr.msk.bf16.gmra.mrb[24].mxu0 %vm872_vm2, %v6724_v42 }
  0xc6   : > { %1449 = vmatprep.mubr.bf16.mxu0 %v8034_v40 }
  0xcd   : > { %4978 = vmatmul.mubr.msk.bf16.gmra.mrb[28].mxu0 %vm872_vm2, %v6730_v43 }
  0xce   : > { %1459 = vmatprep.mubr.bf16.mxu0 %v8034_v40 }
  0xd5   : > { %4979 = vmatmul.mubr.msk.bf16.gmra.mrb[32].mxu0 %vm872_vm2, %v6736_v44 }
  0xd6   : > { %1469 = vmatprep.mubr.bf16.mxu0 %v8034_v40 }
  0xdd   : > { %4980 = vmatmul.mubr.msk.bf16.gmra.mrb[36].mxu0 %vm872_vm2, %v6742_v45 }
  0xde   : > { %1479 = vmatprep.mubr.bf16.mxu0 %v8034_v40 }
  0xe5   : > { %4981 = vmatmul.mubr.msk.bf16.gmra.mrb[40].mxu0 %vm872_vm2, %v6748_v46 }
  0xe6   : > { %1489 = vmatprep.mubr.bf16.mxu0 %v8034_v40 }
  0xed   : > { %4982 = vmatmul.mubr.msk.bf16.gmra.mrb[44].mxu0 %vm872_vm2, %v6754_v47 }
  0xee   : > { %1499 = vmatprep.mubr.bf16.mxu0 %v8034_v40 }
  0xf5   : > { %4983 = vmatmul.mubr.msk.bf16.gmra.mrb[48].mxu0 %vm872_vm2, %v6760_v48 }
  0xf6   : > { %1509 = vmatprep.mubr.bf16.mxu0 %v8034_v40 }
  0xfd   : > { %4984 = vmatmul.mubr.msk.bf16.gmra.mrb[52].mxu0 %vm872_vm2, %v6766_v49 }
  0xfe   : > { %1519 = vmatprep.mubr.bf16.mxu0 %v8034_v40 }
 0x105   : > { %4985 = vmatmul.mubr.msk.bf16.gmra.mrb[56].mxu0 %vm872_vm2, %v6772_v50 }
 0x106   : > { %1529 = vmatprep.mubr.bf16.mxu0 %v8034_v40 }
 0x10d   : > { %4986 = vmatmul.mubr.msk.bf16.gmra.mrb[60].mxu0 %vm872_vm2, %v6778_v51 }
 0x10e   : > { %1539 = vmatprep.mubr.bf16.mxu0 %v8034_v40 }
 0x115   : > { %4987 = vmatmul.mubr.msk.bf16.gmra.mrb[64].mxu0 %vm872_vm2, %v6784_v53 }
 0x116   : > { %1679 = vmatprep.mubr.bf16.mxu0 %v8034_v40 }
 0x11d   : > { %5017 = vmatmul.mubr.msk.bf16.vlgmr.msra.gmra.mrb[0].mxu0 %vm872_vm2, %v6662_v24  ;;  %v6175_v24 = vld [vmem:[%s8027_s1 + $0x1d0] ss:$8 sps:$4 sm:$0xff]  }
 0x11e   : > { %2016 = vmatpush1.bf16.msra.mxu0 %v6150_v54  ;;  %1689 = vmatprep.mubr.bf16.mxu0 %v8034_v40  ;;  %v2378_v54 = vand.u32 %v6197_v37, %v6543_v52  ;;  %v6201_v52 = vld [vmem:[%s6526_s15 + $0x118] sm:$0xff]  }
 0x11f   : > { %2017 = vmatprep.subr.bf16.mxu0 %v6155_v55 }
 0x122   : > { %2018 = vmatpush1.bf16.msra.mxu0 %v6153_v56 }
 0x123   : > { %2019 = vmatprep.subr.bf16.mxu0 %v6158_v57 }
 0x125   : > { %5018 = vmatmul.mubr.msk.bf16.gmra.mrb[4].mxu0 %vm872_vm2, %v6680_v29 }
 0x126   : > { %1699 = vmatprep.mubr.bf16.mxu0 %v8034_v40  ;;  %2020 = vmatpush1.bf16.msra.mxu0 %v6156_v58 }
 0x127   : > { %2021 = vmatprep.subr.bf16.mxu0 %v6161_v59 }
 0x12a   : > { %2022 = vmatpush1.bf16.msra.mxu0 %v6159_v60 }
 0x12b   : > { %2023 = vmatprep.subr.bf16.mxu0 %v6164_v61 }
 0x12d   : > { %5019 = vmatmul.mubr.msk.bf16.gmra.mrb[8].mxu0 %vm872_vm2, %v6701_v35 }
 0x12e   : > { %1709 = vmatprep.mubr.bf16.mxu0 %v8034_v40  ;;  %2024 = vmatpush1.bf16.msra.mxu0 %v6162_v62 }
 0x12f   : > { %2025 = vmatprep.subr.bf16.mxu0 %v6167_v63 }
 0x132   : > { %2026 = vmatpush1.bf16.msra.mxu0 %v6165_v1 }
 0x133   : > { %2027 = vmatprep.subr.bf16.mxu0 %v2013_v3 }
 0x135   : > { %5020 = vmatmul.mubr.msk.bf16.gmra.mrb[12].mxu0 %vm872_vm2, %v6712_v39 }
 0x136   : > { %1719 = vmatprep.mubr.bf16.mxu0 %v8034_v40  ;;  %2028 = vmatpush1.bf16.msra.mxu0 %v2010_v4 }
 0x137   : > { %2383 = vmatprep.subr.bf16.mxu0 %v6174_v5 }
 0x13d   : > { %5021 = vmatmul.mubr.msk.bf16.gmra.mrb[16].mxu0 %vm872_vm2, %v6718_v41 }
 0x13e   : > { %1729 = vmatprep.mubr.bf16.mxu0 %v8034_v40 }
 0x145   : > { %5022 = vmatmul.mubr.msk.bf16.gmra.mrb[20].mxu0 %vm872_vm2, %v6724_v42 }
 0x146   : > { %1739 = vmatprep.mubr.bf16.mxu0 %v8034_v40 }
 0x14d   : > { %5023 = vmatmul.mubr.msk.bf16.gmra.mrb[24].mxu0 %vm872_vm2, %v6730_v43 }
 0x14e   : > { %1749 = vmatprep.mubr.bf16.mxu0 %v8034_v40 }
 0x155   : > { %5024 = vmatmul.mubr.msk.bf16.gmra.mrb[28].mxu0 %vm872_vm2, %v6736_v44 }
 0x156   : > { %1759 = vmatprep.mubr.bf16.mxu0 %v8034_v40 }
 0x15d   : > { %5025 = vmatmul.mubr.msk.bf16.gmra.mrb[32].mxu0 %vm872_vm2, %v6742_v45 }
 0x15e   : > { %1769 = vmatprep.mubr.bf16.mxu0 %v8034_v40 }
 0x165   : > { %5026 = vmatmul.mubr.msk.bf16.gmra.mrb[36].mxu0 %vm872_vm2, %v6748_v46 }
 0x166   : > { %1779 = vmatprep.mubr.bf16.mxu0 %v8034_v40 }
 0x16d   : > { %5027 = vmatmul.mubr.msk.bf16.gmra.mrb[40].mxu0 %vm872_vm2, %v6754_v47 }
 0x16e   : > { %1789 = vmatprep.mubr.bf16.mxu0 %v8034_v40 }
 0x175   : > { %5028 = vmatmul.mubr.msk.bf16.gmra.mrb[44].mxu0 %vm872_vm2, %v6760_v48 }
 0x176   : > { %1799 = vmatprep.mubr.bf16.mxu0 %v8034_v40 }
 0x17d   : > { %5029 = vmatmul.mubr.msk.bf16.gmra.mrb[48].mxu0 %vm872_vm2, %v6766_v49 }
 0x17e   : > { %1809 = vmatprep.mubr.bf16.mxu0 %v8034_v40 }
 0x185   : > { %5030 = vmatmul.mubr.msk.bf16.gmra.mrb[52].mxu0 %vm872_vm2, %v6772_v50 }
 0x186   : > { %1819 = vmatprep.mubr.bf16.mxu0 %v8034_v40 }
 0x18d   : > { %5031 = vmatmul.mubr.msk.bf16.gmra.mrb[56].mxu0 %vm872_vm2, %v6778_v51 }
 0x18e   : > { %1829 = vmatprep.mubr.bf16.mxu0 %v8034_v40 }
 0x195   : > { %5032 = vmatmul.mubr.msk.bf16.gmra.mrb[60].mxu0 %vm872_vm2, %v6784_v53 }
 0x196   : > { %1839 = vmatprep.mubr.bf16.mxu0 %v8034_v40 }
 0x19d   : > { %5033 = vmatmul.mubr.msk.bf16.gmra.mrb[64].mxu0 %vm872_vm2, %v6929_v20 }
 0x19e   : > { %2047 = vmatprep.mubr.bf16.mxu0 %v8034_v40 }
 0x1a5   : > { %5063 = vmatmul.mubr.msk.bf16.vlgmr.msra.gmra.mrb[0].mxu0 %vm872_vm2, %v6318_v23 }
 0x1a6   : > { %2384 = vmatpush1.bf16.msra.mxu0 %v6172_v21  ;;  %2057 = vmatprep.mubr.bf16.mxu0 %v8034_v40 }
 0x1a7   : > { %2385 = vmatprep.subr.bf16.mxu0 %v6177_v22 }
 0x1aa   : > { %2386 = vmatpush1.bf16.msra.mxu0 %v6175_v24 }
 0x1ab   : > { %2387 = vmatprep.subr.bf16.mxu0 %v6180_v25 }
 0x1ad   : > { %5064 = vmatmul.mubr.msk.bf16.gmra.mrb[4].mxu0 %vm872_vm2, %v6319_v28 }
 0x1ae   : > { %2067 = vmatprep.mubr.bf16.mxu0 %v8034_v40  ;;  %2388 = vmatpush1.bf16.msra.mxu0 %v6178_v26 }
 0x1af   : > { %2389 = vmatprep.subr.bf16.mxu0 %v6183_v27 }
 0x1b2   : > { %2390 = vmatpush1.bf16.msra.mxu0 %v6181_v30 }
 0x1b3   : > { %2391 = vmatprep.subr.bf16.mxu0 %v6188_v31 }
 0x1b5   : > { %5065 = vmatmul.mubr.msk.bf16.gmra.mrb[8].mxu0 %vm872_vm2, %v6606_v10  ;;  %v6203_v10 = vld [vmem:[%s8029_s3 + $0x44] sm:$0xff]  }
 0x1b6   : > { %2077 = vmatprep.mubr.bf16.mxu0 %v8034_v40  ;;  %2392 = vmatpush1.bf16.msra.mxu0 %v6186_v32 }
 0x1b7   : > { %2393 = vmatprep.subr.bf16.mxu0 %v6194_v33  ;;  %2949 = vmatpush1.bf16.msra.mxu1 %v6203_v10 }
 0x1b8   : > { %2950 = vmatprep.subr.bf16.mxu1 %v8034_v40 }
 0x1ba   : > { %2394 = vmatpush1.bf16.msra.mxu0 %v6192_v36 }
 0x1bb   : > { %2395 = vmatprep.subr.bf16.mxu0 %v2381_v38 }
 0x1bd   : > { %5066 = vmatmul.mubr.msk.bf16.gmra.mrb[12].mxu0 %vm872_vm2, %v6617_v14  ;;  %v6204_v14 = vld [vmem:[%s8029_s3 + $0x4c] sm:$0xff]  }
 0x1be   : > { %2087 = vmatprep.mubr.bf16.mxu0 %v8034_v40  ;;  %2396 = vmatpush1.bf16.msra.mxu0 %v2378_v54 }
 0x1bf   : > { %2951 = vmatpush1.bf16.msra.mxu1 %v6204_v14 }
 0x1c0   : > { %2952 = vmatprep.subr.bf16.mxu1 %v8034_v40 }
 0x1c5   : > { %5067 = vmatmul.mubr.msk.bf16.gmra.mrb[16].mxu0 %vm872_vm2, %v6623_v15  ;;  %v6205_v15 = vld [vmem:[%s8029_s3 + $0x54] sm:$0xff]  }
 0x1c6   : > { %2097 = vmatprep.mubr.bf16.mxu0 %v8034_v40  ;;  %2953 = vmatpush1.bf16.msra.mxu1 %v6205_v15 }
 0x1c7   : > { %2954 = vmatprep.subr.bf16.mxu1 %v8034_v40 }
 0x1cd   : > { %5068 = vmatmul.mubr.msk.bf16.gmra.mrb[20].mxu0 %vm872_vm2, %v6629_v16  ;;  %v6206_v16 = vld [vmem:[%s8029_s3 + $0x5c] sm:$0xff]  }
 0x1ce   : > { %2107 = vmatprep.mubr.bf16.mxu0 %v8034_v40  ;;  %2955 = vmatpush1.bf16.msra.mxu1 %v6206_v16 }
 0x1cf   : > { %2956 = vmatprep.subr.bf16.mxu1 %v8034_v40 }
 0x1d5   : > { %5069 = vmatmul.mubr.msk.bf16.gmra.mrb[24].mxu0 %vm872_vm2, %v6635_v17  ;;  %v6207_v17 = vld [vmem:[%s8029_s3 + $0x64] sm:$0xff]  }
 0x1d6   : > { %2117 = vmatprep.mubr.bf16.mxu0 %v8034_v40  ;;  %2957 = vmatpush1.bf16.msra.mxu1 %v6207_v17 }
 0x1d7   : > { %2958 = vmatprep.subr.bf16.mxu1 %v8034_v40 }
 0x1dd   : > { %5070 = vmatmul.mubr.msk.bf16.gmra.mrb[28].mxu0 %vm872_vm2, %v6641_v18  ;;  %v6208_v18 = vld [vmem:[%s8029_s3 + $0x6c] sm:$0xff]  }
 0x1de   : > { %2127 = vmatprep.mubr.bf16.mxu0 %v8034_v40  ;;  %2959 = vmatpush1.bf16.msra.mxu1 %v6208_v18 }
 0x1df   : > { %2960 = vmatprep.subr.bf16.mxu1 %v8034_v40 }
 0x1e5   : > { %5071 = vmatmul.mubr.msk.bf16.gmra.mrb[32].mxu0 %vm872_vm2, %v6861_v6  ;;  %v2657_v6 = vshrl.u32 %v2656_v2, 7 }
 0x1e6   : > { %2137 = vmatprep.mubr.bf16.mxu0 %v8034_v40 }
 0x1ed   : > { %5072 = vmatmul.mubr.msk.bf16.gmra.mrb[36].mxu0 %vm872_vm2, %v6870_v7 }
 0x1ee   : > { %2147 = vmatprep.mubr.bf16.mxu0 %v8034_v40 }
 0x1f5   : > { %5073 = vmatmul.mubr.msk.bf16.gmra.mrb[40].mxu0 %vm872_vm2, %v6879_v8  ;;  %v2658_v8 = vsub.s32 0, %v2657_v6 }
 0x1f6   : > { %2157 = vmatprep.mubr.bf16.mxu0 %v8034_v40 }
 0x1fd   : > { %5074 = vmatmul.mubr.msk.bf16.gmra.mrb[44].mxu0 %vm872_vm2, %v6888_v9 }
 0x1fe   : > { %2167 = vmatprep.mubr.bf16.mxu0 %v8034_v40 }
 0x205   : > { %5075 = vmatmul.mubr.msk.bf16.gmra.mrb[48].mxu0 %vm872_vm2, %v6897_v11  ;;  %v2654_v11 = vld [vmem:[%s8028_s2] sm:$0x3] }
 0x206   : > { %2177 = vmatprep.mubr.bf16.mxu0 %v8034_v40 }
 0x20d   : > { %5076 = vmatmul.mubr.msk.bf16.gmra.mrb[52].mxu0 %vm872_vm2, %v6906_v12  ;;  %v2662_v12 = vsub.s32 1, %v2657_v6 }
 0x20e   : > { %2187 = vmatprep.mubr.bf16.mxu0 %v8034_v40 }
 0x20f   : > { %v7174_v21 = vrot.slane %v2654_v11, %v2662_v12 }
 0x215   : > { %5077 = vmatmul.mubr.msk.bf16.gmra.mrb[56].mxu0 %vm872_vm2, %v6915_v13 }
 0x216   : > { %2197 = vmatprep.mubr.bf16.mxu0 %v8034_v40 }
 0x21d   : > { %5078 = vmatmul.mubr.msk.bf16.gmra.mrb[60].mxu0 %vm872_vm2, %v6924_v19 }
 0x21e   : > { %2207 = vmatprep.mubr.bf16.mxu0 %v8034_v40 }
 0x225   : > { %5079 = vmatmul.mubr.msk.bf16.gmra.mrb[64].mxu0 %vm872_vm2, %v6201_v52 }
 0x226   : > { %2415 = vmatprep.mubr.bf16.mxu0 %v8034_v40 }
 0x22d   : > { %5109 = vmatmul.mubr.msk.bf16.vlgmr.msra.gmra.mrb[0].mxu0 %vm872_vm2, %v6680_v29  ;;  %v6209_v29 = vld [vmem:[%s8029_s3 + $0x74] sm:$0xff]  }
 0x22e   : > { %2425 = vmatprep.mubr.bf16.mxu0 %v8034_v40  ;;  %2961 = vmatpush1.bf16.msra.mxu1 %v6209_v29 }
 0x22f   : > { %2962 = vmatprep.subr.bf16.mxu1 %v8034_v40 }
 0x235   : > { %5110 = vmatmul.mubr.msk.bf16.gmra.mrb[4].mxu0 %vm872_vm2, %v6701_v35  ;;  %v6210_v35 = vld [vmem:[%s8029_s3 + $0x7c] sm:$0xff]  }
 0x236   : > { %2435 = vmatprep.mubr.bf16.mxu0 %v8034_v40  ;;  %2963 = vmatpush1.bf16.msra.mxu1 %v6210_v35 }
 0x237   : > { %2964 = vmatprep.subr.bf16.mxu1 %v8034_v40 }
 0x23d   : > { %5111 = vmatmul.mubr.msk.bf16.gmra.mrb[8].mxu0 %vm872_vm2, %v6712_v39  ;;  %v6211_v39 = vld [vmem:[%s8029_s3 + $0x84] ss:$0 sps:$4 sm:$0xff]  }
 0x23e   : > { %2445 = vmatprep.mubr.bf16.mxu0 %v8034_v40 }
 0x245   : > { %5112 = vmatmul.mubr.msk.bf16.gmra.mrb[12].mxu0 %vm872_vm2, %v6718_v41  ;;  %v2946_v41 = vsel %vm2944_vm3, %v6211_v39, 0 }
 0x246   : > { %2455 = vmatprep.mubr.bf16.mxu0 %v8034_v40  ;;  %2965 = vmatpush1.bf16.msra.mxu1 %v2946_v41 }
 0x247   : > { %3112 = vmatprep.subr.bf16.mxu1 %v8034_v40 }
 0x24d   : > { %5113 = vmatmul.mubr.msk.bf16.gmra.mrb[16].mxu0 %vm872_vm2, %v6724_v42  ;;  %v6202_v42 = vld [vmem:[%s6526_s15 + $0x120] sm:$0xff]   ;;  %s4876_s15 = sshll.u32 %s4869_s27, 1 }
 0x24e   : > { %2465 = vmatprep.mubr.bf16.mxu0 %v8034_v40  ;;  %p610_p8 = scmp.lt.s32.totalorder %s4876_s15, 3 }
 0x250   : > { %s8047_s15 = smov (!%p610_p8, %s4876_s15), 3 }
 0x251   : > { %s4877_s30 = sshll.u32 %s8047_s15, 3 }
 0x252   : > { %s613_s11 = scalar_lea.vmem %s8033_s7, %s4877_s30 }
 0x255   : > { %5114 = vmatmul.mubr.msk.bf16.gmra.mrb[20].mxu0 %vm872_vm2, %v6730_v43  ;;  %v7113_v43 = vpop.f32.mrb[0].mxu1 }
 0x256   : > { %2475 = vmatprep.mubr.bf16.mxu0 %v8034_v40 }
 0x25d   : > { %5115 = vmatmul.mubr.msk.bf16.gmra.mrb[24].mxu0 %vm872_vm2, %v6736_v44  ;;  %v7115_v44 = vpop.f32.mrb[1].mxu1 }
 0x25e   : > { %2485 = vmatprep.mubr.bf16.mxu0 %v8034_v40 }
 0x265   : > { %5116 = vmatmul.mubr.msk.bf16.gmra.mrb[28].mxu0 %vm872_vm2, %v6742_v45  ;;  %v7117_v45 = vpop.f32.mrb[2].mxu1 }
 0x266   : > { %2495 = vmatprep.mubr.bf16.mxu0 %v8034_v40 }
 0x26d   : > { %5117 = vmatmul.mubr.msk.bf16.gmra.mrb[32].mxu0 %vm872_vm2, %v6748_v46  ;;  %v7119_v46 = vpop.f32.mrb[3].mxu1 }
 0x26e   : > { %2505 = vmatprep.mubr.bf16.mxu0 %v8034_v40 }
 0x275   : > { %5118 = vmatmul.mubr.msk.bf16.gmra.mrb[36].mxu0 %vm872_vm2, %v6754_v47  ;;  %v7121_v47 = vpop.f32.mrb[4].mxu1 }
 0x276   : > { %2515 = vmatprep.mubr.bf16.mxu0 %v8034_v40 }
 0x27d   : > { %5119 = vmatmul.mubr.msk.bf16.gmra.mrb[40].mxu0 %vm872_vm2, %v6760_v48  ;;  %v7123_v48 = vpop.f32.mrb[5].mxu1 }
 0x27e   : > { %2525 = vmatprep.mubr.bf16.mxu0 %v8034_v40 }
 0x285   : > { %5120 = vmatmul.mubr.msk.bf16.gmra.mrb[44].mxu0 %vm872_vm2, %v6766_v49  ;;  %v7125_v49 = vpop.f32.mrb[6].mxu1 }
 0x286   : > { %2535 = vmatprep.mubr.bf16.mxu0 %v8034_v40 }
 0x28d   : > { %5121 = vmatmul.mubr.msk.bf16.gmra.mrb[48].mxu0 %vm872_vm2, %v6772_v50  ;;  %v7127_v50 = vpop.f32.mrb[7].mxu1 }
 0x28e   : > { %2545 = vmatprep.mubr.bf16.mxu0 %v8034_v40 }
 0x295   : > { %5122 = vmatmul.mubr.msk.bf16.gmra.mrb[52].mxu0 %vm872_vm2, %v6778_v51  ;;  %v7129_v51 = vpop.f32.mrb[8].mxu1 }
 0x296   : > { %2555 = vmatprep.mubr.bf16.mxu0 %v8034_v40 }
 0x29d   : > { %5123 = vmatmul.mubr.msk.bf16.gmra.mrb[56].mxu0 %vm872_vm2, %v6784_v53  ;;  %v7131_v53 = vpop.f32.mrb[9].mxu1 }
 0x29e   : > { %2565 = vmatprep.mubr.bf16.mxu0 %v8034_v40  ;;  %v7133_v55 = vpop.f32.mrb[10].mxu1 }
 0x29f   : > { %v7135_v56 = vpop.f32.mrb[11].mxu1 }
 0x2a0   : > { %v7137_v57 = vpop.f32.mrb[12].mxu1 }
 0x2a1   : > { %v7139_v58 = vpop.f32.mrb[13].mxu1 }
 0x2a2   : > { %v7141_v59 = vpop.f32.mrb[14].mxu1 }
 0x2a3   : > { %v7143_v60 = vpop.f32.mrb[15].mxu1 }
 0x2a4   : > { %v7145_v61 = vpop.f32.mrb[16].mxu1 }
 0x2a5   : > { %5124 = vmatmul.mubr.msk.bf16.gmra.mrb[60].mxu0 %vm872_vm2, %v6929_v20  ;;  %v7147_v62 = vpop.f32.mrb[17].mxu1  ;;  %v7172_v20 = vrot.slane %v2654_v11, %v2658_v8 }
 0x2a6   : > { %2575 = vmatprep.mubr.bf16.mxu0 %v8034_v40  ;;  %v7149_v63 = vpop.f32.mrb[18].mxu1 }
 0x2a7   : > { %v7151_v0 = vpop.f32.mrb[19].mxu1 }
 0x2a8   : > { %v7153_v1 = vpop.f32.mrb[20].mxu1 }
 0x2a9   : > { %v7155_v3 = vpop.f32.mrb[21].mxu1 }
 0x2aa   : > { %v7157_v4 = vpop.f32.mrb[22].mxu1 }
 0x2ab   : > { %v7159_v5 = vpop.f32.mrb[23].mxu1 }
 0x2ac   : > { %v7161_v7 = vpop.f32.mrb[24].mxu1 }
 0x2ad   : > { %5125 = vmatmul.mubr.msk.bf16.gmra.mrb[64].mxu0 %vm872_vm2, %v6202_v42  ;;  %v7163_v9 = vpop.f32.mrb[25].mxu1 }
 0x2ae   : > { %v7168_v13 = vpop.f32.mrb[26].mxu1 }
 0x2af   : > { %v7170_v19 = vpop.f32.mrb[27].mxu1 }
 0x2b0   : > { %v7176_v23 = vpop.f32.mrb[28].mxu1 }
 0x2b1   : > { %v7179_v26 = vpop.f32.mrb[29].mxu1 }
 0x2b2   : > { %v7182_v30 = vpop.f32.mrb[30].mxu1 }
 0x2b3   : > { %v7185_v33 = vpop.f32.mrb[31].mxu1 }
 0x300   : > { %v2417_v22 = vpop.f32.mrb[0].mxu0 }
 0x301   : > { %v2666_v24 = vadd.f32 %v7172_v20, %v2417_v22  ;;  %v2419_v25 = vpop.f32.mrb[1].mxu0  ;;  %v6212_v22 = vld [vmem:[%s8029_s3] sm:$0xff]  }
 0x302   : > { %v2667_v27 = vadd.f32 %v7174_v21, %v2419_v25  ;;  %v2421_v28 = vpop.f32.mrb[2].mxu0 }
 0x303   : > { %v2668_v31 = vadd.f32 %v7172_v20, %v2421_v28  ;;  %v2423_v32 = vpop.f32.mrb[3].mxu0  ;;  %v2734_v36 = vmax.f32 %v2666_v24, 0.0 }
 0x304   : > { %v2669_v34 = vadd.f32 %v7174_v21, %v2423_v32  ;;  %v2735_v38 = vmax.f32 %v2667_v27, 0.0 }
 0x305   : > { %v2736_v37 = vmax.f32 %v2668_v31, 0.0 }
 0x306   : > { %v2737_v54 = vmax.f32 %v2669_v34, 0.0 }
 0x307   : > { %v7188_v52 = vpack.c.bf16 %v2736_v37, %v2734_v36  ;;  %v6213_v36 = vld [vmem:[%s8029_s3 + $0x8] sm:$0xff]  }
 0x308   : > { %v7190_v10 = vpack.c.bf16 %v2737_v54, %v2735_v38  ;;  %v2427_v14 = vpop.f32.mrb[4].mxu0 }
 0x309   : > { %v2670_v15 = vadd.f32 %v7172_v20, %v2427_v14  ;;  %v2429_v16 = vpop.f32.mrb[5].mxu0 }
 0x30a   : > { %v2671_v17 = vadd.f32 %v7174_v21, %v2429_v16  ;;  %v2431_v18 = vpop.f32.mrb[6].mxu0 }
 0x30b   : > { %v2672_v29 = vadd.f32 %v7172_v20, %v2431_v18  ;;  %v2433_v35 = vpop.f32.mrb[7].mxu0  ;;  %v2738_v41 = vmax.f32 %v2670_v15, 0.0  ;;  %v6214_v18 = vld [vmem:[%s8029_s3 + $0x10] sm:$0xff]  }
 0x30c   : > { %v2673_v39 = vadd.f32 %v7174_v21, %v2433_v35  ;;  %v2739_v2 = vmax.f32 %v2671_v17, 0.0 }
 0x30d   : > { %v2740_v42 = vmax.f32 %v2672_v29, 0.0 }
 0x30e   : > { %v2741_v6 = vmax.f32 %v2673_v39, 0.0 }
 0x30f   : > { %v2804_v8 = vpack.c.bf16 %v2740_v42, %v2738_v41 }
 0x310   : > { %v2805_v11 = vpack.c.bf16 %v2741_v6, %v2739_v2  ;;  %v2437_v12 = vpop.f32.mrb[8].mxu0 }
 0x311   : > { %v2674_v24 = vadd.f32 %v7172_v20, %v2437_v12  ;;  %v2439_v25 = vpop.f32.mrb[9].mxu0 }
 0x312   : > { %v2675_v27 = vadd.f32 %v7174_v21, %v2439_v25  ;;  %v2441_v28 = vpop.f32.mrb[10].mxu0  ;;  %5152 = vmatprep.mubr.msk.bf16.mxu1 %vm2922_vm4, %v2805_v11 }
 0x313   : > { %v2676_v31 = vadd.f32 %v7172_v20, %v2441_v28  ;;  %v2443_v32 = vpop.f32.mrb[11].mxu0  ;;  %2981 = vmatmul.mubr.bf16.vlgmr.msra.gmra.mrb[32].mxu1 %v2804_v8  ;;  %v2742_v37 = vmax.f32 %v2674_v24, 0.0  ;;  %v6215_v8 = vld [vmem:[%s8029_s3 + $0x18] sm:$0xff]  }
 0x314   : > { %v2677_v34 = vadd.f32 %v7174_v21, %v2443_v32  ;;  %3113 = vmatpush1.bf16.msra.mxu1 %v6212_v22  ;;  %v2743_v54 = vmax.f32 %v2675_v27, 0.0 }
 0x315   : > { %v2744_v38 = vmax.f32 %v2676_v31, 0.0  ;;  %3114 = vmatprep.subr.bf16.mxu1 %v8034_v40  ;;  %v6216_v31 = vld [vmem:[%s8029_s3 + $0x20] sm:$0xff]  }
 0x316   : > { %v2745_v14 = vmax.f32 %v2677_v34, 0.0 }
 0x317   : > { %v7208_v15 = vpack.c.bf16 %v2744_v38, %v2742_v37 }
 0x318   : > { %v7210_v16 = vpack.c.bf16 %v2745_v14, %v2743_v54  ;;  %v2447_v17 = vpop.f32.mrb[12].mxu0  ;;  %3115 = vmatpush1.bf16.msra.mxu1 %v6213_v36 }
 0x319   : > { %v2678_v29 = vadd.f32 %v7172_v20, %v2447_v17  ;;  %v2449_v35 = vpop.f32.mrb[13].mxu0  ;;  %3116 = vmatprep.subr.bf16.mxu1 %v8034_v40  ;;  %v6217_v17 = vld [vmem:[%s8029_s3 + $0x28] sm:$0xff]  }
 0x31a   : > { %v2679_v39 = vadd.f32 %v7174_v21, %v2449_v35  ;;  %v2451_v41 = vpop.f32.mrb[14].mxu0 }
 0x31b   : > { %v2680_v42 = vadd.f32 %v7172_v20, %v2451_v41  ;;  %v2453_v2 = vpop.f32.mrb[15].mxu0  ;;  %v2746_v11 = vmax.f32 %v2678_v29, 0.0 }
 0x31c   : > { %v2681_v6 = vadd.f32 %v7174_v21, %v2453_v2  ;;  %3117 = vmatpush1.bf16.msra.mxu1 %v6214_v18  ;;  %v2747_v22 = vmax.f32 %v2679_v39, 0.0 }
 0x31d   : > { %v2748_v12 = vmax.f32 %v2680_v42, 0.0  ;;  %3118 = vmatprep.subr.bf16.mxu1 %v8034_v40 }
 0x31e   : > { %v2749_v24 = vmax.f32 %v2681_v6, 0.0  ;;  %v6218_v6 = vld [vmem:[%s8029_s3 + $0x30] sm:$0xff]  }
 0x31f   : > { %v7224_v25 = vpack.c.bf16 %v2748_v12, %v2746_v11 }
 0x320   : > { %v7226_v27 = vpack.c.bf16 %v2749_v24, %v2747_v22  ;;  %v2457_v28 = vpop.f32.mrb[16].mxu0  ;;  %3119 = vmatpush1.bf16.msra.mxu1 %v6215_v8 }
 0x321   : > { %v2682_v32 = vadd.f32 %v7172_v20, %v2457_v28  ;;  %v2459_v34 = vpop.f32.mrb[17].mxu0  ;;  %3120 = vmatprep.subr.bf16.mxu1 %v8034_v40 }
 0x322   : > { %v2683_v36 = vadd.f32 %v7174_v21, %v2459_v34  ;;  %v2461_v37 = vpop.f32.mrb[18].mxu0  ;;  %5153 = vmatprep.mubr.msk.bf16.mxu1 %vm2922_vm4, %v7226_v27 }
 0x323   : > { %v2684_v38 = vadd.f32 %v7172_v20, %v2461_v37  ;;  %v2463_v54 = vpop.f32.mrb[19].mxu0  ;;  %2989 = vmatmul.mubr.bf16.gmra.mrb[36].mxu1 %v7224_v25  ;;  %v2750_v18 = vmax.f32 %v2682_v32, 0.0  ;;  %v6219_v32 = vld [vmem:[%s8029_s3 + $0x38] sm:$0xff]   ;;  %v6220_v37 = vld [vmem:[%s8029_s3 + $0x40] ss:$0 sps:$4 sm:$0xff]  }
 0x324   : > { %v2685_v14 = vadd.f32 %v7174_v21, %v2463_v54  ;;  %3121 = vmatpush1.bf16.msra.mxu1 %v6216_v31  ;;  %v2751_v35 = vmax.f32 %v2683_v36, 0.0 }
 0x325   : > { %v2752_v29 = vmax.f32 %v2684_v38, 0.0  ;;  %3122 = vmatprep.subr.bf16.mxu1 %v8034_v40 }
 0x326   : > { %v2753_v39 = vmax.f32 %v2685_v14, 0.0 }
 0x327   : > { %v7243_v41 = vpack.c.bf16 %v2752_v29, %v2750_v18 }
 0x328   : > { %v7245_v42 = vpack.c.bf16 %v2753_v39, %v2751_v35  ;;  %v2467_v2 = vpop.f32.mrb[20].mxu0  ;;  %3123 = vmatpush1.bf16.msra.mxu1 %v6217_v17  ;;  %v3110_v39 = vsel %vm2944_vm3, %v6220_v37, 0 }
 0x329   : > { %v2686_v8 = vadd.f32 %v7172_v20, %v2467_v2  ;;  %v2469_v11 = vpop.f32.mrb[21].mxu0  ;;  %3124 = vmatprep.subr.bf16.mxu1 %v8034_v40 }
 0x32a   : > { %v2687_v12 = vadd.f32 %v7174_v21, %v2469_v11  ;;  %v2471_v22 = vpop.f32.mrb[22].mxu0 }
 0x32b   : > { %v2688_v24 = vadd.f32 %v7172_v20, %v2471_v22  ;;  %v2473_v28 = vpop.f32.mrb[23].mxu0  ;;  %v2754_v34 = vmax.f32 %v2686_v8, 0.0 }
 0x32c   : > { %v2689_v31 = vadd.f32 %v7174_v21, %v2473_v28  ;;  %3125 = vmatpush1.bf16.msra.mxu1 %v6218_v6  ;;  %v2755_v38 = vmax.f32 %v2687_v12, 0.0 }
 0x32d   : > { %v2756_v36 = vmax.f32 %v2688_v24, 0.0  ;;  %3126 = vmatprep.subr.bf16.mxu1 %v8034_v40 }
 0x32e   : > { %v2757_v54 = vmax.f32 %v2689_v31, 0.0 }
 0x32f   : > { %v7262_v14 = vpack.c.bf16 %v2756_v36, %v2754_v34 }
 0x330   : > { %v7264_v17 = vpack.c.bf16 %v2757_v54, %v2755_v38  ;;  %v2477_v18 = vpop.f32.mrb[24].mxu0  ;;  %3127 = vmatpush1.bf16.msra.mxu1 %v6219_v32 }
 0x331   : > { %v2690_v29 = vadd.f32 %v7172_v20, %v2477_v18  ;;  %v2479_v35 = vpop.f32.mrb[25].mxu0  ;;  %3128 = vmatprep.subr.bf16.mxu1 %v8034_v40 }
 0x332   : > { %v2691_v2 = vadd.f32 %v7174_v21, %v2479_v35  ;;  %v2481_v6 = vpop.f32.mrb[26].mxu0  ;;  %5154 = vmatprep.mubr.msk.bf16.mxu1 %vm2922_vm4, %v7264_v17 }
 0x333   : > { %v2692_v8 = vadd.f32 %v7172_v20, %v2481_v6  ;;  %v2483_v11 = vpop.f32.mrb[27].mxu0  ;;  %2997 = vmatmul.mubr.bf16.gmra.mrb[40].mxu1 %v7262_v14  ;;  %v2758_v22 = vmax.f32 %v2690_v29, 0.0 }
 0x334   : > { %v2693_v12 = vadd.f32 %v7174_v21, %v2483_v11  ;;  %3129 = vmatpush1.bf16.msra.mxu1 %v3110_v39  ;;  %v2759_v28 = vmax.f32 %v2691_v2, 0.0 }
 0x335   : > { %v2760_v24 = vmax.f32 %v2692_v8, 0.0  ;;  %3276 = vmatprep.subr.bf16.mxu1 %v8034_v40 }
 0x336   : > { %v2761_v31 = vmax.f32 %v2693_v12, 0.0 }
 0x337   : > { %v7276_v32 = vpack.c.bf16 %v2760_v24, %v2758_v22 }
 0x338   : > { %v7278_v34 = vpack.c.bf16 %v2761_v31, %v2759_v28  ;;  %v2487_v36 = vpop.f32.mrb[28].mxu0 }
 0x339   : > { %v2694_v37 = vadd.f32 %v7172_v20, %v2487_v36  ;;  %v2489_v38 = vpop.f32.mrb[29].mxu0 }
 0x33a   : > { %v2695_v54 = vadd.f32 %v7174_v21, %v2489_v38  ;;  %v2491_v18 = vpop.f32.mrb[30].mxu0 }
 0x33b   : > { %v2696_v35 = vadd.f32 %v7172_v20, %v2491_v18  ;;  %v2493_v39 = vpop.f32.mrb[31].mxu0  ;;  %v2762_v6 = vmax.f32 %v2694_v37, 0.0 }
 0x33c   : > { %v2697_v29 = vadd.f32 %v7174_v21, %v2493_v39  ;;  %v2763_v2 = vmax.f32 %v2695_v54, 0.0 }
 0x33d   : > { %v2764_v8 = vmax.f32 %v2696_v35, 0.0 }
 0x33e   : > { %v2765_v11 = vmax.f32 %v2697_v29, 0.0 }
 0x33f   : > { %v7284_v12 = vpack.c.bf16 %v2764_v8, %v2762_v6 }
 0x340   : > { %v7286_v22 = vpack.c.bf16 %v2765_v11, %v2763_v2  ;;  %v2497_v24 = vpop.f32.mrb[32].mxu0 }
 0x341   : > { %8038 = vst [vmem:[#allocation3_spill] sm:$0xff] %v7284_v12  ;;  %v2698_v28 = vadd.f32 %v7172_v20, %v2497_v24  ;;  %v2499_v31 = vpop.f32.mrb[33].mxu0 }
 0x342   : > { %8039 = vst [vmem:[#allocation4_spill] sm:$0xff] %v7286_v22  ;;  %v2699_v36 = vadd.f32 %v7174_v21, %v2499_v31  ;;  %v2501_v38 = vpop.f32.mrb[34].mxu0  ;;  %5155 = vmatprep.mubr.msk.bf16.mxu1 %vm2922_vm4, %v7286_v22 }
 0x343   : > { %v2700_v18 = vadd.f32 %v7172_v20, %v2501_v38  ;;  %v2503_v37 = vpop.f32.mrb[35].mxu0  ;;  %3005 = vmatmul.mubr.bf16.gmra.mrb[44].mxu1 %v7284_v12  ;;  %v2766_v35 = vmax.f32 %v2698_v28, 0.0 }
 0x344   : > { %v2701_v54 = vadd.f32 %v7174_v21, %v2503_v37  ;;  %v2767_v29 = vmax.f32 %v2699_v36, 0.0 }
 0x345   : > { %v2768_v39 = vmax.f32 %v2700_v18, 0.0 }
 0x346   : > { %v2769_v6 = vmax.f32 %v2701_v54, 0.0 }
 0x347   : > { %v7295_v8 = vpack.c.bf16 %v2768_v39, %v2766_v35 }
 0x348   : > { %v7297_v2 = vpack.c.bf16 %v2769_v6, %v2767_v29  ;;  %v2507_v11 = vpop.f32.mrb[36].mxu0 }
 0x349   : > { %v5759_v24 = vadd.f32 %v2507_v11, %v7113_v43  ;;  %v2509_v31 = vpop.f32.mrb[37].mxu0 }
 0x34a   : > { %v5760_v40 = vadd.f32 %v2509_v31, %v7115_v44  ;;  %v2511_v38 = vpop.f32.mrb[38].mxu0 }
 0x34b   : > { %v2702_v22 = vadd.f32 %v5759_v24, %v7172_v20  ;;  %v5761_v12 = vadd.f32 %v2511_v38, %v7117_v45  ;;  %v2513_v37 = vpop.f32.mrb[39].mxu0 }
 0x34c   : > { %v2703_v28 = vadd.f32 %v5760_v40, %v7174_v21  ;;  %v5762_v36 = vadd.f32 %v2513_v37, %v7119_v46 }
 0x34d   : > { %v2704_v18 = vadd.f32 %v5761_v12, %v7172_v20  ;;  %v2770_v35 = vmax.f32 %v2702_v22, 0.0 }
 0x34e   : > { %v2705_v54 = vadd.f32 %v5762_v36, %v7174_v21  ;;  %v2771_v43 = vmax.f32 %v2703_v28, 0.0 }
 0x34f   : > { %v2772_v39 = vmax.f32 %v2704_v18, 0.0 }
 0x350   : > { %v2773_v29 = vmax.f32 %v2705_v54, 0.0  ;;  %v2517_v6 = vpop.f32.mrb[40].mxu0 }
 0x351   : > { %v5763_v44 = vadd.f32 %v2517_v6, %v7121_v47  ;;  %v2519_v11 = vpop.f32.mrb[41].mxu0  ;;  %v7308_v24 = vpack.c.bf16 %v2772_v39, %v2770_v35 }
 0x352   : > { %v7310_v45 = vpack.c.bf16 %v2773_v29, %v2771_v43  ;;  %v5764_v40 = vadd.f32 %v2519_v11, %v7123_v48  ;;  %v2521_v31 = vpop.f32.mrb[42].mxu0 }
 0x353   : > { %v2706_v46 = vadd.f32 %v5763_v44, %v7172_v20  ;;  %v5765_v12 = vadd.f32 %v2521_v31, %v7125_v49  ;;  %v2523_v38 = vpop.f32.mrb[43].mxu0 }
 0x354   : > { %v2707_v22 = vadd.f32 %v5764_v40, %v7174_v21  ;;  %v5766_v37 = vadd.f32 %v2523_v38, %v7127_v50  ;;  %5156 = vmatprep.mubr.msk.bf16.mxu1 %vm2922_vm4, %v7310_v45 }
 0x355   : > { %v2708_v47 = vadd.f32 %v5765_v12, %v7172_v20  ;;  %3013 = vmatmul.mubr.bf16.gmra.mrb[48].mxu1 %v7308_v24  ;;  %v2774_v48 = vmax.f32 %v2706_v46, 0.0 }
 0x356   : > { %v2709_v28 = vadd.f32 %v5766_v37, %v7174_v21  ;;  %v2775_v18 = vmax.f32 %v2707_v22, 0.0 }
 0x357   : > { %v2776_v36 = vmax.f32 %v2708_v47, 0.0 }
 0x358   : > { %v2777_v54 = vmax.f32 %v2709_v28, 0.0  ;;  %v2527_v35 = vpop.f32.mrb[44].mxu0 }
 0x359   : > { %v5767_v49 = vadd.f32 %v2527_v35, %v7129_v51  ;;  %v2529_v39 = vpop.f32.mrb[45].mxu0  ;;  %v7323_v43 = vpack.c.bf16 %v2776_v36, %v2774_v48 }
 0x35a   : > { %v7325_v50 = vpack.c.bf16 %v2777_v54, %v2775_v18  ;;  %v5768_v29 = vadd.f32 %v2529_v39, %v7131_v53  ;;  %v2531_v6 = vpop.f32.mrb[46].mxu0 }
 0x35b   : > { %v2710_v44 = vadd.f32 %v5767_v49, %v7172_v20  ;;  %v5769_v11 = vadd.f32 %v2531_v6, %v7133_v55  ;;  %v2533_v40 = vpop.f32.mrb[47].mxu0 }
 0x35c   : > { %v2711_v31 = vadd.f32 %v5768_v29, %v7174_v21  ;;  %v5770_v46 = vadd.f32 %v2533_v40, %v7135_v56 }
 0x35d   : > { %v2712_v12 = vadd.f32 %v5769_v11, %v7172_v20  ;;  %v2778_v38 = vmax.f32 %v2710_v44, 0.0 }
 0x35e   : > { %v2713_v51 = vadd.f32 %v5770_v46, %v7174_v21  ;;  %v2779_v37 = vmax.f32 %v2711_v31, 0.0 }
 0x35f   : > { %v2780_v22 = vmax.f32 %v2712_v12, 0.0 }
 0x360   : > { %v2781_v47 = vmax.f32 %v2713_v51, 0.0  ;;  %v2537_v28 = vpop.f32.mrb[48].mxu0 }
 0x361   : > { %v5771_v53 = vadd.f32 %v2537_v28, %v7137_v57  ;;  %v2539_v48 = vpop.f32.mrb[49].mxu0  ;;  %v7335_v36 = vpack.c.bf16 %v2780_v22, %v2778_v38 }
 0x362   : > { %v7337_v55 = vpack.c.bf16 %v2781_v47, %v2779_v37  ;;  %v5772_v18 = vadd.f32 %v2539_v48, %v7139_v58  ;;  %v2541_v54 = vpop.f32.mrb[50].mxu0 }
 0x363   : > { %v2714_v56 = vadd.f32 %v5771_v53, %v7172_v20  ;;  %v5773_v35 = vadd.f32 %v2541_v54, %v7141_v59  ;;  %v2543_v49 = vpop.f32.mrb[51].mxu0 }
 0x364   : > { %v2715_v39 = vadd.f32 %v5772_v18, %v7174_v21  ;;  %v5774_v29 = vadd.f32 %v2543_v49, %v7143_v60  ;;  %5157 = vmatprep.mubr.msk.bf16.mxu1 %vm2922_vm4, %v7337_v55 }
 0x365   : > { %v2716_v57 = vadd.f32 %v5773_v35, %v7172_v20  ;;  %3021 = vmatmul.mubr.bf16.gmra.mrb[52].mxu1 %v7335_v36  ;;  %v2782_v58 = vmax.f32 %v2714_v56, 0.0 }
 0x366   : > { %v2717_v6 = vadd.f32 %v5774_v29, %v7174_v21  ;;  %v2783_v11 = vmax.f32 %v2715_v39, 0.0 }
 0x367   : > { %v2784_v44 = vmax.f32 %v2716_v57, 0.0 }
 0x368   : > { %v2785_v40 = vmax.f32 %v2717_v6, 0.0  ;;  %v2547_v31 = vpop.f32.mrb[52].mxu0 }
 0x369   : > { %v5775_v59 = vadd.f32 %v2547_v31, %v7145_v61  ;;  %v2549_v46 = vpop.f32.mrb[53].mxu0  ;;  %v7350_v12 = vpack.c.bf16 %v2784_v44, %v2782_v58 }
 0x36a   : > { %v7352_v60 = vpack.c.bf16 %v2785_v40, %v2783_v11  ;;  %v5776_v51 = vadd.f32 %v2549_v46, %v7147_v62  ;;  %v2551_v38 = vpop.f32.mrb[54].mxu0 }
 0x36b   : > { %v2718_v22 = vadd.f32 %v5775_v59, %v7172_v20  ;;  %v5777_v37 = vadd.f32 %v2551_v38, %v7149_v63  ;;  %v2553_v47 = vpop.f32.mrb[55].mxu0 }
 0x36c   : > { %v2719_v28 = vadd.f32 %v5776_v51, %v7174_v21  ;;  %v5778_v53 = vadd.f32 %v2553_v47, %v7151_v0 }
 0x36d   : > { %v2720_v48 = vadd.f32 %v5777_v37, %v7172_v20  ;;  %v2786_v18 = vmax.f32 %v2718_v22, 0.0 }
 0x36e   : > { %v2721_v61 = vadd.f32 %v5778_v53, %v7174_v21  ;;  %v2787_v56 = vmax.f32 %v2719_v28, 0.0  ;;  %v6221_v53 = vld [vmem:[%s8029_s3 + $0x88] sm:$0xff]  }
 0x36f   : > { %v2788_v54 = vmax.f32 %v2720_v48, 0.0 }
 0x370   : > { %v2789_v35 = vmax.f32 %v2721_v61, 0.0  ;;  %v2557_v49 = vpop.f32.mrb[56].mxu0 }
 0x371   : > { %v5779_v62 = vadd.f32 %v2557_v49, %v7153_v1  ;;  %v2559_v39 = vpop.f32.mrb[57].mxu0  ;;  %v7362_v29 = vpack.c.bf16 %v2788_v54, %v2786_v18  ;;  %v8040_v49 = vmov 0  }
 0x372   : > { %v7364_v63 = vpack.c.bf16 %v2789_v35, %v2787_v56  ;;  %v5780_v57 = vadd.f32 %v2559_v39, %v7155_v3  ;;  %v2561_v6 = vpop.f32.mrb[58].mxu0  ;;  %v6222_v56 = vld [vmem:[%s8029_s3 + $0x90] sm:$0xff]  }
 0x373   : > { %v2722_v0 = vadd.f32 %v5779_v62, %v7172_v20  ;;  %v5781_v58 = vadd.f32 %v2561_v6, %v7157_v4  ;;  %v2563_v44 = vpop.f32.mrb[59].mxu0 }
 0x374   : > { %v2723_v11 = vadd.f32 %v5780_v57, %v7174_v21  ;;  %v5782_v40 = vadd.f32 %v2563_v44, %v7159_v5  ;;  %5158 = vmatprep.mubr.msk.bf16.mxu1 %vm2922_vm4, %v7364_v63 }
 0x375   : > { %v2724_v1 = vadd.f32 %v5781_v58, %v7172_v20  ;;  %3029 = vmatmul.mubr.bf16.gmra.mrb[56].mxu1 %v7362_v29  ;;  %v2790_v3 = vmax.f32 %v2722_v0, 0.0 }
 0x376   : > { %v2725_v31 = vadd.f32 %v5782_v40, %v7174_v21  ;;  %5168 = vmatprep.mubr.msk.bf16.mxu1 %vm2922_vm4, %v7190_v10  ;;  %v2791_v4 = vmax.f32 %v2723_v11, 0.0  ;;  %v6223_v11 = vld [vmem:[%s8029_s3 + $0x98] sm:$0xff]  }
 0x377   : > { %v2792_v59 = vmax.f32 %v2724_v1, 0.0 }
 0x378   : > { %v2793_v46 = vmax.f32 %v2725_v31, 0.0  ;;  %v2567_v51 = vpop.f32.mrb[60].mxu0 }
 0x379   : > { %v5783_v38 = vadd.f32 %v2567_v51, %v7161_v7  ;;  %v2569_v5 = vpop.f32.mrb[61].mxu0  ;;  %v7379_v22 = vpack.c.bf16 %v2792_v59, %v2790_v3 }
 0x37a   : > { %v7381_v37 = vpack.c.bf16 %v2793_v46, %v2791_v4  ;;  %v5784_v47 = vadd.f32 %v2569_v5, %v7163_v9  ;;  %v2571_v28 = vpop.f32.mrb[62].mxu0  ;;  %v6226_v5 = vld [vmem:[%s8029_s3 + $0xb0] sm:$0xff]  }
 0x37b   : > { %v2726_v10 = vadd.f32 %v5783_v38, %v7172_v20  ;;  %v5785_v48 = vadd.f32 %v2571_v28, %v7168_v13  ;;  %v2573_v61 = vpop.f32.mrb[63].mxu0  ;;  %v6228_v28 = vld [vmem:[%s8029_s3 + $0xc0] sm:$0xff]  }
 0x37c   : > { %v2727_v18 = vadd.f32 %v5784_v47, %v7174_v21  ;;  %v5786_v7 = vadd.f32 %v2573_v61, %v7170_v19  ;;  %v6227_v47 = vld [vmem:[%s8029_s3 + $0xb8] sm:$0xff]  }
 0x37d   : > { %v2728_v54 = vadd.f32 %v5785_v48, %v7172_v20  ;;  %3145 = vmatmul.mubr.bf16.vlgmr.msra.gmra.mrb[60].mxu1 %v7188_v52  ;;  %v2794_v13 = vmax.f32 %v2726_v10, 0.0  ;;  %v6230_v48 = vld [vmem:[%s8029_s3 + $0xcc] sm:$0xff]   ;;  %v6231_v61 = vld [vmem:[%s8029_s3 + $0xd4] sm:$0xff]  }
 0x37e   : > { %v2729_v9 = vadd.f32 %v5786_v7, %v7174_v21  ;;  %5169 = vmatprep.mubr.msk.bf16.mxu1 %vm2922_vm4, %v7210_v16  ;;  %3277 = vmatpush1.bf16.msra.mxu1 %v6221_v53  ;;  %v2795_v62 = vmax.f32 %v2727_v18, 0.0  ;;  %v6229_v53 = vld [vmem:[%s8029_s3 + $0xc8] ss:$0 sps:$4 sm:$0xff]   ;;  %v6234_v18 = vld [vmem:[%s8029_s3 + $0xec] sm:$0xff]   ;;  %v6235_v7 = vld [vmem:[%s8029_s3 + $0xf4] sm:$0xff]  }
 0x37f   : > { %v2796_v35 = vmax.f32 %v2728_v54, 0.0  ;;  %3278 = vmatprep.subr.bf16.mxu1 %v8040_v49  ;;  %v3274_v10 = vsel %vm2944_vm3, %v6229_v53, 0  ;;  %v6236_v54 = vld [vmem:[%s8029_s3 + $0xfc] sm:$0xff]  }
 0x380   : > { %v2797_v19 = vmax.f32 %v2729_v9, 0.0  ;;  %v2577_v39 = vpop.f32.mrb[64].mxu0  ;;  %v6237_v9 = vld [vmem:[%s8029_s3 + $0x104] sm:$0xff]  }
 0x381   : > { %v5787_v57 = vadd.f32 %v2577_v39, %v7176_v23  ;;  %v2579_v52 = vpop.f32.mrb[65].mxu0  ;;  %v7401_v6 = vpack.c.bf16 %v2796_v35, %v2794_v13 }
 0x382   : > { %v7403_v0 = vpack.c.bf16 %v2797_v19, %v2795_v62  ;;  %v5788_v58 = vadd.f32 %v2579_v52, %v7179_v26  ;;  %v2581_v44 = vpop.f32.mrb[66].mxu0  ;;  %3279 = vmatpush1.bf16.msra.mxu1 %v6222_v56  ;;  %v6238_v56 = vld [vmem:[%s8029_s3 + $0x10c] ss:$0 sps:$4 sm:$0xff]   ;;  %v6240_v52 = vld [vmem:[%s8029_s3 + $0x118] sm:$0xff]  }
 0x383   : > { %v2730_v40 = vadd.f32 %v5787_v57, %v7172_v20  ;;  %v5789_v1 = vadd.f32 %v2581_v44, %v7182_v30  ;;  %v2583_v31 = vpop.f32.mrb[67].mxu0  ;;  %3280 = vmatprep.subr.bf16.mxu1 %v8040_v49  ;;  %v6224_v30 = vld [vmem:[%s8029_s3 + $0xa0] sm:$0xff]   ;;  %v3452_v13 = vsel %vm2944_vm3, %v6238_v56, 0  ;;  %v6239_v57 = vld [vmem:[%s8029_s3 + $0x110] sm:$0xff]  }
 0x384   : > { %v2731_v23 = vadd.f32 %v5788_v58, %v7174_v21  ;;  %v5790_v3 = vadd.f32 %v2583_v31, %v7185_v33  ;;  %v8041_v58 = vld [vmem:[#allocation4_spill] sm:$0xff] }
 0x385   : > { %v2732_v59 = vadd.f32 %v5789_v1, %v7172_v20  ;;  %3153 = vmatmul.mubr.bf16.gmra.mrb[64].mxu1 %v7208_v15  ;;  %v2798_v4 = vmax.f32 %v2730_v40, 0.0  ;;  %v8042_v1 = vld [vmem:[#allocation3_spill] sm:$0xff]  ;;  %v6244_v31 = vld [vmem:[%s8029_s3 + $0x138] sm:$0xff]  }
 0x386   : > { %v2733_v26 = vadd.f32 %v5790_v3, %v7174_v21  ;;  %5170 = vmatprep.mubr.msk.bf16.mxu1 %vm2922_vm4, %v7245_v42  ;;  %3281 = vmatpush1.bf16.msra.mxu1 %v6223_v11  ;;  %v2799_v51 = vmax.f32 %v2731_v23, 0.0  ;;  %v6225_v21 = vld [vmem:[%s8029_s3 + $0xa8] sm:$0xff]   ;;  %v6245_v23 = vld [vmem:[%s8029_s3 + $0x140] sm:$0xff]  }
 0x387   : > { %v2800_v46 = vmax.f32 %v2732_v59, 0.0  ;;  %3282 = vmatprep.subr.bf16.mxu1 %v8040_v49 }
 0x388   : > { %v2801_v33 = vmax.f32 %v2733_v26, 0.0  ;;  %v6247_v26 = vld [vmem:[%s8029_s3 + $0x150] ss:$0 sps:$4 sm:$0xff]  }
 0x389   : > { %v7423_v38 = vpack.c.bf16 %v2800_v46, %v2798_v4 }
 0x38a   : > { %v7425_v20 = vpack.c.bf16 %v2801_v33, %v2799_v51  ;;  %3283 = vmatpush1.bf16.msra.mxu1 %v6224_v30 }
 0x38b   : > { %3284 = vmatprep.subr.bf16.mxu1 %v8040_v49 }
 0x38d   : > { %3161 = vmatmul.mubr.bf16.gmra.mrb[68].mxu1 %v7243_v41 }
 0x38e   : > { %5171 = vmatprep.mubr.msk.bf16.mxu1 %vm2922_vm4, %v7278_v34  ;;  %3285 = vmatpush1.bf16.msra.mxu1 %v6225_v21 }
 0x38f   : > { %3286 = vmatprep.subr.bf16.mxu1 %v8040_v49 }
 0x392   : > { %3287 = vmatpush1.bf16.msra.mxu1 %v6226_v5  ;;  %v6248_v5 = vld [vmem:[%s8031_s5 + $0x38] sm:$0xff]  }
 0x393   : > { %3288 = vmatprep.subr.bf16.mxu1 %v8040_v49 }
 0x395   : > { %3169 = vmatmul.mubr.bf16.gmra.mrb[72].mxu1 %v7276_v32 }
 0x396   : > { %5172 = vmatprep.mubr.msk.bf16.mxu1 %vm2922_vm4, %v7297_v2  ;;  %3289 = vmatpush1.bf16.msra.mxu1 %v6227_v47  ;;  %v6346_v47 = vmov 0.0  }
 0x397   : > { %3290 = vmatprep.subr.bf16.mxu1 %v8040_v49 }
 0x39a   : > { %3291 = vmatpush1.bf16.msra.mxu1 %v6228_v28 }
 0x39b   : > { %3292 = vmatprep.subr.bf16.mxu1 %v8040_v49 }
 0x39d   : > { %3177 = vmatmul.mubr.bf16.gmra.mrb[76].mxu1 %v7295_v8 }
 0x39e   : > { %5173 = vmatprep.mubr.msk.bf16.mxu1 %vm2922_vm4, %v7325_v50  ;;  %3293 = vmatpush1.bf16.msra.mxu1 %v3274_v10 }
 0x39f   : > { %3454 = vmatprep.subr.bf16.mxu1 %v8040_v49 }
 0x3a5   : > { %3185 = vmatmul.mubr.bf16.gmra.mrb[80].mxu1 %v7323_v43 }
 0x3a6   : > { %5174 = vmatprep.mubr.msk.bf16.mxu1 %vm2922_vm4, %v7352_v60 }
 0x3ad   : > { %3193 = vmatmul.mubr.bf16.gmra.mrb[84].mxu1 %v7350_v12 }
 0x3ae   : > { %5201 = vmatprep.mubr.msk.bf16.mxu1 %vm2922_vm4, %v7210_v16  ;;  %v6232_v16 = vld [vmem:[%s8029_s3 + $0xdc] sm:$0xff]  }
 0x3b5   : > { %3309 = vmatmul.mubr.bf16.vlgmr.msra.gmra.mrb[88].mxu1 %v7208_v15  ;;  %v6233_v15 = vld [vmem:[%s8029_s3 + $0xe4] sm:$0xff]  }
 0x3b6   : > { %5202 = vmatprep.mubr.msk.bf16.mxu1 %vm2922_vm4, %v7245_v42  ;;  %3455 = vmatpush1.bf16.msra.mxu1 %v6230_v48 }
 0x3b7   : > { %3456 = vmatprep.subr.bf16.mxu1 %v8040_v49 }
 0x3ba   : > { %3457 = vmatpush1.bf16.msra.mxu1 %v6231_v61  ;;  %v6249_v61 = vld [vmem:[%s8031_s5 + $0x40] sm:$0xff]  }
 0x3bb   : > { %3458 = vmatprep.subr.bf16.mxu1 %v8040_v49 }
 0x3bd   : > { %3317 = vmatmul.mubr.bf16.gmra.mrb[92].mxu1 %v7243_v41 }
 0x3be   : > { %5203 = vmatprep.mubr.msk.bf16.mxu1 %vm2922_vm4, %v7278_v34  ;;  %3459 = vmatpush1.bf16.msra.mxu1 %v6232_v16 }
 0x3bf   : > { %3460 = vmatprep.subr.bf16.mxu1 %v8040_v49 }
 0x3c2   : > { %3461 = vmatpush1.bf16.msra.mxu1 %v6233_v15 }
 0x3c3   : > { %3462 = vmatprep.subr.bf16.mxu1 %v8040_v49 }
 0x3c5   : > { %3325 = vmatmul.mubr.bf16.gmra.mrb[96].mxu1 %v7276_v32 }
 0x3c6   : > { %5204 = vmatprep.mubr.msk.bf16.mxu1 %vm2922_vm4, %v7297_v2  ;;  %3463 = vmatpush1.bf16.msra.mxu1 %v6234_v18 }
 0x3c7   : > { %3464 = vmatprep.subr.bf16.mxu1 %v8040_v49 }
 0x3ca   : > { %3465 = vmatpush1.bf16.msra.mxu1 %v6235_v7 }
 0x3cb   : > { %3466 = vmatprep.subr.bf16.mxu1 %v8040_v49 }
 0x3cd   : > { %3333 = vmatmul.mubr.bf16.gmra.mrb[100].mxu1 %v7295_v8 }
 0x3ce   : > { %5205 = vmatprep.mubr.msk.bf16.mxu1 %vm2922_vm4, %v7325_v50  ;;  %3467 = vmatpush1.bf16.msra.mxu1 %v6236_v54 }
 0x3cf   : > { %3468 = vmatprep.subr.bf16.mxu1 %v8040_v49 }
 0x3d2   : > { %3469 = vmatpush1.bf16.msra.mxu1 %v6237_v9  ;;  %v6250_v9 = vld [vmem:[%s8031_s5 + $0x48] sm:$0xff]  }
 0x3d3   : > { %3470 = vmatprep.subr.bf16.mxu1 %v8040_v49 }
 0x3d5   : > { %3341 = vmatmul.mubr.bf16.gmra.mrb[104].mxu1 %v7323_v43 }
 0x3d6   : > { %5206 = vmatprep.mubr.msk.bf16.mxu1 %vm2922_vm4, %v7352_v60  ;;  %3471 = vmatpush1.bf16.msra.mxu1 %v3452_v13 }
 0x3d7   : > { %3632 = vmatprep.subr.bf16.mxu1 %v8040_v49 }
 0x3dd   : > { %3349 = vmatmul.mubr.bf16.gmra.mrb[108].mxu1 %v7350_v12 }
 0x3de   : > { %5207 = vmatprep.mubr.msk.bf16.mxu1 %vm2922_vm4, %v7381_v37 }
 0x3e5   : > { %3357 = vmatmul.mubr.bf16.gmra.mrb[112].mxu1 %v7379_v22 }
 0x3e6   : > { %v7520_v35 = vpop.f32.mrb[32].mxu1  ;;  %5234 = vmatprep.mubr.msk.bf16.mxu1 %vm2922_vm4, %v7226_v27  ;;  %v6241_v27 = vld [vmem:[%s8029_s3 + $0x120] sm:$0xff]  }
 0x3e7   : > { %v2984_v62 = vpop.f32.mrb[33].mxu1 }
 0x3e8   : > { %v7524_v19 = vpop.f32.mrb[34].mxu1 }
 0x3e9   : > { %v2987_v39 = vpop.f32.mrb[35].mxu1 }
 0x3ed   : > { %3487 = vmatmul.mubr.bf16.vlgmr.msra.gmra.mrb[116].mxu1 %v7224_v25 }
 0x3ee   : > { %5235 = vmatprep.mubr.msk.bf16.mxu1 %vm2922_vm4, %v7264_v17  ;;  %3633 = vmatpush1.bf16.msra.mxu1 %v6239_v57  ;;  %v6242_v17 = vld [vmem:[%s8029_s3 + $0x128] sm:$0xff]   ;;  %v6251_v57 = vld [vmem:[%s8031_s5 + $0x50] sm:$0xff]  }
 0x3ef   : > { %3634 = vmatprep.subr.bf16.mxu1 %v8040_v49 }
 0x3f2   : > { %3635 = vmatpush1.bf16.msra.mxu1 %v6240_v52 }
 0x3f3   : > { %3636 = vmatprep.subr.bf16.mxu1 %v8040_v49 }
 0x3f5   : > { %3495 = vmatmul.mubr.bf16.gmra.mrb[120].mxu1 %v7262_v14  ;;  %v6243_v14 = vld [vmem:[%s8029_s3 + $0x130] sm:$0xff]  }
 0x3f6   : > { %v7541_v25 = vpop.f32.mrb[36].mxu1  ;;  %5236 = vmatprep.mubr.msk.bf16.mxu1 %vm2922_vm4, %v8041_v58  ;;  %3637 = vmatpush1.bf16.msra.mxu1 %v6241_v27 }
 0x3f7   : > { %v2992_v44 = vpop.f32.mrb[37].mxu1  ;;  %3638 = vmatprep.subr.bf16.mxu1 %v8040_v49 }
 0x3f8   : > { %v7549_v11 = vpop.f32.mrb[38].mxu1 }
 0x3f9   : > { %v2995_v40 = vpop.f32.mrb[39].mxu1 }
 0x3fa   : > { %3639 = vmatpush1.bf16.msra.mxu1 %v6242_v17 }
 0x3fb   : > { %3640 = vmatprep.subr.bf16.mxu1 %v8040_v49 }
 0x3fd   : > { %3503 = vmatmul.mubr.bf16.gmra.mrb[124].mxu1 %v8042_v1 }
 0x3fe   : > { %5237 = vmatprep.mubr.msk.bf16.mxu1 %vm2922_vm4, %v7310_v45  ;;  %3641 = vmatpush1.bf16.msra.mxu1 %v6243_v14  ;;  %v6246_v45 = vld [vmem:[%s8029_s3 + $0x148] sm:$0xff]  }
 0x3ff   : > { %3642 = vmatprep.subr.bf16.mxu1 %v8040_v49 }
 0x402   : > { %3643 = vmatpush1.bf16.msra.mxu1 %v6244_v31 }
 0x403   : > { %3644 = vmatprep.subr.bf16.mxu1 %v8040_v49 }
 0x405   : > { %3511 = vmatmul.mubr.bf16.gmra.mrb[128].mxu1 %v7308_v24 }
 0x406   : > { %v7567_v3 = vpop.f32.mrb[40].mxu1  ;;  %5238 = vmatprep.mubr.msk.bf16.mxu1 %vm2922_vm4, %v7337_v55  ;;  %3645 = vmatpush1.bf16.msra.mxu1 %v6245_v23  ;;  %v3630_v55 = vsel %vm2944_vm3, %v6247_v26, 0 }
 0x407   : > { %v3000_v59 = vpop.f32.mrb[41].mxu1  ;;  %3646 = vmatprep.subr.bf16.mxu1 %v8040_v49 }
 0x408   : > { %v7578_v30 = vpop.f32.mrb[42].mxu1 }
 0x409   : > { %v3003_v24 = vpop.f32.mrb[43].mxu1 }
 0x40a   : > { %3647 = vmatpush1.bf16.msra.mxu1 %v6246_v45 }
 0x40b   : > { %3648 = vmatprep.subr.bf16.mxu1 %v8040_v49 }
 0x40d   : > { %3519 = vmatmul.mubr.bf16.gmra.mrb[132].mxu1 %v7335_v36 }
 0x40e   : > { %5239 = vmatprep.mubr.msk.bf16.mxu1 %vm2922_vm4, %v7364_v63  ;;  %3649 = vmatpush1.bf16.msra.mxu1 %v3630_v55 }
 0x40f   : > { %5565 = vmatprep.subr.bf16.mxu1 %v6346_v47 }
 0x415   : > { %3527 = vmatmul.mubr.bf16.gmra.mrb[136].mxu1 %v7362_v29 }
 0x416   : > { %v3006_v4 = vpop.f32.mrb[44].mxu1  ;;  %5240 = vmatprep.mubr.msk.bf16.mxu1 %vm2922_vm4, %v7403_v0 }
 0x417   : > { %v3008_v46 = vpop.f32.mrb[45].mxu1 }
 0x418   : > { %v3009_v51 = vpop.f32.mrb[46].mxu1  ;;  %v6254_v46 = vld [vmem:[%s8031_s5 + $0x68] sm:$0xff]  }
 0x419   : > { %v3011_v33 = vpop.f32.mrb[47].mxu1 }
 0x41d   : > { %3535 = vmatmul.mubr.bf16.gmra.mrb[140].mxu1 %v7401_v6 }
 0x41e   : > { %5267 = vmatprep.mubr.msk.bf16.mxu1 %vm2922_vm4, %v7245_v42 }
 0x425   : > { %3665 = vmatmul.mubr.bf16.vlgmr.msra.gmra.mrb[144].mxu1 %v7243_v41 }
 0x426   : > { %5268 = vmatprep.mubr.msk.bf16.mxu1 %vm2922_vm4, %v7278_v34  ;;  %5566 = vmatpush3.bf16.msra.mxu1 %v6248_v5 }
 0x427   : > { %5567 = vmatprep.subr.bf16.mxu1 %v6346_v47 }
 0x428   : > { %v3014_v36 = vpop.f32.mrb[48].mxu1 }
 0x429   : > { %v3016_v63 = vpop.f32.mrb[49].mxu1 }
 0x42a   : > { %v7594_v29 = vpop.f32.mrb[50].mxu1  ;;  %5568 = vmatpush3.bf16.msra.mxu1 %v6249_v61 }
 0x42b   : > { %v3019_v49 = vpop.f32.mrb[51].mxu1  ;;  %5569 = vmatprep.subr.bf16.mxu1 %v6346_v47 }
 0x42d   : > { %3673 = vmatmul.mubr.bf16.gmra.mrb[148].mxu1 %v7276_v32 }
 0x42e   : > { %5269 = vmatprep.mubr.msk.bf16.mxu1 %vm2922_vm4, %v7297_v2  ;;  %5570 = vmatpush3.bf16.msra.mxu1 %v6250_v9 }
 0x42f   : > { %5571 = vmatprep.subr.bf16.mxu1 %v6346_v47 }
 0x432   : > { %5572 = vmatpush3.bf16.msra.mxu1 %v6251_v57 }
 0x433   : > { %5573 = vmatprep.subr.bf16.mxu1 %v6346_v47 }
 0x435   : > { %3681 = vmatmul.mubr.bf16.gmra.mrb[152].mxu1 %v7295_v8 }
 0x436   : > { %5270 = vmatprep.mubr.msk.bf16.mxu1 %vm2922_vm4, %v7325_v50 }
 0x438   : > { %v7602_v42 = vpop.f32.mrb[52].mxu1 }
 0x439   : > { %v3024_v41 = vpop.f32.mrb[53].mxu1 }
 0x43a   : > { %v7604_v6 = vpop.f32.mrb[54].mxu1 }
 0x43b   : > { %v3027_v34 = vpop.f32.mrb[55].mxu1 }
 0x43d   : > { %3689 = vmatmul.mubr.bf16.gmra.mrb[156].mxu1 %v7323_v43 }
 0x43e   : > { %5271 = vmatprep.mubr.msk.bf16.mxu1 %vm2922_vm4, %v7352_v60 }
 0x445   : > { %3697 = vmatmul.mubr.bf16.gmra.mrb[160].mxu1 %v7350_v12 }
 0x446   : > { %5272 = vmatprep.mubr.msk.bf16.mxu1 %vm2922_vm4, %v7381_v37 }
 0x448   : > { %v3030_v32 = vpop.f32.mrb[56].mxu1 }
 0x449   : > { %v3032_v8 = vpop.f32.mrb[57].mxu1 }
 0x44a   : > { %v7612_v2 = vpop.f32.mrb[58].mxu1 }
 0x44b   : > { %v3035_v50 = vpop.f32.mrb[59].mxu1 }
 0x44d   : > { %3705 = vmatmul.mubr.bf16.gmra.mrb[164].mxu1 %v7379_v22 }
 0x44e   : > { %5273 = vmatprep.mubr.msk.bf16.mxu1 %vm2922_vm4, %v7425_v20 }
 0x450   : > { %v3146_v0 = vpop.f32.mrb[60].mxu1 }
 0x451   : > { %v7618_v43 = vadd.f32 %v3146_v0, %v7520_v35  ;;  %v3148_v60 = vpop.f32.mrb[61].mxu1 }
 0x452   : > { %v3149_v21 = vpop.f32.mrb[62].mxu1 }
 0x453   : > { %v7621_v12 = vadd.f32 %v3149_v21, %v7524_v19  ;;  %v3151_v37 = vpop.f32.mrb[63].mxu1 }
 0x455   : > { %3713 = vmatmul.mubr.bf16.gmra.mrb[168].mxu1 %v7423_v38 }
 0x456   : > { %5579 = vmatprep.mubr.msk.bf16.mxu1 %vm6347_vm5, %v6346_v47 }
 0x458   : > { %v3154_v22 = vpop.f32.mrb[64].mxu1 }
 0x459   : > { %v3155_v20 = vadd.f32 %v3154_v22, %v7541_v25  ;;  %v3156_v28 = vpop.f32.mrb[65].mxu1 }
 0x45a   : > { %v3157_v53 = vpop.f32.mrb[66].mxu1 }
 0x45b   : > { %v3158_v10 = vadd.f32 %v3157_v53, %v7549_v11  ;;  %v3159_v48 = vpop.f32.mrb[67].mxu1  ;;  %v6252_v11 = vld [vmem:[%s8031_s5 + $0x58] sm:$0xff]  }
 0x45c   : > { %5574 = vmatpush3.bf16.msra.mxu1 %v6252_v11 }
 0x45d   : > { %5575 = vmatprep.subr.bf16.mxu1 %v6346_v47 }
 0x460   : > { %v3162_v16 = vpop.f32.mrb[68].mxu1 }
 0x461   : > { %v3163_v38 = vadd.f32 %v3162_v16, %v7567_v3  ;;  %v3164_v15 = vpop.f32.mrb[69].mxu1 }
 0x462   : > { %v3165_v18 = vpop.f32.mrb[70].mxu1 }
 0x463   : > { %v3166_v7 = vadd.f32 %v3165_v18, %v7578_v30  ;;  %v3167_v54 = vpop.f32.mrb[71].mxu1  ;;  %v6253_v30 = vld [vmem:[%s8031_s5 + $0x60] sm:$0xff]  }
 0x464   : > { %5576 = vmatpush3.bf16.msra.mxu1 %v6253_v30 }
 0x465   : > { %5577 = vmatprep.subr.bf16.mxu1 %v6346_v47 }
 0x468   : > { %v3170_v56 = vpop.f32.mrb[72].mxu1  ;;  %5578 = vmatpush3.bf16.msra.mxu1 %v6254_v46 }
 0x469   : > { %v3171_v13 = vadd.f32 %v3170_v56, %v3006_v4  ;;  %v3172_v35 = vpop.f32.mrb[73].mxu1  ;;  %5583 = vmatprep.subr.bf16.mxu1 %v6346_v47 }
 0x46a   : > { %v3173_v62 = vpop.f32.mrb[74].mxu1 }
 0x46b   : > { %v3174_v19 = vadd.f32 %v3173_v62, %v3009_v51  ;;  %v3175_v39 = vpop.f32.mrb[75].mxu1 }
 0x470   : > { %v3178_v52 = vpop.f32.mrb[76].mxu1 }
 0x471   : > { %v3179_v27 = vadd.f32 %v3178_v52, %v3014_v36  ;;  %v3180_v25 = vpop.f32.mrb[77].mxu1 }
 0x472   : > { %v3181_v58 = vpop.f32.mrb[78].mxu1 }
 0x473   : > { %v3182_v17 = vadd.f32 %v3181_v58, %v7594_v29  ;;  %v3183_v44 = vpop.f32.mrb[79].mxu1 }
 0x478   : > { %v3186_v40 = vpop.f32.mrb[80].mxu1 }
 0x479   : > { %v3187_v14 = vadd.f32 %v3186_v40, %v7602_v42  ;;  %v3188_v1 = vpop.f32.mrb[81].mxu1 }
 0x47a   : > { %v3189_v31 = vpop.f32.mrb[82].mxu1 }
 0x47b   : > { %v3190_v23 = vadd.f32 %v3189_v31, %v7604_v6  ;;  %v3191_v3 = vpop.f32.mrb[83].mxu1 }
 0x480   : > { %v3194_v45 = vpop.f32.mrb[84].mxu1 }
 0x481   : > { %v3195_v59 = vadd.f32 %v3194_v45, %v3030_v32  ;;  %v3196_v26 = vpop.f32.mrb[85].mxu1 }
 0x482   : > { %v3197_v24 = vpop.f32.mrb[86].mxu1 }
 0x483   : > { %v3198_v55 = vadd.f32 %v3197_v24, %v7612_v2  ;;  %v3199_v4 = vpop.f32.mrb[87].mxu1 }
 0x488   : > { %v3310_v51 = vpop.f32.mrb[88].mxu1 }
 0x489   : > { %v3365_v33 = vadd.f32 %v3310_v51, %v7618_v43  ;;  %v3312_v36 = vpop.f32.mrb[89].mxu1 }
 0x48a   : > { %v3313_v63 = vpop.f32.mrb[90].mxu1 }
 0x48b   : > { %v3366_v29 = vadd.f32 %v3313_v63, %v7621_v12  ;;  %v3315_v49 = vpop.f32.mrb[91].mxu1 }
 0x490   : > { %v3318_v42 = vpop.f32.mrb[92].mxu1 }
 0x491   : > { %v3367_v41 = vadd.f32 %v3318_v42, %v3155_v20  ;;  %v3320_v6 = vpop.f32.mrb[93].mxu1 }
 0x492   : > { %v3321_v34 = vpop.f32.mrb[94].mxu1 }
 0x493   : > { %v3368_v32 = vadd.f32 %v3321_v34, %v3158_v10  ;;  %v3323_v8 = vpop.f32.mrb[95].mxu1 }
 0x498   : > { %v3326_v2 = vpop.f32.mrb[96].mxu1 }
 0x499   : > { %v3369_v50 = vadd.f32 %v3326_v2, %v3163_v38  ;;  %v3328_v0 = vpop.f32.mrb[97].mxu1 }
 0x49a   : > { %v3329_v60 = vpop.f32.mrb[98].mxu1 }
 0x49b   : > { %v3370_v43 = vadd.f32 %v3329_v60, %v3166_v7  ;;  %v3331_v21 = vpop.f32.mrb[99].mxu1 }
 0x4a0   : > { %v3334_v37 = vpop.f32.mrb[100].mxu1 }
 0x4a1   : > { %v3371_v5 = vadd.f32 %v3334_v37, %v3171_v13  ;;  %v3336_v22 = vpop.f32.mrb[101].mxu1 }
 0x4a2   : > { %v3337_v28 = vpop.f32.mrb[102].mxu1 }
 0x4a3   : > { %v3372_v53 = vadd.f32 %v3337_v28, %v3174_v19  ;;  %v3339_v48 = vpop.f32.mrb[103].mxu1 }
 0x4a8   : > { %v3342_v12 = vpop.f32.mrb[104].mxu1 }
 0x4a9   : > { %v3373_v61 = vadd.f32 %v3342_v12, %v3179_v27  ;;  %v3344_v16 = vpop.f32.mrb[105].mxu1 }
 0x4aa   : > { %v3345_v20 = vpop.f32.mrb[106].mxu1 }
 0x4ab   : > { %v3374_v15 = vadd.f32 %v3345_v20, %v3182_v17  ;;  %v3347_v18 = vpop.f32.mrb[107].mxu1 }
 0x4b0   : > { %v3350_v10 = vpop.f32.mrb[108].mxu1 }
 0x4b1   : > { %v3375_v54 = vadd.f32 %v3350_v10, %v3187_v14  ;;  %v3352_v9 = vpop.f32.mrb[109].mxu1 }
 0x4b2   : > { %v3353_v38 = vpop.f32.mrb[110].mxu1 }
 0x4b3   : > { %v3376_v56 = vadd.f32 %v3353_v38, %v3190_v23  ;;  %v3355_v35 = vpop.f32.mrb[111].mxu1 }
 0x4b8   : > { %v3358_v7 = vpop.f32.mrb[112].mxu1 }
 0x4b9   : > { %v3377_v62 = vadd.f32 %v3358_v7, %v3195_v59  ;;  %v3360_v39 = vpop.f32.mrb[113].mxu1 }
 0x4ba   : > { %v3361_v13 = vpop.f32.mrb[114].mxu1 }
 0x4bb   : > { %v3378_v57 = vadd.f32 %v3361_v13, %v3198_v55  ;;  %v3363_v52 = vpop.f32.mrb[115].mxu1 }
 0x4c0   : > { %v3488_v19 = vpop.f32.mrb[116].mxu1 }
 0x4c1   : > { %v3543_v25 = vadd.f32 %v3488_v19, %v3365_v33  ;;  %v3490_v58 = vpop.f32.mrb[117].mxu1 }
 0x4c2   : > { %v3491_v27 = vpop.f32.mrb[118].mxu1  ;;  %v6255_v58 = vld [vmem:[%s8031_s5] sm:$0xff]  }
 0x4c3   : > { %v3544_v44 = vadd.f32 %v3491_v27, %v3366_v29  ;;  %v3493_v11 = vpop.f32.mrb[119].mxu1 }
 0x4c8   : > { %v3496_v17 = vpop.f32.mrb[120].mxu1 }
 0x4c9   : > { %v3545_v40 = vadd.f32 %v3496_v17, %v3367_v41  ;;  %v3498_v1 = vpop.f32.mrb[121].mxu1 }
 0x4ca   : > { %v3499_v14 = vpop.f32.mrb[122].mxu1 }
 0x4cb   : > { %v3546_v31 = vadd.f32 %v3499_v14, %v3368_v32  ;;  %v3501_v3 = vpop.f32.mrb[123].mxu1 }
 0x4d0   : > { %v3504_v23 = vpop.f32.mrb[124].mxu1 }
 0x4d1   : > { %v3547_v45 = vadd.f32 %v3504_v23, %v3369_v50  ;;  %v3506_v26 = vpop.f32.mrb[125].mxu1 }
 0x4d2   : > { %v3507_v59 = vpop.f32.mrb[126].mxu1 }
 0x4d3   : > { %v3548_v30 = vadd.f32 %v3507_v59, %v3370_v43  ;;  %v3509_v24 = vpop.f32.mrb[127].mxu1  ;;  %v6257_v59 = vld [vmem:[%s8031_s5 + $0x10] sm:$0xff]  }
 0x4d8   : > { %v3512_v55 = vpop.f32.mrb[128].mxu1 }
 0x4d9   : > { %v7665_v4 = vadd.f32 %v3512_v55, %v3371_v5  ;;  %v3514_v46 = vpop.f32.mrb[129].mxu1 }
 0x4da   : > { %v3515_v51 = vpop.f32.mrb[130].mxu1 }
 0x4db   : > { %v7667_v33 = vadd.f32 %v3515_v51, %v3372_v53  ;;  %v3517_v36 = vpop.f32.mrb[131].mxu1  ;;  %v7684_v53 = vld [vmem:[%s8030_s4] ss:$0 sm:$0xff] }
 0x4e0   : > { %v3520_v63 = vpop.f32.mrb[132].mxu1 }
 0x4e1   : > { %v7669_v29 = vadd.f32 %v3520_v63, %v3373_v61  ;;  %v3522_v49 = vpop.f32.mrb[133].mxu1 }
 0x4e2   : > { %v3523_v42 = vpop.f32.mrb[134].mxu1  ;;  %v6258_v49 = vld [vmem:[%s8031_s5 + $0x18] sm:$0xff]  }
 0x4e3   : > { %v7671_v41 = vadd.f32 %v3523_v42, %v3374_v15  ;;  %v3525_v6 = vpop.f32.mrb[135].mxu1 }
 0x4e8   : > { %v3528_v34 = vpop.f32.mrb[136].mxu1 }
 0x4e9   : > { %v7673_v32 = vadd.f32 %v3528_v34, %v3375_v54  ;;  %v3530_v8 = vpop.f32.mrb[137].mxu1 }
 0x4ea   : > { %v3531_v2 = vpop.f32.mrb[138].mxu1  ;;  %v6259_v8 = vld [vmem:[%s8031_s5 + $0x20] sm:$0xff]  }
 0x4eb   : > { %v7675_v50 = vadd.f32 %v3531_v2, %v3376_v56  ;;  %v3533_v0 = vpop.f32.mrb[139].mxu1 }
 0x4f0   : > { %v3536_v60 = vpop.f32.mrb[140].mxu1 }
 0x4f1   : > { %v7677_v43 = vadd.f32 %v3536_v60, %v3377_v62  ;;  %v3538_v21 = vpop.f32.mrb[141].mxu1 }
 0x4f2   : > { %v3539_v37 = vpop.f32.mrb[142].mxu1 }
 0x4f3   : > { %v7679_v5 = vadd.f32 %v3539_v37, %v3378_v57  ;;  %v3541_v22 = vpop.f32.mrb[143].mxu1 }
 0x4f8   : > { %v3666_v28 = vpop.f32.mrb[144].mxu1 }
 0x4f9   : > { %v3721_v48 = vadd.f32 %v3666_v28, %v3543_v25  ;;  %v3668_v12 = vpop.f32.mrb[145].mxu1  ;;  %v6260_v28 = vld [vmem:[%s8031_s5 + $0x28] sm:$0xff]  }
 0x4fa   : > { %v3669_v61 = vpop.f32.mrb[146].mxu1 }
 0x4fb   : > { %v3742_v16 = vadd.f32 %v7684_v53, %v3721_v48  ;;  %v3722_v20 = vadd.f32 %v3669_v61, %v3544_v44  ;;  %v3671_v15 = vpop.f32.mrb[147].mxu1 }
 0x4fd   : > { %v3743_v18 = vadd.f32 %v7684_v53, %v3722_v20  ;;  %v3756_v10 = vmax.f32 %v3742_v16, 0.0  ;;  %v6261_v16 = vld [vmem:[%s8031_s5 + $0x30] sm:$0xff]  }
 0x4ff   : > { %v3757_v54 = vmax.f32 %v3743_v18, 0.0 }
 0x500   : > { %v3674_v9 = vpop.f32.mrb[148].mxu1 }
 0x501   : > { %v7688_v38 = vpack.c.bf16 %v3757_v54, %v3756_v10  ;;  %v3723_v56 = vadd.f32 %v3674_v9, %v3545_v40  ;;  %v3676_v35 = vpop.f32.mrb[149].mxu1 }
 0x502   : > { %v3677_v7 = vpop.f32.mrb[150].mxu1 }
 0x503   : > { %v3744_v62 = vadd.f32 %v7684_v53, %v3723_v56  ;;  %v3724_v39 = vadd.f32 %v3677_v7, %v3546_v31  ;;  %v3679_v13 = vpop.f32.mrb[151].mxu1  ;;  %v6256_v31 = vld [vmem:[%s8031_s5 + $0x8] sm:$0xff]   ;;  %v6262_v56 = vld [vmem:[%s8031_s5 + $0x70] sm:$0xff]  }
 0x505   : > { %v3745_v57 = vadd.f32 %v7684_v53, %v3724_v39  ;;  %v3758_v52 = vmax.f32 %v3744_v62, 0.0 }
 0x507   : > { %v3759_v19 = vmax.f32 %v3745_v57, 0.0 }
 0x508   : > { %v3682_v25 = vpop.f32.mrb[152].mxu1 }
 0x509   : > { %v3771_v27 = vpack.c.bf16 %v3759_v19, %v3758_v52  ;;  %v3725_v44 = vadd.f32 %v3682_v25, %v3547_v45  ;;  %v3684_v11 = vpop.f32.mrb[153].mxu1 }
 0x50a   : > { %v3685_v17 = vpop.f32.mrb[154].mxu1  ;;  %v6265_v11 = vld [vmem:[%s8031_s5 + $0x88] sm:$0xff]  }
 0x50b   : > { %v3746_v40 = vadd.f32 %v7684_v53, %v3725_v44  ;;  %v3726_v1 = vadd.f32 %v3685_v17, %v3548_v30  ;;  %v3687_v14 = vpop.f32.mrb[155].mxu1  ;;  %5580 = vmatmul.mubr.msk.bf16.vlgmr.msra.gmra.mrb[172].mxu1 %vm3848_vm6, %v3771_v27 }
 0x50c   : > { %5584 = vmatpush3.bf16.msra.mxu1 %v6255_v58  ;;  %5597 = vmatprep.mubr.msk.bf16.mxu1 %vm6347_vm5, %v6346_v47  ;;  %v6264_v58 = vld [vmem:[%s8031_s5 + $0x80] sm:$0xff]   ;;  %v6270_v14 = vld [vmem:[%s8031_s5 + $0xb0] sm:$0xff]  }
 0x50d   : > { %v3747_v3 = vadd.f32 %v7684_v53, %v3726_v1  ;;  %5585 = vmatprep.subr.bf16.mxu1 %v6346_v47  ;;  %v3760_v23 = vmax.f32 %v3746_v40, 0.0  ;;  %v6268_v40 = vld [vmem:[%s8031_s5 + $0xa0] sm:$0xff]   ;;  %v6269_v1 = vld [vmem:[%s8031_s5 + $0xa8] sm:$0xff]  }
 0x50f   : > { %v3761_v45 = vmax.f32 %v3747_v3, 0.0  ;;  %v6272_v3 = vld [vmem:[%s8031_s5 + $0xc0] sm:$0xff]  }
 0x510   : > { %5586 = vmatpush3.bf16.msra.mxu1 %v6256_v31  ;;  %v3690_v26 = vpop.f32.mrb[156].mxu1  ;;  %v6271_v31 = vld [vmem:[%s8031_s5 + $0xb8] sm:$0xff]  }
 0x511   : > { %v7707_v30 = vpack.c.bf16 %v3761_v45, %v3760_v23  ;;  %v3727_v24 = vadd.f32 %v3690_v26, %v7665_v4  ;;  %v3692_v55 = vpop.f32.mrb[157].mxu1  ;;  %5587 = vmatprep.subr.bf16.mxu1 %v6346_v47  ;;  %v6273_v23 = vld [vmem:[%s8031_s5 + $0xc8] sm:$0xff]   ;;  %v6274_v45 = vld [vmem:[%s8031_s5 + $0xd0] sm:$0xff]   ;;  %v6275_v26 = vld [vmem:[%s8031_s5 + $0xd8] sm:$0xff]  }
 0x512   : > { %v3693_v46 = vpop.f32.mrb[158].mxu1  ;;  %v6278_v55 = vld [vmem:[%s8031_s5 + $0xf0] sm:$0xff]  }
 0x513   : > { %v3748_v51 = vadd.f32 %v7684_v53, %v3727_v24  ;;  %v3728_v36 = vadd.f32 %v3693_v46, %v7667_v33  ;;  %v3695_v63 = vpop.f32.mrb[159].mxu1  ;;  %v6277_v24 = vld [vmem:[%s8031_s5 + $0xe8] sm:$0xff]   ;;  %v6279_v46 = vld [vmem:[%s8031_s5 + $0xf8] sm:$0xff]  }
 0x514   : > { %5588 = vmatpush3.bf16.msra.mxu1 %v6257_v59  ;;  %v6276_v59 = vld [vmem:[%s8031_s5 + $0xe0] sm:$0xff]   ;;  %v6282_v63 = vld [vmem:[%s8031_s5 + $0x110] sm:$0xff]  }
 0x515   : > { %v3749_v42 = vadd.f32 %v7684_v53, %v3728_v36  ;;  %5589 = vmatprep.subr.bf16.mxu1 %v6346_v47  ;;  %v3762_v6 = vmax.f32 %v3748_v51, 0.0  ;;  %v6280_v51 = vld [vmem:[%s8031_s5 + $0x100] sm:$0xff]   ;;  %v6281_v36 = vld [vmem:[%s8031_s5 + $0x108] sm:$0xff]  }
 0x517   : > { %v3763_v4 = vmax.f32 %v3749_v42, 0.0  ;;  %v6284_v42 = vld [vmem:[%s8031_s5 + $0x120] sm:$0xff]  }
 0x518   : > { %5590 = vmatpush3.bf16.msra.mxu1 %v6258_v49  ;;  %v3698_v34 = vpop.f32.mrb[160].mxu1  ;;  %v6283_v49 = vld [vmem:[%s8031_s5 + $0x118] sm:$0xff]  }
 0x519   : > { %v7721_v2 = vpack.c.bf16 %v3763_v4, %v3762_v6  ;;  %v3729_v33 = vadd.f32 %v3698_v34, %v7669_v29  ;;  %v3700_v0 = vpop.f32.mrb[161].mxu1  ;;  %5591 = vmatprep.subr.bf16.mxu1 %v6346_v47  ;;  %v6285_v6 = vld [vmem:[%s8031_s5 + $0x128] sm:$0xff]   ;;  %v6286_v4 = vld [vmem:[%s8031_s5 + $0x130] sm:$0xff]   ;;  %v6287_v34 = vld [vmem:[%s8031_s5 + $0x138] sm:$0xff]  }
 0x51a   : > { %v3701_v60 = vpop.f32.mrb[162].mxu1  ;;  %v6290_v0 = vld [vmem:[%s8031_s5 + $0x150] sm:$0xff]  }
 0x51b   : > { %v3750_v21 = vadd.f32 %v7684_v53, %v3729_v33  ;;  %v3730_v37 = vadd.f32 %v3701_v60, %v7671_v41  ;;  %v3703_v22 = vpop.f32.mrb[163].mxu1  ;;  %v6289_v33 = vld [vmem:[%s8031_s5 + $0x148] sm:$0xff]   ;;  %v6291_v60 = vld [vmem:[%s8031_s5 + $0x158] sm:$0xff]  }
 0x51c   : > { %5592 = vmatpush3.bf16.msra.mxu1 %v6259_v8  ;;  %v6288_v8 = vld [vmem:[%s8031_s5 + $0x140] sm:$0xff]   ;;  %v6295_v22 = vld [vmem:[%s8031_s5 + $0x178] sm:$0xff]  }
 0x51d   : > { %v3751_v48 = vadd.f32 %v7684_v53, %v3730_v37  ;;  %5593 = vmatprep.subr.bf16.mxu1 %v6346_v47  ;;  %v3764_v12 = vmax.f32 %v3750_v21, 0.0  ;;  %v6292_v21 = vld [vmem:[%s8031_s5 + $0x160] sm:$0xff]   ;;  %v6294_v37 = vld [vmem:[%s8031_s5 + $0x170] sm:$0xff]  }
 0x51f   : > { %v3765_v29 = vmax.f32 %v3751_v48, 0.0  ;;  %v6297_v48 = vld [vmem:[%s8031_s5 + $0x188] sm:$0xff]  }
 0x520   : > { %5594 = vmatpush3.bf16.msra.mxu1 %v6260_v28  ;;  %v3706_v61 = vpop.f32.mrb[164].mxu1  ;;  %v6296_v28 = vld [vmem:[%s8031_s5 + $0x180] sm:$0xff]  }
 0x521   : > { %v7735_v20 = vpack.c.bf16 %v3765_v29, %v3764_v12  ;;  %v3731_v41 = vadd.f32 %v3706_v61, %v7673_v32  ;;  %v3708_v15 = vpop.f32.mrb[165].mxu1  ;;  %5595 = vmatprep.subr.bf16.mxu1 %v6346_v47  ;;  %v6298_v12 = vld [vmem:[%s8031_s5 + $0x190] sm:$0xff]   ;;  %v6299_v29 = vld [vmem:[%s8031_s5 + $0x198] sm:$0xff]   ;;  %v6301_v61 = vld [vmem:[%s8031_s5 + $0x1a8] sm:$0xff]  }
 0x522   : > { %v3709_v18 = vpop.f32.mrb[166].mxu1  ;;  %v6304_v15 = vld [vmem:[%s8031_s5 + $0x1c0] sm:$0xff]  }
 0x523   : > { %v3752_v10 = vadd.f32 %v7684_v53, %v3731_v41  ;;  %v3732_v54 = vadd.f32 %v3709_v18, %v7675_v50  ;;  %v3711_v9 = vpop.f32.mrb[167].mxu1  ;;  %v6263_v50 = vld [vmem:[%s8031_s5 + $0x78] sm:$0xff]   ;;  %v6305_v18 = vld [vmem:[%s8031_s5 + $0x1c8] sm:$0xff]  }
 0x524   : > { %5596 = vmatpush3.bf16.msra.mxu1 %v6261_v16  ;;  %v6302_v16 = vld [vmem:[%s8031_s5 + $0x1b0] sm:$0xff]   ;;  %v6303_v41 = vld [vmem:[%s8031_s5 + $0x1b8] sm:$0xff]  }
 0x525   : > { %v3753_v35 = vadd.f32 %v7684_v53, %v3732_v54  ;;  %5601 = vmatprep.subr.bf16.mxu1 %v6346_v47  ;;  %v3766_v7 = vmax.f32 %v3752_v10, 0.0  ;;  %v6306_v10 = vld [vmem:[%s8031_s5 + $0x1d0] sm:$0xff]   ;;  %v6308_v54 = vld [vmem:[%s8031_s5 + $0x1e0] sm:$0xff]  }
 0x527   : > { %v3767_v32 = vmax.f32 %v3753_v35, 0.0  ;;  %5598 = vmatmul.mubr.msk.bf16.vlgmr.msra.gmra.mrb[176].mxu1 %vm3848_vm6, %v7688_v38 }
 0x528   : > { %5602 = vmatpush3.bf16.msra.mxu1 %v6262_v56  ;;  %v3714_v62 = vpop.f32.mrb[168].mxu1  ;;  %5615 = vmatprep.mubr.msk.bf16.mxu1 %vm6347_vm5, %v6346_v47 }
 0x529   : > { %v7753_v39 = vpack.c.bf16 %v3767_v32, %v3766_v7  ;;  %v3733_v13 = vadd.f32 %v3714_v62, %v7677_v43  ;;  %v3716_v57 = vpop.f32.mrb[169].mxu1  ;;  %5603 = vmatprep.subr.bf16.mxu1 %v6346_v47  ;;  %v6309_v7 = vld [vmem:[%s8031_s5 + $0x1e8] sm:$0xff]   ;;  %v6310_v62 = vld [vmem:[%s8031_s5 + $0x1f0] sm:$0xff]  }
 0x52a   : > { %v3717_v52 = vpop.f32.mrb[170].mxu1  ;;  %v6313_v57 = vld [vmem:[%s8031_s5 + $0x208] sm:$0xff]  }
 0x52b   : > { %v3754_v19 = vadd.f32 %v7684_v53, %v3733_v13  ;;  %v3734_v38 = vadd.f32 %v3717_v52, %v7679_v5  ;;  %v3719_v25 = vpop.f32.mrb[171].mxu1  ;;  %v6266_v5 = vld [vmem:[%s8031_s5 + $0x90] sm:$0xff]   ;;  %v6312_v13 = vld [vmem:[%s8031_s5 + $0x200] sm:$0xff]   ;;  %v6315_v52 = vld [vmem:[%s8031_s5 + $0x218] sm:$0xff]  }
 0x52c   : > { %5604 = vmatpush3.bf16.msra.mxu1 %v6263_v50  ;;  %v6311_v50 = vld [vmem:[%s8031_s5 + $0x1f8] sm:$0xff]  }
 0x52d   : > { %v3755_v27 = vadd.f32 %v7684_v53, %v3734_v38  ;;  %5605 = vmatprep.subr.bf16.mxu1 %v6346_v47  ;;  %v3768_v44 = vmax.f32 %v3754_v19, 0.0  ;;  %v6267_v53 = vld [vmem:[%s8031_s5 + $0x98] sm:$0xff]  }
 0x52f   : > { %v3769_v43 = vmax.f32 %v3755_v27, 0.0  ;;  %v6316_v27 = vld [vmem:[%s8031_s5 + $0x220] sm:$0xff]  }
 0x530   : > { %5606 = vmatpush3.bf16.msra.mxu1 %v6264_v58 }
 0x531   : > { %v7767_v17 = vpack.c.bf16 %v3769_v43, %v3768_v44  ;;  %5607 = vmatprep.subr.bf16.mxu1 %v6346_v47 }
 0x534   : > { %5608 = vmatpush3.bf16.msra.mxu1 %v6265_v11  ;;  %v6317_v11 = vld [vmem:[%s8031_s5 + $0x228] sm:$0xff]  }
 0x535   : > { %5609 = vmatprep.subr.bf16.mxu1 %v6346_v47 }
 0x538   : > { %5610 = vmatpush3.bf16.msra.mxu1 %v6266_v5 }
 0x539   : > { %5611 = vmatprep.subr.bf16.mxu1 %v6346_v47 }
 0x53c   : > { %5612 = vmatpush3.bf16.msra.mxu1 %v6267_v53 }
 0x53d   : > { %5613 = vmatprep.subr.bf16.mxu1 %v6346_v47 }
 0x540   : > { %5614 = vmatpush3.bf16.msra.mxu1 %v6268_v40 }
 0x541   : > { %5619 = vmatprep.subr.bf16.mxu1 %v6346_v47 }
 0x543   : > { %5616 = vmatmul.mubr.msk.bf16.vlgmr.msra.gmra.mrb[180].mxu1 %vm3848_vm6, %v7707_v30 }
 0x544   : > { %5620 = vmatpush3.bf16.msra.mxu1 %v6269_v1  ;;  %5633 = vmatprep.mubr.msk.bf16.mxu1 %vm6347_vm5, %v6346_v47 }
 0x545   : > { %5621 = vmatprep.subr.bf16.mxu1 %v6346_v47 }
 0x548   : > { %5622 = vmatpush3.bf16.msra.mxu1 %v6270_v14 }
 0x549   : > { %5623 = vmatprep.subr.bf16.mxu1 %v6346_v47 }
 0x54c   : > { %5624 = vmatpush3.bf16.msra.mxu1 %v6271_v31 }
 0x54d   : > { %5625 = vmatprep.subr.bf16.mxu1 %v6346_v47 }
 0x550   : > { %5626 = vmatpush3.bf16.msra.mxu1 %v6272_v3 }
 0x551   : > { %5627 = vmatprep.subr.bf16.mxu1 %v6346_v47 }
 0x554   : > { %5628 = vmatpush3.bf16.msra.mxu1 %v6273_v23 }
 0x555   : > { %5629 = vmatprep.subr.bf16.mxu1 %v6346_v47 }
 0x558   : > { %5630 = vmatpush3.bf16.msra.mxu1 %v6274_v45 }
 0x559   : > { %5631 = vmatprep.subr.bf16.mxu1 %v6346_v47 }
 0x55c   : > { %5632 = vmatpush3.bf16.msra.mxu1 %v6275_v26 }
 0x55d   : > { %5637 = vmatprep.subr.bf16.mxu1 %v6346_v47 }
 0x55f   : > { %5634 = vmatmul.mubr.msk.bf16.vlgmr.msra.gmra.mrb[184].mxu1 %vm3848_vm6, %v7721_v2 }
 0x560   : > { %5638 = vmatpush3.bf16.msra.mxu1 %v6276_v59  ;;  %5651 = vmatprep.mubr.msk.bf16.mxu1 %vm6347_vm5, %v6346_v47 }
 0x561   : > { %5639 = vmatprep.subr.bf16.mxu1 %v6346_v47 }
 0x564   : > { %5640 = vmatpush3.bf16.msra.mxu1 %v6277_v24 }
 0x565   : > { %5641 = vmatprep.subr.bf16.mxu1 %v6346_v47 }
 0x568   : > { %5642 = vmatpush3.bf16.msra.mxu1 %v6278_v55 }
 0x569   : > { %5643 = vmatprep.subr.bf16.mxu1 %v6346_v47 }
 0x56c   : > { %5644 = vmatpush3.bf16.msra.mxu1 %v6279_v46 }
 0x56d   : > { %5645 = vmatprep.subr.bf16.mxu1 %v6346_v47 }
 0x570   : > { %5646 = vmatpush3.bf16.msra.mxu1 %v6280_v51 }
 0x571   : > { %5647 = vmatprep.subr.bf16.mxu1 %v6346_v47 }
 0x574   : > { %5648 = vmatpush3.bf16.msra.mxu1 %v6281_v36 }
 0x575   : > { %5649 = vmatprep.subr.bf16.mxu1 %v6346_v47 }
 0x578   : > { %5650 = vmatpush3.bf16.msra.mxu1 %v6282_v63 }
 0x579   : > { %5655 = vmatprep.subr.bf16.mxu1 %v6346_v47 }
 0x57b   : > { %5652 = vmatmul.mubr.msk.bf16.vlgmr.msra.gmra.mrb[188].mxu1 %vm3848_vm6, %v7735_v20 }
 0x57c   : > { %5656 = vmatpush3.bf16.msra.mxu1 %v6283_v49  ;;  %5669 = vmatprep.mubr.msk.bf16.mxu1 %vm6347_vm5, %v6346_v47 }
 0x57d   : > { %5657 = vmatprep.subr.bf16.mxu1 %v6346_v47 }
 0x580   : > { %5658 = vmatpush3.bf16.msra.mxu1 %v6284_v42 }
 0x581   : > { %5659 = vmatprep.subr.bf16.mxu1 %v6346_v47 }
 0x584   : > { %5660 = vmatpush3.bf16.msra.mxu1 %v6285_v6 }
 0x585   : > { %5661 = vmatprep.subr.bf16.mxu1 %v6346_v47 }
 0x588   : > { %5662 = vmatpush3.bf16.msra.mxu1 %v6286_v4 }
 0x589   : > { %5663 = vmatprep.subr.bf16.mxu1 %v6346_v47 }
 0x58c   : > { %5664 = vmatpush3.bf16.msra.mxu1 %v6287_v34 }
 0x58d   : > { %5665 = vmatprep.subr.bf16.mxu1 %v6346_v47 }
 0x590   : > { %5666 = vmatpush3.bf16.msra.mxu1 %v6288_v8 }
 0x591   : > { %5667 = vmatprep.subr.bf16.mxu1 %v6346_v47 }
 0x594   : > { %5668 = vmatpush3.bf16.msra.mxu1 %v6289_v33 }
 0x595   : > { %5673 = vmatprep.subr.bf16.mxu1 %v6346_v47 }
 0x597   : > { %5670 = vmatmul.mubr.msk.bf16.vlgmr.msra.gmra.mrb[192].mxu1 %vm3848_vm6, %v7707_v30  ;;  %v6293_v30 = vld [vmem:[%s8031_s5 + $0x168] sm:$0xff]  }
 0x598   : > { %5674 = vmatpush3.bf16.msra.mxu1 %v6290_v0  ;;  %5687 = vmatprep.mubr.msk.bf16.mxu1 %vm6347_vm5, %v6346_v47 }
 0x599   : > { %5675 = vmatprep.subr.bf16.mxu1 %v6346_v47 }
 0x59c   : > { %5676 = vmatpush3.bf16.msra.mxu1 %v6291_v60 }
 0x59d   : > { %5677 = vmatprep.subr.bf16.mxu1 %v6346_v47 }
 0x5a0   : > { %5678 = vmatpush3.bf16.msra.mxu1 %v6292_v21 }
 0x5a1   : > { %5679 = vmatprep.subr.bf16.mxu1 %v6346_v47 }
 0x5a4   : > { %5680 = vmatpush3.bf16.msra.mxu1 %v6293_v30 }
 0x5a5   : > { %5681 = vmatprep.subr.bf16.mxu1 %v6346_v47 }
 0x5a8   : > { %5682 = vmatpush3.bf16.msra.mxu1 %v6294_v37 }
 0x5a9   : > { %5683 = vmatprep.subr.bf16.mxu1 %v6346_v47 }
 0x5ac   : > { %5684 = vmatpush3.bf16.msra.mxu1 %v6295_v22 }
 0x5ad   : > { %5685 = vmatprep.subr.bf16.mxu1 %v6346_v47 }
 0x5b0   : > { %5686 = vmatpush3.bf16.msra.mxu1 %v6296_v28 }
 0x5b1   : > { %5691 = vmatprep.subr.bf16.mxu1 %v6346_v47 }
 0x5b3   : > { %5688 = vmatmul.mubr.msk.bf16.vlgmr.msra.gmra.mrb[196].mxu1 %vm3848_vm6, %v7721_v2  ;;  %v6300_v2 = vld [vmem:[%s8031_s5 + $0x1a0] sm:$0xff]  }
 0x5b4   : > { %5692 = vmatpush3.bf16.msra.mxu1 %v6297_v48  ;;  %5705 = vmatprep.mubr.msk.bf16.mxu1 %vm6347_vm5, %v6346_v47 }
 0x5b5   : > { %5693 = vmatprep.subr.bf16.mxu1 %v6346_v47 }
 0x5b8   : > { %5694 = vmatpush3.bf16.msra.mxu1 %v6298_v12 }
 0x5b9   : > { %5695 = vmatprep.subr.bf16.mxu1 %v6346_v47 }
 0x5bc   : > { %5696 = vmatpush3.bf16.msra.mxu1 %v6299_v29 }
 0x5bd   : > { %5697 = vmatprep.subr.bf16.mxu1 %v6346_v47 }
 0x5c0   : > { %5698 = vmatpush3.bf16.msra.mxu1 %v6300_v2 }
 0x5c1   : > { %5699 = vmatprep.subr.bf16.mxu1 %v6346_v47 }
 0x5c4   : > { %5700 = vmatpush3.bf16.msra.mxu1 %v6301_v61 }
 0x5c5   : > { %5701 = vmatprep.subr.bf16.mxu1 %v6346_v47 }
 0x5c8   : > { %5702 = vmatpush3.bf16.msra.mxu1 %v6302_v16 }
 0x5c9   : > { %5703 = vmatprep.subr.bf16.mxu1 %v6346_v47 }
 0x5cc   : > { %5704 = vmatpush3.bf16.msra.mxu1 %v6303_v41 }
 0x5cd   : > { %5709 = vmatprep.subr.bf16.mxu1 %v6346_v47 }
 0x5cf   : > { %5706 = vmatmul.mubr.msk.bf16.vlgmr.msra.gmra.mrb[200].mxu1 %vm3848_vm6, %v7735_v20  ;;  %v6307_v20 = vld [vmem:[%s8031_s5 + $0x1d8] sm:$0xff]  }
 0x5d0   : > { %5710 = vmatpush3.bf16.msra.mxu1 %v6304_v15  ;;  %5723 = vmatprep.mubr.msk.bf16.mxu1 %vm6347_vm5, %v6346_v47 }
 0x5d1   : > { %5711 = vmatprep.subr.bf16.mxu1 %v6346_v47 }
 0x5d4   : > { %5712 = vmatpush3.bf16.msra.mxu1 %v6305_v18 }
 0x5d5   : > { %5713 = vmatprep.subr.bf16.mxu1 %v6346_v47 }
 0x5d8   : > { %5714 = vmatpush3.bf16.msra.mxu1 %v6306_v10 }
 0x5d9   : > { %5715 = vmatprep.subr.bf16.mxu1 %v6346_v47 }
 0x5dc   : > { %5716 = vmatpush3.bf16.msra.mxu1 %v6307_v20  ;;  %v5481_v20 = vld [vmem:[%s8032_s6] ss:$0 sm:$0xff] }
 0x5dd   : > { %5717 = vmatprep.subr.bf16.mxu1 %v6346_v47 }
 0x5de   : > { %v3886_v9 = vpop.f32.mrb[172].mxu1 }
 0x5df   : > { %v5581_v56 = vpop.f32.mrb[173].mxu1 }
 0x5e0   : > { %5718 = vmatpush3.bf16.msra.mxu1 %v6308_v54  ;;  %v3889_v35 = vpop.f32.mrb[174].mxu1 }
 0x5e1   : > { %v5582_v32 = vpop.f32.mrb[175].mxu1  ;;  %5719 = vmatprep.subr.bf16.mxu1 %v6346_v47 }
 0x5e4   : > { %5720 = vmatpush3.bf16.msra.mxu1 %v6309_v7 }
 0x5e5   : > { %5721 = vmatprep.subr.bf16.mxu1 %v6346_v47 }
 0x5e8   : > { %5722 = vmatpush3.bf16.msra.mxu1 %v6310_v62 }
 0x5e9   : > { %5727 = vmatprep.subr.bf16.mxu1 %v6346_v47 }
 0x5eb   : > { %5724 = vmatmul.mubr.msk.bf16.vlgmr.msra.gmra.mrb[204].mxu1 %vm3848_vm6, %v7753_v39  ;;  %v6314_v39 = vld [vmem:[%s8031_s5 + $0x210] sm:$0xff]  }
 0x5ec   : > { %5728 = vmatpush3.bf16.msra.mxu1 %v6311_v50  ;;  %5741 = vmatprep.mubr.msk.bf16.mxu1 %vm6347_vm5, %v6346_v47 }
 0x5ed   : > { %5729 = vmatprep.subr.bf16.mxu1 %v6346_v47 }
 0x5f0   : > { %5730 = vmatpush3.bf16.msra.mxu1 %v6312_v13 }
 0x5f1   : > { %5731 = vmatprep.subr.bf16.mxu1 %v6346_v47 }
 0x5f4   : > { %5732 = vmatpush3.bf16.msra.mxu1 %v6313_v57 }
 0x5f5   : > { %5733 = vmatprep.subr.bf16.mxu1 %v6346_v47 }
 0x5f8   : > { %5734 = vmatpush3.bf16.msra.mxu1 %v6314_v39 }
 0x5f9   : > { %5735 = vmatprep.subr.bf16.mxu1 %v6346_v47 }
 0x5fa   : > { %v3972_v19 = vpop.f32.mrb[176].mxu1 }
 0x5fb   : > { %v3973_v38 = vadd.f32 %v3972_v19, %v3886_v9  ;;  %v5599_v25 = vpop.f32.mrb[177].mxu1 }
 0x5fc   : > { %v3975_v58 = vpop.f32.mrb[178].mxu1  ;;  %5736 = vmatpush3.bf16.msra.mxu1 %v6315_v52 }
 0x5fd   : > { %v3976_v44 = vadd.f32 %v3975_v58, %v3889_v35  ;;  %v5600_v43 = vpop.f32.mrb[179].mxu1  ;;  %5737 = vmatprep.subr.bf16.mxu1 %v6346_v47 }
 0x600   : > { %5738 = vmatpush3.bf16.msra.mxu1 %v6316_v27 }
 0x601   : > { %5739 = vmatprep.subr.bf16.mxu1 %v6346_v47 }
 0x604   : > { %5740 = vmatpush3.bf16.msra.mxu1 %v6317_v11 }
 0x607   : > { %5742 = vmatmul.mubr.msk.bf16.vlgmr.msra.gmra.mrb[208].mxu1 %vm3848_vm6, %v7767_v17 }
 0x616   : > { %v4073_v5 = vpop.f32.mrb[180].mxu1 }
 0x617   : > { %v4080_v53 = vadd.f32 %v4073_v5, %v3973_v38  ;;  %v5617_v40 = vpop.f32.mrb[181].mxu1 }
 0x618   : > { %v4076_v1 = vpop.f32.mrb[182].mxu1 }
 0x619   : > { %v4081_v14 = vadd.f32 %v4076_v1, %v3976_v44  ;;  %v5618_v31 = vpop.f32.mrb[183].mxu1 }
 0x632   : > { %v4176_v3 = vpop.f32.mrb[184].mxu1 }
 0x633   : > { %v4183_v23 = vadd.f32 %v4176_v3, %v4080_v53  ;;  %v5635_v45 = vpop.f32.mrb[185].mxu1 }
 0x634   : > { %v4179_v26 = vpop.f32.mrb[186].mxu1 }
 0x635   : > { %v4184_v59 = vadd.f32 %v4179_v26, %v4081_v14  ;;  %v5636_v24 = vpop.f32.mrb[187].mxu1 }
 0x64e   : > { %v4279_v55 = vpop.f32.mrb[188].mxu1 }
 0x64f   : > { %v4286_v46 = vadd.f32 %v4279_v55, %v4183_v23  ;;  %v5653_v51 = vpop.f32.mrb[189].mxu1 }
 0x650   : > { %v4282_v47 = vpop.f32.mrb[190].mxu1 }
 0x651   : > { %v4287_v36 = vadd.f32 %v4282_v47, %v4184_v59  ;;  %v5654_v63 = vpop.f32.mrb[191].mxu1 }
 0x66a   : > { %v4379_v49 = vpop.f32.mrb[192].mxu1 }
 0x66b   : > { %v4386_v17 = vadd.f32 %v4379_v49, %v4286_v46  ;;  %v5671_v42 = vpop.f32.mrb[193].mxu1 }
 0x66c   : > { %v4382_v6 = vpop.f32.mrb[194].mxu1 }
 0x66d   : > { %v4387_v4 = vadd.f32 %v4382_v6, %v4287_v36  ;;  %v5672_v34 = vpop.f32.mrb[195].mxu1 }
 0x686   : > { %v4479_v8 = vpop.f32.mrb[196].mxu1 }
 0x687   : > { %v4486_v33 = vadd.f32 %v4479_v8, %v4386_v17  ;;  %v5689_v0 = vpop.f32.mrb[197].mxu1 }
 0x688   : > { %v4482_v60 = vpop.f32.mrb[198].mxu1 }
 0x689   : > { %v4487_v21 = vadd.f32 %v4482_v60, %v4387_v4  ;;  %v5690_v30 = vpop.f32.mrb[199].mxu1 }
 0x6a2   : > { %v4579_v37 = vpop.f32.mrb[200].mxu1 }
 0x6a3   : > { %v4586_v22 = vadd.f32 %v4579_v37, %v4486_v33  ;;  %v5707_v28 = vpop.f32.mrb[201].mxu1 }
 0x6a4   : > { %v4582_v48 = vpop.f32.mrb[202].mxu1 }
 0x6a5   : > { %v4587_v12 = vadd.f32 %v4582_v48, %v4487_v21  ;;  %v5708_v29 = vpop.f32.mrb[203].mxu1 }
 0x6be   : > { %v4682_v2 = vpop.f32.mrb[204].mxu1 }
 0x6bf   : > { %v4689_v61 = vadd.f32 %v4682_v2, %v4586_v22  ;;  %v5725_v16 = vpop.f32.mrb[205].mxu1 }
 0x6c0   : > { %v4685_v41 = vpop.f32.mrb[206].mxu1 }
 0x6c1   : > { %v4690_v15 = vadd.f32 %v4685_v41, %v4587_v12  ;;  %v5726_v18 = vpop.f32.mrb[207].mxu1 }
 0x6da   : > { %v4785_v10 = vpop.f32.mrb[208].mxu1 }
 0x6db   : > { %v4792_v54 = vadd.f32 %v4785_v10, %v4689_v61  ;;  %v5743_v9 = vpop.f32.mrb[209].mxu1 }
 0x6dc   : > { %v4788_v56 = vpop.f32.mrb[210].mxu1 }
 0x6dd   : > { %v4801_v35 = vadd.f32 %v5481_v20, %v4792_v54  ;;  %v4793_v7 = vadd.f32 %v4788_v56, %v4690_v15  ;;  %v5744_v32 = vpop.f32.mrb[211].mxu1 }
 0x6df   : > { %v4803_v62 = vmax.f32 %v4801_v35, 0.0  ;;  %v4802_v50 = vadd.f32 %v5481_v20, %v4793_v7 }
 0x6e1   : > { %4805 = vst [vmem:[%s613_s11] sm:$0xff] %v4803_v62  ;;  %v4804_v13 = vmax.f32 %v4802_v50, 0.0 }
 0x6e3   : > { %4806 = vst [vmem:[%s613_s11 + $0x8] sm:$0xff] %v4804_v13 }
 0x6e4 PF: > { %p14_p9 = scmp.ge.s32.totalorder %s6405_s28, 4   ;;  %s8043_s24 = smov %s6338_s25 }
 0x6e5   : > { %s8044_s25 = smov %s6414_s8  ;;  %s8045_s26 = smov %s6405_s28 }
 0x6e6   :  { %16 = sbr.rel (!%p14_p9) target bundleno = 2 (0x2), region = 141 }

</bundles_post_ra>
